<compile_context>
chip_gen: v5e
topology: v5e:2x2
jax: 0.10.0
libtpu: 0.0.40
codegen_flags: <defaults>
</compile_context>

<pallas_src>
import functools
import math

import jax
import jax.numpy as jnp
from jax import lax
from jax.experimental import pallas as pl
from jax.experimental.pallas import tpu as pltpu


def _encoder_layer_kernel(
    x_ref,       # (L, Bi, E)  L = attended axis (PyTorch axis 0), Bi = block of independent axis
    wqkv_ref,    # (E, 3E)     fused, pre-transposed in_proj weight (Q columns pre-scaled)
    bqkv_ref,    # (1, 3E)     f32, Q slice pre-scaled
    wo_ref,      # (E, E)      pre-transposed out_proj weight
    bo_ref,      # (1, E)      f32
    gamma_ref,   # (1, E)      LayerNorm weight (f32)
    beta_ref,    # (1, E)      LayerNorm bias (f32)
    o_ref,       # (L, Bi, E)
    *,
    num_heads: int,
    eps: float,
):
    x = x_ref[...]
    L, Bi, E = x.shape
    H = num_heads
    Dh = E // H
    N = Bi * H

    # ---- Fp32LayerNorm (always computed in float32, eps=1e-6, cast back) ----
    xf = x.astype(jnp.float32)
    mean = jnp.mean(xf, axis=-1, keepdims=True)
    cent = xf - mean
    var = jnp.mean(cent * cent, axis=-1, keepdims=True)
    xn = cent * lax.rsqrt(var + eps)
    xn = xn * gamma_ref[0] + beta_ref[0]
    xn = xn.astype(x.dtype)                              # type_as(input)

    # ---- fused QKV projection: one MXU matmul over all M = L*Bi rows ----
    xn2 = xn.reshape(L * Bi, E)
    qkv = jnp.dot(xn2, wqkv_ref[...], preferred_element_type=jnp.float32)
    qkv = (qkv + bqkv_ref[0]).astype(x.dtype)            # back to the MXU-fast dtype

    # n-leading head layout (n = b*H + h): one relayout up front, then both
    # attention matmuls are canonical leading-batch dot_generals.
    def to_heads(t):                                     # (L*Bi, E) -> (N, L, Dh)
        t = t.reshape(L, Bi, H, Dh)
        t = jnp.transpose(t, (1, 2, 0, 3))
        return t.reshape(N, L, Dh)

    q = to_heads(qkv[:, :E])                             # 1/sqrt(Dh) already folded in
    k = to_heads(qkv[:, E:2 * E])
    v = to_heads(qkv[:, 2 * E:])

    # scores over the attended axis, batched over n: (N, L, L)
    scores = lax.dot_general(q, k, (((2,), (2,)), ((0,), (0,))),
                             preferred_element_type=jnp.float32)
    scores = scores - jnp.max(scores, axis=-1, keepdims=True)
    p = jnp.exp(scores)
    p = p * pl.reciprocal(jnp.sum(p, axis=-1, keepdims=True), approx=True)
    p = p.astype(x.dtype)

    # context: (N, L, Dh) -> (L*Bi, E)
    ctx = lax.dot_general(p, v, (((2,), (1,)), ((0,), (0,))),
                          preferred_element_type=jnp.float32)
    ctx = jnp.transpose(ctx.reshape(Bi, H, L, Dh), (2, 0, 1, 3))
    ctx = ctx.reshape(L * Bi, E).astype(x.dtype)

    # output projection (pre-transposed weight -> straight MXU feed)
    attn = jnp.dot(ctx, wo_ref[...], preferred_element_type=jnp.float32) + bo_ref[0]
    attn = attn.reshape(L, Bi, E).astype(x.dtype)

    # ---- residual: context + inputs ----
    o_ref[...] = (attn + x).astype(o_ref.dtype)


def prepare_params(params, num_heads, dtype=jnp.float32):
    """One-time parameter prep (hoisted out of the per-call wrapper):
    fuse + transpose the projection weights, fold the 1/sqrt(Dh) attention
    scale into the Q columns / Q bias slice, and cast the matmul weights to the
    activation dtype so the MXU stays on its fast path for bf16 inputs."""
    E = params["out_proj_weight"].shape[0]
    Dh = E // num_heads
    scale = 1.0 / math.sqrt(Dh)
    col_scale = jnp.concatenate([jnp.full((E,), scale, jnp.float32),
                                 jnp.ones((2 * E,), jnp.float32)])
    wqkv_t = jnp.transpose(params["in_proj_weight"]).astype(jnp.float32) * col_scale[None, :]
    bqkv = params["in_proj_bias"].astype(jnp.float32) * col_scale
    return {
        "wqkv_t": wqkv_t.astype(dtype),                                   # (E, 3E)
        "bqkv": bqkv.reshape(1, 3 * E),                                   # f32 (added to f32 acc)
        "wo_t": jnp.transpose(params["out_proj_weight"]).astype(dtype),   # (E, E)
        "bo": params["out_proj_bias"].reshape(1, E).astype(jnp.float32),
        "gamma": params["ln_weight"].reshape(1, E).astype(jnp.float32),
        "beta": params["ln_bias"].reshape(1, E).astype(jnp.float32),
    }


def _vmem_budget_bytes():
    """Generation-aware VMEM budget (v5e/v6e: 128 MiB physical, v7x: 64 MiB)."""
    try:
        cap = int(pltpu.get_tpu_info().vmem_capacity_bytes)
    except Exception:
        cap = 64 << 20   # conservative fallback (v7x physical per-core VMEM)
    return max(32 << 20, int(cap * 3 // 4))


def _choose_block_ind(A0, A1, E, H, x_itemsize, w_itemsize, budget_bytes):
    """Block size along the independent axis (axis 1 of x).

    Candidates divide A1 and are dtype-aware sublane aligned (8 f32 / 16 bf16 /
    32 int8) or the full extent.  The footprint model counts the resident
    weights, the double-buffered in/out blocks and the f32 intermediates
    (qkv, per-head q/k/v, scores, probs, ctx) against the VMEM budget.  Among
    fitting candidates prefer an MXU-sized M = A0*Bi, then >=2 (even) grid
    steps so both v7x TensorCores get equal work, then the largest block.
    """
    sub = max(8, 32 // max(1, x_itemsize))
    cands = [d for d in range(1, A1 + 1)
             if A1 % d == 0 and (d % sub == 0 or d == A1)]
    w_bytes = (3 * E * E + E * E) * w_itemsize + 8 * E * 4   # weights + biases/LN

    def footprint(d):
        blk = A0 * d * E
        io = 2 * 2 * blk * x_itemsize             # in + out blocks, double-buffered
        inter = 10 * blk * 4                      # f32 qkv / q,k,v copies / ctx / attn
        attn_mats = 2 * d * H * A0 * A0 * 4       # scores + probs (f32)
        return w_bytes + io + inter + attn_mats

    fitting = [d for d in cands if footprint(d) <= budget_bytes] or [min(cands)]

    min_rows = 256                                # one MXU tile of M on v6e/v7x

    def rank(d):
        steps = A1 // d
        return (A0 * d >= min_rows,               # MXU-sized projection matmuls
                steps >= 2,                       # shard across 2 TensorCores
                steps % 2 == 0,                   # even per-core split
                d)                                # amortize per-step overhead

    return max(fitting, key=rank)


def transformer_encoder_layer(x, prepared, num_heads, block_ind=None):
    """x: (batch, src_len, d_model).  Attention mixes over axis 0 (PyTorch
    batch_first=False semantics for self_attn(x, x, x)); axis 1 is independent
    and is tiled by the Pallas grid."""
    A0, A1, E = x.shape
    assert E % num_heads == 0

    wqkv_t, bqkv = prepared["wqkv_t"], prepared["bqkv"]
    wo_t, bo = prepared["wo_t"], prepared["bo"]
    gamma, beta = prepared["gamma"], prepared["beta"]

    budget = _vmem_budget_bytes()
    if block_ind is None:
        block_ind = _choose_block_ind(A0, A1, E, num_heads,
                                      x.dtype.itemsize, wqkv_t.dtype.itemsize,
                                      budget)
    assert A1 % block_ind == 0
    grid = (A1 // block_ind,)

    # TODO(synk): for large d_model (fused Wqkv no longer VMEM-resident, e.g.
    # E >= 2048 on v7x) tile the projections over a K/N grid axis instead of
    # keeping the whole (E, 3E) weight resident.

    kernel = functools.partial(_encoder_layer_kernel,
                               num_heads=num_heads, eps=1e-6)

    def build(single_buffer_weights):
        def w_spec(shape):
            # Constant-index operands: single-buffer to halve their VMEM
            # footprint (matters most on v7x's 64 MiB VMEM).
            if single_buffer_weights:
                try:
                    return pl.BlockSpec(shape, lambda b: (0, 0),
                                        pipeline_mode=pl.Buffered(1))
                except TypeError:
                    pass
            return pl.BlockSpec(shape, lambda b: (0, 0))

        return pl.pallas_call(
            kernel,
            out_shape=jax.ShapeDtypeStruct((A0, A1, E), x.dtype),
            grid_spec=pltpu.PrefetchScalarGridSpec(
                num_scalar_prefetch=0,
                grid=grid,
                in_specs=[
                    pl.BlockSpec((A0, block_ind, E), lambda b: (0, b, 0)),  # x block
                    w_spec((E, 3 * E)),                                     # fused Wqkv^T
                    w_spec((1, 3 * E)),                                     # fused bqkv
                    w_spec((E, E)),                                         # Wo^T
                    w_spec((1, E)),                                         # bo
                    w_spec((1, E)),                                         # gamma
                    w_spec((1, E)),                                         # beta
                ],
                out_specs=pl.BlockSpec((A0, block_ind, E), lambda b: (0, b, 0)),
            ),
            compiler_params=pltpu.CompilerParams(
                dimension_semantics=("parallel",),
                vmem_limit_bytes=budget),
        )

    args = (x, wqkv_t, bqkv, wo_t, bo, gamma, beta)
    try:
        return build(True)(*args)
    except Exception:
        # Fallback: default (double-buffered) weight specs — identical numerics.
        return build(False)(*args)


def _reference(x, params, num_heads):
    """Pure-JAX reference with identical (literal PyTorch) semantics."""
    A0, A1, E = x.shape
    H = num_heads
    Dh = E // H
    xf = x.astype(jnp.float32)
    mean = xf.mean(-1, keepdims=True)
    var = ((xf - mean) ** 2).mean(-1, keepdims=True)
    xn = (xf - mean) / jnp.sqrt(var + 1e-6)
    xn = (xn * params["ln_weight"] + params["ln_bias"]).astype(x.dtype)

    qkv = jnp.einsum('abe,fe->abf', xn, params["in_proj_weight"]) + params["in_proj_bias"]
    q, k, v = qkv[..., :E], qkv[..., E:2 * E], qkv[..., 2 * E:]
    q = q.reshape(A0, A1, H, Dh) / jnp.sqrt(Dh)
    k = k.reshape(A0, A1, H, Dh)
    v = v.reshape(A0, A1, H, Dh)
    s = jnp.einsum('qbhd,kbhd->bhqk', q, k)          # attend over axis 0
    p = jax.nn.softmax(s, axis=-1)
    ctx = jnp.einsum('bhqk,kbhd->qbhd', p, v).reshape(A0, A1, E)
    attn = jnp.einsum('abe,fe->abf', ctx, params["out_proj_weight"]) + params["out_proj_bias"]
    return attn.astype(x.dtype) + x


def init_params(key, d_model):
    """Deterministic synthetic parameters matching nn.MultiheadAttention +
    Fp32LayerNorm shapes."""
    k1, k2, k3, k4 = jax.random.split(key, 4)
    scale = 0.02
    return {
        "in_proj_weight": scale * jax.random.normal(k1, (3 * d_model, d_model), jnp.float32),
        "in_proj_bias":   scale * jax.random.normal(k2, (3 * d_model,), jnp.float32),
        "out_proj_weight": scale * jax.random.normal(k3, (d_model, d_model), jnp.float32),
        "out_proj_bias":   scale * jax.random.normal(k4, (d_model,), jnp.float32),
        "ln_weight": jnp.ones((d_model,), jnp.float32),
        "ln_bias": jnp.zeros((d_model,), jnp.float32),
    }


if __name__ == "__main__":
    d_model = 32
    num_heads = 4
    batch = 2       # (batch_size, src_len, model_dim) per the module docstring
    src_len = 8

    key = jax.random.PRNGKey(0)
    kx, kp = jax.random.split(key)
    x = jax.random.normal(kx, (batch, src_len, d_model), jnp.float32)
    params = init_params(kp, d_model)
    prepared = prepare_params(params, num_heads, dtype=x.dtype)   # one-time prep

    out = jax.block_until_ready(transformer_encoder_layer(x, prepared, num_heads))

    assert out.shape == (batch, src_len, d_model)
    assert out.dtype == x.dtype
    assert bool(jnp.all(jnp.isfinite(out)))

    ref = _reference(x, params, num_heads)
    err = float(jnp.max(jnp.abs(out - ref)))
    assert bool(jnp.allclose(out, ref, rtol=2e-2, atol=2e-3)), f"max abs err {err}"

    print("KERNEL_OK")
</pallas_src>

<mosaic_0001>
module attributes {stable_mosaic.version = 11 : i64} {
  func.func @_encoder_layer_kernel(%arg0: i32, %arg1: memref<2x8x32xf32, #tpu.memory_space<vmem>>, %arg2: memref<32x96xf32, #tpu.memory_space<vmem>>, %arg3: memref<1x96xf32, #tpu.memory_space<vmem>>, %arg4: memref<32x32xf32, #tpu.memory_space<vmem>>, %arg5: memref<1x32xf32, #tpu.memory_space<vmem>>, %arg6: memref<1x32xf32, #tpu.memory_space<vmem>>, %arg7: memref<1x32xf32, #tpu.memory_space<vmem>>, %arg8: memref<2x8x32xf32, #tpu.memory_space<vmem>>) attributes {dimension_semantics = [#tpu.dimension_semantics<parallel>], iteration_bounds = array<i64: 1>, scalar_prefetch = 0 : i64, scratch_operands = 0 : i64, tpu.core_type = #tpu.core_type<tc>, window_params = [{transform_indices = @transform_0, window_bounds = array<i64: 2, 8, 32>}, {pipeline_mode = #tpu.pipeline_mode<synchronous>, transform_indices = @transform_1, window_bounds = array<i64: 32, 96>}, {pipeline_mode = #tpu.pipeline_mode<synchronous>, transform_indices = @transform_2, window_bounds = array<i64: 1, 96>}, {pipeline_mode = #tpu.pipeline_mode<synchronous>, transform_indices = @transform_3, window_bounds = array<i64: 32, 32>}, {pipeline_mode = #tpu.pipeline_mode<synchronous>, transform_indices = @transform_4, window_bounds = array<i64: 1, 32>}, {pipeline_mode = #tpu.pipeline_mode<synchronous>, transform_indices = @transform_5, window_bounds = array<i64: 1, 32>}, {pipeline_mode = #tpu.pipeline_mode<synchronous>, transform_indices = @transform_6, window_bounds = array<i64: 1, 32>}, {transform_indices = @transform_7, window_bounds = array<i64: 2, 8, 32>}]} {
    %c0 = arith.constant 0 : index
    %c0_0 = arith.constant 0 : index
    %c0_1 = arith.constant 0 : index
    %0 = vector.load %arg1[%c0, %c0_0, %c0_1] : memref<2x8x32xf32, #tpu.memory_space<vmem>>, vector<2x8x32xf32>
    %cst = arith.constant dense<0.000000e+00> : vector<2x8xf32>
    %1 = vector.multi_reduction <add>, %0, %cst [2] : vector<2x8x32xf32> to vector<2x8xf32>
    %2 = vector.shape_cast %1 : vector<2x8xf32> to vector<2x8x1xf32>
    %cst_2 = arith.constant 3.200000e+01 : f32
    %3 = vector.broadcast %cst_2 : f32 to vector<2x8x1xf32>
    %4 = arith.divf %2, %3 : vector<2x8x1xf32>
    %5 = vector.broadcast %4 : vector<2x8x1xf32> to vector<2x8x32xf32>
    %6 = arith.subf %0, %5 : vector<2x8x32xf32>
    %7 = arith.mulf %6, %6 : vector<2x8x32xf32>
    %cst_3 = arith.constant dense<0.000000e+00> : vector<2x8xf32>
    %8 = vector.multi_reduction <add>, %7, %cst_3 [2] : vector<2x8x32xf32> to vector<2x8xf32>
    %9 = vector.shape_cast %8 : vector<2x8xf32> to vector<2x8x1xf32>
    %cst_4 = arith.constant 3.200000e+01 : f32
    %10 = vector.broadcast %cst_4 : f32 to vector<2x8x1xf32>
    %11 = arith.divf %9, %10 : vector<2x8x1xf32>
    %cst_5 = arith.constant 9.99999997E-7 : f32
    %12 = vector.broadcast %cst_5 : f32 to vector<2x8x1xf32>
    %13 = arith.addf %11, %12 : vector<2x8x1xf32>
    %14 = math.rsqrt %13 : vector<2x8x1xf32>
    %15 = vector.broadcast %14 : vector<2x8x1xf32> to vector<2x8x32xf32>
    %16 = arith.mulf %6, %15 : vector<2x8x32xf32>
    %c0_6 = arith.constant 0 : index
    %c0_7 = arith.constant 0 : index
    %17 = vector.load %arg6[%c0_6, %c0_7] : memref<1x32xf32, #tpu.memory_space<vmem>>, vector<1x32xf32>
    %18 = vector.shape_cast %17 : vector<1x32xf32> to vector<32xf32>
    %19 = vector.shape_cast %18 : vector<32xf32> to vector<1x1x32xf32>
    %20 = vector.broadcast %19 : vector<1x1x32xf32> to vector<2x8x32xf32>
    %21 = arith.mulf %16, %20 : vector<2x8x32xf32>
    %c0_8 = arith.constant 0 : index
    %c0_9 = arith.constant 0 : index
    %22 = vector.load %arg7[%c0_8, %c0_9] : memref<1x32xf32, #tpu.memory_space<vmem>>, vector<1x32xf32>
    %23 = vector.shape_cast %22 : vector<1x32xf32> to vector<32xf32>
    %24 = vector.shape_cast %23 : vector<32xf32> to vector<1x1x32xf32>
    %25 = vector.broadcast %24 : vector<1x1x32xf32> to vector<2x8x32xf32>
    %26 = arith.addf %21, %25 : vector<2x8x32xf32>
    %27 = vector.shape_cast %26 : vector<2x8x32xf32> to vector<16x32xf32>
    %c0_10 = arith.constant 0 : index
    %c0_11 = arith.constant 0 : index
    %28 = vector.load %arg2[%c0_10, %c0_11] : memref<32x96xf32, #tpu.memory_space<vmem>>, vector<32x96xf32>
    %cst_12 = arith.constant dense<0.000000e+00> : vector<16x96xf32>
    %29 = tpu.matmul %27, %28, %cst_12 {dimension_numbers = #tpu.dot_dimension_numbers<[1], [0], [0], [1], [0, 0, 1, 1], [], []>} : vector<16x32xf32>, vector<32x96xf32>, vector<16x96xf32> -> vector<16x96xf32>
    %c0_13 = arith.constant 0 : index
    %c0_14 = arith.constant 0 : index
    %30 = vector.load %arg3[%c0_13, %c0_14] : memref<1x96xf32, #tpu.memory_space<vmem>>, vector<1x96xf32>
    %31 = vector.shape_cast %30 : vector<1x96xf32> to vector<96xf32>
    %32 = vector.shape_cast %31 : vector<96xf32> to vector<1x96xf32>
    %33 = vector.broadcast %32 : vector<1x96xf32> to vector<16x96xf32>
    %34 = arith.addf %29, %33 : vector<16x96xf32>
    %35 = vector.extract_strided_slice %34 {offsets = [0, 0], sizes = [16, 32], strides = [1, 1]} : vector<16x96xf32> to vector<16x32xf32>
    %36 = vector.shape_cast %35 : vector<16x32xf32> to vector<2x8x4x8xf32>
    %37 = tpu.transpose %36, [1, 2, 0, 3] : vector<2x8x4x8xf32> -> vector<8x4x2x8xf32>
    %38 = vector.shape_cast %37 : vector<8x4x2x8xf32> to vector<32x2x8xf32>
    %39 = vector.extract_strided_slice %34 {offsets = [0, 32], sizes = [16, 32], strides = [1, 1]} : vector<16x96xf32> to vector<16x32xf32>
    %40 = vector.shape_cast %39 : vector<16x32xf32> to vector<2x8x4x8xf32>
    %41 = tpu.transpose %40, [1, 2, 0, 3] : vector<2x8x4x8xf32> -> vector<8x4x2x8xf32>
    %42 = vector.shape_cast %41 : vector<8x4x2x8xf32> to vector<32x2x8xf32>
    %43 = vector.extract_strided_slice %34 {offsets = [0, 64], sizes = [16, 32], strides = [1, 1]} : vector<16x96xf32> to vector<16x32xf32>
    %44 = vector.shape_cast %43 : vector<16x32xf32> to vector<2x8x4x8xf32>
    %45 = tpu.transpose %44, [1, 2, 0, 3] : vector<2x8x4x8xf32> -> vector<8x4x2x8xf32>
    %46 = vector.shape_cast %45 : vector<8x4x2x8xf32> to vector<32x2x8xf32>
    %cst_15 = arith.constant dense<0.000000e+00> : vector<32x2x2xf32>
    %47 = tpu.matmul %38, %42, %cst_15 {dimension_numbers = #tpu.dot_dimension_numbers<[2], [2], [1], [1], [0, 0, 0, 1, 1, 1], [0], [0]>} : vector<32x2x8xf32>, vector<32x2x8xf32>, vector<32x2x2xf32> -> vector<32x2x2xf32>
    %cst_16 = arith.constant dense<0xFF800000> : vector<32x2xf32>
    %48 = vector.multi_reduction <maximumf>, %47, %cst_16 [2] : vector<32x2x2xf32> to vector<32x2xf32>
    %49 = vector.shape_cast %48 : vector<32x2xf32> to vector<32x2x1xf32>
    %50 = vector.broadcast %49 : vector<32x2x1xf32> to vector<32x2x2xf32>
    %51 = arith.subf %47, %50 : vector<32x2x2xf32>
    %52 = math.exp %51 : vector<32x2x2xf32>
    %cst_17 = arith.constant dense<0.000000e+00> : vector<32x2xf32>
    %53 = vector.multi_reduction <add>, %52, %cst_17 [2] : vector<32x2x2xf32> to vector<32x2xf32>
    %54 = vector.shape_cast %53 : vector<32x2xf32> to vector<32x2x1xf32>
    %55 = tpu.reciprocal %54 {approx = true} : vector<32x2x1xf32> -> vector<32x2x1xf32>
    %56 = vector.broadcast %55 : vector<32x2x1xf32> to vector<32x2x2xf32>
    %57 = arith.mulf %52, %56 : vector<32x2x2xf32>
    %cst_18 = arith.constant dense<0.000000e+00> : vector<32x2x8xf32>
    %58 = tpu.matmul %57, %46, %cst_18 {dimension_numbers = #tpu.dot_dimension_numbers<[2], [1], [1], [2], [0, 0, 0, 1, 1, 2], [0], [0]>} : vector<32x2x2xf32>, vector<32x2x8xf32>, vector<32x2x8xf32> -> vector<32x2x8xf32>
    %59 = vector.shape_cast %58 : vector<32x2x8xf32> to vector<8x4x2x8xf32>
    %60 = tpu.transpose %59, [2, 0, 1, 3] : vector<8x4x2x8xf32> -> vector<2x8x4x8xf32>
    %61 = vector.shape_cast %60 : vector<2x8x4x8xf32> to vector<16x32xf32>
    %c0_19 = arith.constant 0 : index
    %c0_20 = arith.constant 0 : index
    %62 = vector.load %arg4[%c0_19, %c0_20] : memref<32x32xf32, #tpu.memory_space<vmem>>, vector<32x32xf32>
    %cst_21 = arith.constant dense<0.000000e+00> : vector<16x32xf32>
    %63 = tpu.matmul %61, %62, %cst_21 {dimension_numbers = #tpu.dot_dimension_numbers<[1], [0], [0], [1], [0, 0, 1, 1], [], []>} : vector<16x32xf32>, vector<32x32xf32>, vector<16x32xf32> -> vector<16x32xf32>
    %c0_22 = arith.constant 0 : index
    %c0_23 = arith.constant 0 : index
    %64 = vector.load %arg5[%c0_22, %c0_23] : memref<1x32xf32, #tpu.memory_space<vmem>>, vector<1x32xf32>
    %65 = vector.shape_cast %64 : vector<1x32xf32> to vector<32xf32>
    %66 = vector.shape_cast %65 : vector<32xf32> to vector<1x32xf32>
    %67 = vector.broadcast %66 : vector<1x32xf32> to vector<16x32xf32>
    %68 = arith.addf %63, %67 : vector<16x32xf32>
    %69 = vector.shape_cast %68 : vector<16x32xf32> to vector<2x8x32xf32>
    %70 = arith.addf %69, %0 : vector<2x8x32xf32>
    %c0_24 = arith.constant 0 : index
    %c0_25 = arith.constant 0 : index
    %c0_26 = arith.constant 0 : index
    %71 = vector.load %arg8[%c0_24, %c0_25, %c0_26] : memref<2x8x32xf32, #tpu.memory_space<vmem>>, vector<2x8x32xf32>
    tpu.vector_store %arg8[%c0_24, %c0_25, %c0_26], %70 {strides = array<i32>} : memref<2x8x32xf32, #tpu.memory_space<vmem>>, vector<2x8x32xf32>,
    return
  }
  func.func @transform_0(%arg0: i32) -> (i32, i32, i32) {
    %c0_i32 = arith.constant 0 : i32
    %c0_i32_0 = arith.constant 0 : i32
    %c0_i32_1 = arith.constant 0 : i32
    return %c0_i32, %arg0, %c0_i32_0 : i32, i32, i32
  }
  func.func @transform_1(%arg0: i32) -> (i32, i32) {
    %c0_i32 = arith.constant 0 : i32
    %c0_i32_0 = arith.constant 0 : i32
    %c0_i32_1 = arith.constant 0 : i32
    return %c0_i32, %c0_i32_0 : i32, i32
  }
  func.func @transform_2(%arg0: i32) -> (i32, i32) {
    %c0_i32 = arith.constant 0 : i32
    %c0_i32_0 = arith.constant 0 : i32
    %c0_i32_1 = arith.constant 0 : i32
    return %c0_i32, %c0_i32_0 : i32, i32
  }
  func.func @transform_3(%arg0: i32) -> (i32, i32) {
    %c0_i32 = arith.constant 0 : i32
    %c0_i32_0 = arith.constant 0 : i32
    %c0_i32_1 = arith.constant 0 : i32
    return %c0_i32, %c0_i32_0 : i32, i32
  }
  func.func @transform_4(%arg0: i32) -> (i32, i32) {
    %c0_i32 = arith.constant 0 : i32
    %c0_i32_0 = arith.constant 0 : i32
    %c0_i32_1 = arith.constant 0 : i32
    return %c0_i32, %c0_i32_0 : i32, i32
  }
  func.func @transform_5(%arg0: i32) -> (i32, i32) {
    %c0_i32 = arith.constant 0 : i32
    %c0_i32_0 = arith.constant 0 : i32
    %c0_i32_1 = arith.constant 0 : i32
    return %c0_i32, %c0_i32_0 : i32, i32
  }
  func.func @transform_6(%arg0: i32) -> (i32, i32) {
    %c0_i32 = arith.constant 0 : i32
    %c0_i32_0 = arith.constant 0 : i32
    %c0_i32_1 = arith.constant 0 : i32
    return %c0_i32, %c0_i32_0 : i32, i32
  }
  func.func @transform_7(%arg0: i32) -> (i32, i32, i32) {
    %c0_i32 = arith.constant 0 : i32
    %c0_i32_0 = arith.constant 0 : i32
    %c0_i32_1 = arith.constant 0 : i32
    return %c0_i32, %arg0, %c0_i32_0 : i32, i32, i32
  }
}

module attributes {stable_mosaic.version = 11 : i64} {
  func.func @_encoder_layer_kernel(%arg0: i32, %arg1: memref<2x8x32xf32, #tpu.memory_space<vmem>>, %arg2: memref<32x96xf32, #tpu.memory_space<vmem>>, %arg3: memref<1x96xf32, #tpu.memory_space<vmem>>, %arg4: memref<32x32xf32, #tpu.memory_space<vmem>>, %arg5: memref<1x32xf32, #tpu.memory_space<vmem>>, %arg6: memref<1x32xf32, #tpu.memory_space<vmem>>, %arg7: memref<1x32xf32, #tpu.memory_space<vmem>>, %arg8: memref<2x8x32xf32, #tpu.memory_space<vmem>>) attributes {dimension_semantics = [#tpu.dimension_semantics<parallel>], iteration_bounds = array<i64: 1>, scalar_prefetch = 0 : i64, scratch_operands = 0 : i64, tpu.core_type = #tpu.core_type<tc>, window_params = [{transform_indices = @transform_0, window_bounds = array<i64: 2, 8, 32>}, {pipeline_mode = #tpu.pipeline_mode<synchronous>, transform_indices = @transform_1, window_bounds = array<i64: 32, 96>}, {pipeline_mode = #tpu.pipeline_mode<synchronous>, transform_indices = @transform_2, window_bounds = array<i64: 1, 96>}, {pipeline_mode = #tpu.pipeline_mode<synchronous>, transform_indices = @transform_3, window_bounds = array<i64: 32, 32>}, {pipeline_mode = #tpu.pipeline_mode<synchronous>, transform_indices = @transform_4, window_bounds = array<i64: 1, 32>}, {pipeline_mode = #tpu.pipeline_mode<synchronous>, transform_indices = @transform_5, window_bounds = array<i64: 1, 32>}, {pipeline_mode = #tpu.pipeline_mode<synchronous>, transform_indices = @transform_6, window_bounds = array<i64: 1, 32>}, {transform_indices = @transform_7, window_bounds = array<i64: 2, 8, 32>}]} {
    %c0 = arith.constant 0 : index
    %c0_0 = arith.constant 0 : index
    %c0_1 = arith.constant 0 : index
    %0 = vector.load %arg1[%c0, %c0_0, %c0_1] : memref<2x8x32xf32, #tpu.memory_space<vmem>>, vector<2x8x32xf32>
    %cst = arith.constant dense<0.000000e+00> : vector<2x8xf32>
    %1 = vector.multi_reduction <add>, %0, %cst [2] : vector<2x8x32xf32> to vector<2x8xf32>
    %2 = vector.shape_cast %1 : vector<2x8xf32> to vector<2x8x1xf32>
    %cst_2 = arith.constant 3.200000e+01 : f32
    %3 = vector.broadcast %cst_2 : f32 to vector<2x8x1xf32>
    %4 = arith.divf %2, %3 : vector<2x8x1xf32>
    %5 = vector.broadcast %4 : vector<2x8x1xf32> to vector<2x8x32xf32>
    %6 = arith.subf %0, %5 : vector<2x8x32xf32>
    %7 = arith.mulf %6, %6 : vector<2x8x32xf32>
    %cst_3 = arith.constant dense<0.000000e+00> : vector<2x8xf32>
    %8 = vector.multi_reduction <add>, %7, %cst_3 [2] : vector<2x8x32xf32> to vector<2x8xf32>
    %9 = vector.shape_cast %8 : vector<2x8xf32> to vector<2x8x1xf32>
    %cst_4 = arith.constant 3.200000e+01 : f32
    %10 = vector.broadcast %cst_4 : f32 to vector<2x8x1xf32>
    %11 = arith.divf %9, %10 : vector<2x8x1xf32>
    %cst_5 = arith.constant 9.99999997E-7 : f32
    %12 = vector.broadcast %cst_5 : f32 to vector<2x8x1xf32>
    %13 = arith.addf %11, %12 : vector<2x8x1xf32>
    %14 = math.rsqrt %13 : vector<2x8x1xf32>
    %15 = vector.broadcast %14 : vector<2x8x1xf32> to vector<2x8x32xf32>
    %16 = arith.mulf %6, %15 : vector<2x8x32xf32>
    %c0_6 = arith.constant 0 : index
    %c0_7 = arith.constant 0 : index
    %17 = vector.load %arg6[%c0_6, %c0_7] : memref<1x32xf32, #tpu.memory_space<vmem>>, vector<1x32xf32>
    %18 = vector.shape_cast %17 : vector<1x32xf32> to vector<32xf32>
    %19 = vector.shape_cast %18 : vector<32xf32> to vector<1x1x32xf32>
    %20 = vector.broadcast %19 : vector<1x1x32xf32> to vector<2x8x32xf32>
    %21 = arith.mulf %16, %20 : vector<2x8x32xf32>
    %c0_8 = arith.constant 0 : index
    %c0_9 = arith.constant 0 : index
    %22 = vector.load %arg7[%c0_8, %c0_9] : memref<1x32xf32, #tpu.memory_space<vmem>>, vector<1x32xf32>
    %23 = vector.shape_cast %22 : vector<1x32xf32> to vector<32xf32>
    %24 = vector.shape_cast %23 : vector<32xf32> to vector<1x1x32xf32>
    %25 = vector.broadcast %24 : vector<1x1x32xf32> to vector<2x8x32xf32>
    %26 = arith.addf %21, %25 : vector<2x8x32xf32>
    %27 = vector.shape_cast %26 : vector<2x8x32xf32> to vector<16x32xf32>
    %c0_10 = arith.constant 0 : index
    %c0_11 = arith.constant 0 : index
    %28 = vector.load %arg2[%c0_10, %c0_11] : memref<32x96xf32, #tpu.memory_space<vmem>>, vector<32x96xf32>
    %cst_12 = arith.constant dense<0.000000e+00> : vector<16x96xf32>
    %29 = tpu.matmul %27, %28, %cst_12 {dimension_numbers = #tpu.dot_dimension_numbers<[1], [0], [0], [1], [0, 0, 1, 1], [], []>} : vector<16x32xf32>, vector<32x96xf32>, vector<16x96xf32> -> vector<16x96xf32>
    %c0_13 = arith.constant 0 : index
    %c0_14 = arith.constant 0 : index
    %30 = vector.load %arg3[%c0_13, %c0_14] : memref<1x96xf32, #tpu.memory_space<vmem>>, vector<1x96xf32>
    %31 = vector.shape_cast %30 : vector<1x96xf32> to vector<96xf32>
    %32 = vector.shape_cast %31 : vector<96xf32> to vector<1x96xf32>
    %33 = vector.broadcast %32 : vector<1x96xf32> to vector<16x96xf32>
    %34 = arith.addf %29, %33 : vector<16x96xf32>
    %35 = vector.extract_strided_slice %34 {offsets = [0, 0], sizes = [16, 32], strides = [1, 1]} : vector<16x96xf32> to vector<16x32xf32>
    %36 = vector.shape_cast %35 : vector<16x32xf32> to vector<2x8x4x8xf32>
    %37 = tpu.transpose %36, [1, 2, 0, 3] : vector<2x8x4x8xf32> -> vector<8x4x2x8xf32>
    %38 = vector.shape_cast %37 : vector<8x4x2x8xf32> to vector<32x2x8xf32>
    %39 = vector.extract_strided_slice %34 {offsets = [0, 32], sizes = [16, 32], strides = [1, 1]} : vector<16x96xf32> to vector<16x32xf32>
    %40 = vector.shape_cast %39 : vector<16x32xf32> to vector<2x8x4x8xf32>
    %41 = tpu.transpose %40, [1, 2, 0, 3] : vector<2x8x4x8xf32> -> vector<8x4x2x8xf32>
    %42 = vector.shape_cast %41 : vector<8x4x2x8xf32> to vector<32x2x8xf32>
    %43 = vector.extract_strided_slice %34 {offsets = [0, 64], sizes = [16, 32], strides = [1, 1]} : vector<16x96xf32> to vector<16x32xf32>
    %44 = vector.shape_cast %43 : vector<16x32xf32> to vector<2x8x4x8xf32>
    %45 = tpu.transpose %44, [1, 2, 0, 3] : vector<2x8x4x8xf32> -> vector<8x4x2x8xf32>
    %46 = vector.shape_cast %45 : vector<8x4x2x8xf32> to vector<32x2x8xf32>
    %cst_15 = arith.constant dense<0.000000e+00> : vector<32x2x2xf32>
    %47 = tpu.matmul %38, %42, %cst_15 {dimension_numbers = #tpu.dot_dimension_numbers<[2], [2], [1], [1], [0, 0, 0, 1, 1, 1], [0], [0]>} : vector<32x2x8xf32>, vector<32x2x8xf32>, vector<32x2x2xf32> -> vector<32x2x2xf32>
    %cst_16 = arith.constant dense<0xFF800000> : vector<32x2xf32>
    %48 = vector.multi_reduction <maximumf>, %47, %cst_16 [2] : vector<32x2x2xf32> to vector<32x2xf32>
    %49 = vector.shape_cast %48 : vector<32x2xf32> to vector<32x2x1xf32>
    %50 = vector.broadcast %49 : vector<32x2x1xf32> to vector<32x2x2xf32>
    %51 = arith.subf %47, %50 : vector<32x2x2xf32>
    %52 = math.exp %51 : vector<32x2x2xf32>
    %cst_17 = arith.constant dense<0.000000e+00> : vector<32x2xf32>
    %53 = vector.multi_reduction <add>, %52, %cst_17 [2] : vector<32x2x2xf32> to vector<32x2xf32>
    %54 = vector.shape_cast %53 : vector<32x2xf32> to vector<32x2x1xf32>
    %55 = tpu.reciprocal %54 {approx = true} : vector<32x2x1xf32> -> vector<32x2x1xf32>
    %56 = vector.broadcast %55 : vector<32x2x1xf32> to vector<32x2x2xf32>
    %57 = arith.mulf %52, %56 : vector<32x2x2xf32>
    %cst_18 = arith.constant dense<0.000000e+00> : vector<32x2x8xf32>
    %58 = tpu.matmul %57, %46, %cst_18 {dimension_numbers = #tpu.dot_dimension_numbers<[2], [1], [1], [2], [0, 0, 0, 1, 1, 2], [0], [0]>} : vector<32x2x2xf32>, vector<32x2x8xf32>, vector<32x2x8xf32> -> vector<32x2x8xf32>
    %59 = vector.shape_cast %58 : vector<32x2x8xf32> to vector<8x4x2x8xf32>
    %60 = tpu.transpose %59, [2, 0, 1, 3] : vector<8x4x2x8xf32> -> vector<2x8x4x8xf32>
    %61 = vector.shape_cast %60 : vector<2x8x4x8xf32> to vector<16x32xf32>
    %c0_19 = arith.constant 0 : index
    %c0_20 = arith.constant 0 : index
    %62 = vector.load %arg4[%c0_19, %c0_20] : memref<32x32xf32, #tpu.memory_space<vmem>>, vector<32x32xf32>
    %cst_21 = arith.constant dense<0.000000e+00> : vector<16x32xf32>
    %63 = tpu.matmul %61, %62, %cst_21 {dimension_numbers = #tpu.dot_dimension_numbers<[1], [0], [0], [1], [0, 0, 1, 1], [], []>} : vector<16x32xf32>, vector<32x32xf32>, vector<16x32xf32> -> vector<16x32xf32>
    %c0_22 = arith.constant 0 : index
    %c0_23 = arith.constant 0 : index
    %64 = vector.load %arg5[%c0_22, %c0_23] : memref<1x32xf32, #tpu.memory_space<vmem>>, vector<1x32xf32>
    %65 = vector.shape_cast %64 : vector<1x32xf32> to vector<32xf32>
    %66 = vector.shape_cast %65 : vector<32xf32> to vector<1x32xf32>
    %67 = vector.broadcast %66 : vector<1x32xf32> to vector<16x32xf32>
    %68 = arith.addf %63, %67 : vector<16x32xf32>
    %69 = vector.shape_cast %68 : vector<16x32xf32> to vector<2x8x32xf32>
    %70 = arith.addf %69, %0 : vector<2x8x32xf32>
    %c0_24 = arith.constant 0 : index
    %c0_25 = arith.constant 0 : index
    %c0_26 = arith.constant 0 : index
    %71 = vector.load %arg8[%c0_24, %c0_25, %c0_26] : memref<2x8x32xf32, #tpu.memory_space<vmem>>, vector<2x8x32xf32>
    tpu.vector_store %arg8[%c0_24, %c0_25, %c0_26], %70 {strides = array<i32>} : memref<2x8x32xf32, #tpu.memory_space<vmem>>, vector<2x8x32xf32>,
    return
  }
  func.func @transform_0(%arg0: i32) -> (i32, i32, i32) {
    %c0_i32 = arith.constant 0 : i32
    %c0_i32_0 = arith.constant 0 : i32
    %c0_i32_1 = arith.constant 0 : i32
    return %c0_i32, %arg0, %c0_i32_0 : i32, i32, i32
  }
  func.func @transform_1(%arg0: i32) -> (i32, i32) {
    %c0_i32 = arith.constant 0 : i32
    %c0_i32_0 = arith.constant 0 : i32
    %c0_i32_1 = arith.constant 0 : i32
    return %c0_i32, %c0_i32_0 : i32, i32
  }
  func.func @transform_2(%arg0: i32) -> (i32, i32) {
    %c0_i32 = arith.constant 0 : i32
    %c0_i32_0 = arith.constant 0 : i32
    %c0_i32_1 = arith.constant 0 : i32
    return %c0_i32, %c0_i32_0 : i32, i32
  }
  func.func @transform_3(%arg0: i32) -> (i32, i32) {
    %c0_i32 = arith.constant 0 : i32
    %c0_i32_0 = arith.constant 0 : i32
    %c0_i32_1 = arith.constant 0 : i32
    return %c0_i32, %c0_i32_0 : i32, i32
  }
  func.func @transform_4(%arg0: i32) -> (i32, i32) {
    %c0_i32 = arith.constant 0 : i32
    %c0_i32_0 = arith.constant 0 : i32
    %c0_i32_1 = arith.constant 0 : i32
    return %c0_i32, %c0_i32_0 : i32, i32
  }
  func.func @transform_5(%arg0: i32) -> (i32, i32) {
    %c0_i32 = arith.constant 0 : i32
    %c0_i32_0 = arith.constant 0 : i32
    %c0_i32_1 = arith.constant 0 : i32
    return %c0_i32, %c0_i32_0 : i32, i32
  }
  func.func @transform_6(%arg0: i32) -> (i32, i32) {
    %c0_i32 = arith.constant 0 : i32
    %c0_i32_0 = arith.constant 0 : i32
    %c0_i32_1 = arith.constant 0 : i32
    return %c0_i32, %c0_i32_0 : i32, i32
  }
  func.func @transform_7(%arg0: i32) -> (i32, i32, i32) {
    %c0_i32 = arith.constant 0 : i32
    %c0_i32_0 = arith.constant 0 : i32
    %c0_i32_1 = arith.constant 0 : i32
    return %c0_i32, %arg0, %c0_i32_0 : i32, i32, i32
  }
}

</mosaic_0001>

<bundles_post_ra>
// kernel: tpu_custom_call.1
= control target key start
LH: loop header
LB: loop body
LE: loop exit
PB: predicated region body
PF: predicated region fallthrough
CT: control target
= control target key end

     0   :  { %12 = vsyncpa [#allocation3], 0  ;;  %s5246_s0 = inlined_call_operand.hbm [shape: f32[2,8,32], index: 0, kind: input, shape index: {}]   ;;  %s5247_s1 = inlined_call_operand.hbm [shape: f32[32,96], index: 1, kind: input, shape index: {}]   ;;  %s5248_s2 = inlined_call_operand.vmem [shape: f32[1,96], index: 2, kind: input, shape index: {}]   ;;  %s5249_s3 = inlined_call_operand.hbm [shape: f32[32,32], index: 3, kind: input, shape index: {}]   ;;  %s5250_s4 = inlined_call_operand.vmem [shape: f32[1,32], index: 4, kind: input, shape index: {}]   ;;  %s5251_s5 = inlined_call_operand.vmem [shape: f32[1,32], index: 5, kind: input, shape index: {}]   ;;  %s5252_s6 = inlined_call_operand.vmem [shape: f32[1,32], index: 6, kind: input, shape index: {}]   ;;  %s5253_s7 = inlined_call_operand.hbm [shape: f32[2,8,32], index: 7, kind: output, shape index: {}]  }
   0x1   :  { %13 = vsyncpa [#allocation6], 0 }
   0x2   :  { %14 = vsyncpa [#allocation4], 0  ;;  %s32_s26 = sshll.u32 %s5247_s1, 4  ;;  %s3929_s27 = smov [#allocation5]   ;;  %s33_s26 = int_to_ptr.hbm [resolvable:$true] %s32_s26 }
   0x3   :  { %s34_s28 = sshll.u32 %s3929_s27, 4  ;;  %s19_s8 = sshll.u32 %s5246_s0, 4  ;;  %s35_s28 = int_to_ptr.vmem [resolvable:$true] %s34_s28  ;;  %s20_s8 = int_to_ptr.hbm [resolvable:$true] %s19_s8 }
   0x4   :  { %s3930_s9 = smov 128   ;;  %s3931_s10 = smov 8  }
   0x5   :  { %40 = dma.hbm_to_vmem [thread:$0]  %s33_s26, 512, %s35_s28, [#allocation6], %s3930_s9, %s3930_s9, %s3931_s10  }
   0x6   :  { %s3932_s11 = smov [#allocation2]   ;;  %s47_s1 = sshll.u32 %s5249_s3, 4  ;;  %s48_s1 = int_to_ptr.hbm [resolvable:$true] %s47_s1 }
   0x7   :  { %s21_s12 = sshll.u32 %s3932_s11, 4  ;;  %s3933_s0 = smov [#allocation7]   ;;  %s22_s12 = int_to_ptr.vmem [resolvable:$true] %s21_s12 }
   0x8   :  { %27 = dma.hbm_to_vmem [thread:$0]  %s20_s8, 256, %s22_s12, [#allocation3], %s3930_s9, %s3930_s9, %s3931_s10  }
   0x9   :  { %s49_s15 = sshll.u32 %s3933_s0, 4  ;;  %s50_s15 = int_to_ptr.vmem [resolvable:$true] %s49_s15 }
   0xa   :  { %55 = dma.hbm_to_vmem [thread:$0]  %s48_s1, 512, %s50_s15, [#allocation6], %s3930_s9, %s3930_s9, %s3931_s10  }
   0xb   :  { %3923 = dma.done.wait [#allocation3], 256  }
   0xc   :  { %3924 = vsyncadd [#allocation3], 4294967040 }
   0xd   :  { %3925 = dma.done.wait [#allocation6], 1024  }
   0xe   :  { %3926 = vsyncadd [#allocation6], 4294966272  ;;  %vm76_vm0 = vcmask 261120   ;;  %v74_v0 = vld [vmem:[#allocation2] sm:$0xff]  ;;  %v75_v2 = vld [vmem:[#allocation2 + $0x8] sm:$0xff]  ;;  %v3934_v4 = vmov 32.0  }
   0xf   :  { %v77_v1 = vsel %vm76_vm0, %v74_v0, 0.0  ;;  %v80_v3 = vsel %vm76_vm0, %v75_v2, 0.0  ;;  %3691 = vrcp.f32 %v3934_v4  ;;  %v143_v21 = vld [vmem:[#allocation5 + $0x18] sm:$0xff]  ;;  %v142_v22 = vld [vmem:[#allocation5 + $0x10] sm:$0xff]  ;;  %v141_v23 = vld [vmem:[#allocation5 + $0x8] sm:$0xff]  ;;  %s3936_s20 = smov 112  }
  0x10   :  { %78 = vadd.xlane.f32.xlu0 %v77_v1  ;;  %166 = vmatpush.msra.mxu0 %v143_v21  ;;  %v140_v24 = vld [vmem:[#allocation5] sm:$0xff]  ;;  %v3687_v39 = vld [vmem:[%s5251_s5] ss:$0 sm:$0xff]  ;;  %s3937_s21 = smov 96   ;;  %s3938_s22 = smov 120   ;;  %vm198_vm8 = vcmask 1047556  }
  0x11   :  { %v3688_v43 = vld [vmem:[%s5252_s6] ss:$0 sm:$0xff]  ;;  %s3935_s6 = smov 104   ;;  %vm1158_vm9 = vcmask 64512   ;;  %vm2348_vm10 = vcmask 1041408   ;;  %vm1991_vm11 = vcmask 9216  }
  0x12   :  { %167 = vmatpush.msra.mxu0 %v142_v22  ;;  %v3689_v53 = vld [vmem:[%s5248_s2] ss:$0 sm:$0xff]  ;;  %s3941_s2 = smov 64   ;;  %vm2344_vm12 = vcmask 15360   ;;  %s3942_s23 = smov 24   ;;  %vm3472_vm13 = vcmask 130048  }
  0x13   :  { %s3943_s24 = smov 16   ;;  %vm3475_vm14 = vcmask 195584   ;;  %s3944_s27 = smov [#allocation8]  }
  0x14   :  { %168 = vmatpush.msra.mxu0 %v141_v23  ;;  %s3523_s28 = sshll.u32 %s3944_s27, 4  ;;  %s3525_s8 = sshll.u32 %s5253_s7, 4  ;;  %s3524_s28 = int_to_ptr.vmem [resolvable:$true] %s3523_s28  ;;  %s3526_s8 = int_to_ptr.hbm [resolvable:$true] %s3525_s8 }
  0x15   :  { %v3692_v5 = vpop.eup %3691 }
  0x16   :  { %v84_v6 = vmul.f32 32.0, %v3692_v5  ;;  %vm88_vm1 = vweird.f32 %v3692_v5  ;;  %169 = vmatpush.msra.mxu0 %v140_v24 }
  0x18   :  { %81 = vadd.xlane.f32.xlu0 %v80_v3  ;;  %v85_v7 = vsub.f32 1.0, %v84_v6 }
  0x1a   :  { %v86_v8 = vmul.f32 %v3692_v5, %v85_v7 }
  0x1c   :  { %v87_v9 = vadd.f32 %v3692_v5, %v86_v8 }
  0x1e   :  { %v89_v10 = vsel %vm88_vm1, %v3692_v5, %v87_v9  ;;  %v3940_v9 = vmov 1934713408  }
  0x83   :  { %v79_v11 = vpop.xlane.xlu0 %78 }
  0x84   :  { %v90_v12 = vmul.f32 %v89_v10, %v79_v11 }
  0x86   :  { %v92_v13 = vsub.f32 %v74_v0, %v90_v12  ;;  %v3939_v0 = vmov 1983009808  }
  0x87   :  { %v203_v1 = vunpack.c.l.s4 %v3939_v0 }
  0x88   :  { %v94_v14 = vmul.f32 %v92_v13, %v92_v13 }
  0x89   :  { %v4050_v5 = vunpack.c.0.s8 %v203_v1 }
  0x8a   :  { %v96_v15 = vsel %vm76_vm0, %v94_v14, 0.0 }
  0x8b   :  { %97 = vadd.xlane.f32.xlu1 %v96_v15  ;;  %v82_v16 = vpop.xlane.xlu0 %81 }
  0x8c   :  { %v91_v17 = vmul.f32 %v89_v10, %v82_v16 }
  0x8e   :  { %v93_v18 = vsub.f32 %v75_v2, %v91_v17 }
  0x90   :  { %v95_v19 = vmul.f32 %v93_v18, %v93_v18 }
  0x92   :  { %v99_v20 = vsel %vm76_vm0, %v95_v19, 0.0 }
  0x93   :  { %100 = vadd.xlane.f32.xlu1 %v99_v20 }
  0xfe   :  { %v98_v25 = vpop.xlane.xlu1 %97 }
  0xff   :  { %v102_v26 = vmul.f32 %v98_v25, %v89_v10 }
 0x101   :  { %v104_v27 = vadd.f32 1e-06, %v102_v26 }
 0x103   :  { %3693 = vrsqrt.f32 %v104_v27  ;;  %vm112_vm3 = vweird.f32 %v104_v27 }
 0x106   :  { %v101_v28 = vpop.xlane.xlu1 %100 }
 0x107   :  { %v103_v29 = vmul.f32 %v101_v28, %v89_v10  ;;  %v227_v10 = vunpack.c.l.s4 %v3940_v9 }
 0x109   :  { %v3694_v30 = vpop.eup %3693  ;;  %v105_v31 = vadd.f32 1e-06, %v103_v29  ;;  %v4073_v23 = vunpack.c.0.s8 %v227_v10 }
 0x10a   :  { %v107_v32 = vmul.f32 %v3694_v30, %v104_v27  ;;  %vm113_vm2 = vweird.f32 %v3694_v30 }
 0x10b   :  { %3695 = vrsqrt.f32 %v105_v31  ;;  %vm114_vm4 = vmor %vm112_vm3, %vm113_vm2  ;;  %vm122_vm6 = vweird.f32 %v105_v31 }
 0x10c   :  { %v108_v33 = vmul.f32 %v3694_v30, %v107_v32 }
 0x10e   :  { %v109_v34 = vmul.f32 0.5, %v108_v33 }
 0x110   :  { %v110_v35 = vsub.f32 1.5, %v109_v34 }
 0x111   :  { %v3696_v36 = vpop.eup %3695 }
 0x112   :  { %v111_v37 = vmul.f32 %v3694_v30, %v110_v35  ;;  %v117_v38 = vmul.f32 %v3696_v36, %v105_v31  ;;  %vm123_vm5 = vweird.f32 %v3696_v36 }
 0x113   :  { %vm124_vm7 = vmor %vm122_vm6, %vm123_vm5 }
 0x114   :  { %v115_v40 = vsel %vm114_vm4, %v3694_v30, %v111_v37  ;;  %v118_v41 = vmul.f32 %v3696_v36, %v117_v38 }
 0x115   :  { %v126_v42 = vmul.f32 %v115_v40, %v92_v13 }
 0x116   :  { %v119_v44 = vmul.f32 0.5, %v118_v41 }
 0x117   :  { %v132_v45 = vmul.f32 %v3687_v39, %v126_v42 }
 0x118   :  { %v120_v46 = vsub.f32 1.5, %v119_v44 }
 0x119   :  { %v138_v47 = vadd.f32 %v3688_v43, %v132_v45 }
 0x11a   :  { %v121_v48 = vmul.f32 %v3696_v36, %v120_v46 }
 0x11b   :  { %3539 = vmatmul.msk.f32.vlgmr.msra.gmra.mxu0 %vm76_vm0, %v138_v47 }
 0x11c   :  { %v125_v49 = vsel %vm124_vm7, %v3696_v36, %v121_v48 }
 0x11d   :  { %v127_v50 = vmul.f32 %v125_v49, %v93_v18 }
 0x11f   :  { %v133_v51 = vmul.f32 %v3687_v39, %v127_v50 }
 0x121   :  { %v139_v52 = vadd.f32 %v3688_v43, %v133_v51 }
 0x123   :  { %3540 = vmatmul.msk.f32.gmra.mxu0 %vm76_vm0, %v139_v52 }
 0x198   :  { %v171_v54 = vpop.f32.mrf.mxu0 }
 0x199   :  { %v4018_v55 = vadd.f32 %v3689_v53, %v171_v54 }
 0x19b   :  { %191 = vrot.lane.b32.xlu1 %v4018_v55, %s3935_s6  ;;  %v200_v12 = vrot.slane %v4018_v55, 4 }
 0x1a0   :  { %v174_v56 = vpop.f32.mrf.mxu0 }
 0x1a1   :  { %v4021_v57 = vadd.f32 %v3689_v53, %v174_v56 }
 0x1a3   :  { %187 = vrot.lane.b32.xlu0 %v4021_v57, %s3936_s20  ;;  %193 = vrot.lane.b32.xlu2 %v4021_v57, %s3935_s6  ;;  %v248_v11 = vrot.slane %v4021_v57, 4 }
 0x1ab   :  { %504 = vrot.lane.b32.xlu0 %v4021_v57, %s3937_s21  ;;  %181 = vrot.lane.b32.xlu2 %v4021_v57, %s3938_s22 }
 0x1b3   :  { %179 = vrot.lane.b32.xlu2 %v4018_v55, %s3938_s22 }
 0x1bb   :  { %185 = vrot.lane.b32.xlu2 %v4018_v55, %s3936_s20 }
 0x1fd   :  { %v4030_v58 = vpop.permute.xlu2 %193 }
 0x1fe   :  { %516 = vrot.lane.b32.xlu2 %v4030_v58, %s3937_s21  ;;  %v258_v59 = vrot.slane %v4030_v58, 4 }
 0x205   :  { %v4035_v60 = vpop.permute.xlu2 %181 }
 0x206   :  { %v259_v61 = vsel %vm198_vm8, %v258_v59, %v4035_v60  ;;  %v260_v62 = vrot.slane %v4035_v60, 4  ;;  %508 = vrot.lane.b32.xlu0 %v4035_v60, %s3937_s21 }
 0x207   :  { %v265_v31 = vperm.slane %v259_v61, %v4050_v5 }
 0x208   :  { %v261_v63 = vsel %vm198_vm8, %v4030_v58, %v260_v62 }
 0x209   :  { %v269_v7 = vperm.slane %v261_v63, %v4050_v5  ;;  %v270_v41 = vrot.slane %v265_v31, 4 }
 0x20b   :  { %v282_v20 = vrot.slane %v269_v7, 4 }
 0x20d   :  { %v180_v2 = vpop.permute.xlu2 %179  ;;  %v4044_v3 = vpop.permute.xlu1 %191 }
 0x20e   :  { %v212_v4 = vrot.slane %v180_v2, 4  ;;  %502 = vrot.lane.b32.xlu0 %v4018_v55, %s3937_s21  ;;  %514 = vrot.lane.b32.xlu1 %v4044_v3, %s3937_s21  ;;  %v210_v8 = vrot.slane %v4044_v3, 4 }
 0x210   :  { %v213_v6 = vsel %vm198_vm8, %v4044_v3, %v212_v4  ;;  %v211_v21 = vsel %vm198_vm8, %v210_v8, %v180_v2 }
 0x211   :  { %v4059_v13 = vperm.slane %v213_v6, %v4050_v5  ;;  %v217_v32 = vperm.slane %v211_v21, %v4050_v5 }
 0x213   :  { %v234_v33 = vrot.slane %v4059_v13, 4  ;;  %v222_v42 = vrot.slane %v217_v32, 4 }
 0x215   :  { %v4061_v14 = vpop.permute.xlu0 %187  ;;  %v186_v15 = vpop.permute.xlu2 %185 }
 0x216   :  { %v246_v16 = vrot.slane %v4061_v14, 4  ;;  %v249_v17 = vsel %vm198_vm8, %v4061_v14, %v248_v11  ;;  %v197_v18 = vrot.slane %v186_v15, 4  ;;  %v201_v19 = vsel %vm198_vm8, %v186_v15, %v200_v12  ;;  %512 = vrot.lane.b32.xlu2 %v4061_v14, %s3937_s21  ;;  %838 = vrot.lane.b32.xlu0 %v186_v15, %s3941_s2 }
 0x217   :  { %v257_v22 = vperm.slane %v249_v17, %v4050_v5  ;;  %510 = vrot.lane.b32.xlu1 %v186_v15, %s3937_s21  ;;  %v209_v26 = vperm.slane %v201_v19, %v4050_v5 }
 0x218   :  { %v247_v24 = vsel %vm198_vm8, %v246_v16, %v4021_v57  ;;  %v199_v25 = vsel %vm198_vm8, %v197_v18, %v4018_v55 }
 0x219   :  { %v253_v27 = vperm.slane %v247_v24, %v4050_v5  ;;  %v283_v28 = vsel %vm198_vm8, %v282_v20, %v257_v22  ;;  %v284_v29 = vrot.slane %v257_v22, 4  ;;  %v205_v30 = vperm.slane %v199_v25, %v4050_v5 }
 0x21a   :  { %v235_v37 = vsel %vm198_vm8, %v234_v33, %v209_v26  ;;  %v289_v39 = vperm.slane %v283_v28, %v4073_v23  ;;  %v236_v44 = vrot.slane %v209_v26, 4 }
 0x21b   :  { %v272_v34 = vrot.slane %v253_v27, 4  ;;  %v285_v35 = vsel %vm198_vm8, %v269_v7, %v284_v29  ;;  %v224_v36 = vrot.slane %v205_v30, 4  ;;  %v241_v45 = vperm.slane %v235_v37, %v4073_v23 }
 0x21c   :  { %v223_v46 = vsel %vm198_vm8, %v222_v42, %v205_v30  ;;  %v271_v47 = vsel %vm198_vm8, %v270_v41, %v253_v27  ;;  %v405_v50 = vperm.slane %v289_v39, %v4050_v5  ;;  %v428_v54 = vrot.slane %v289_v39, 4 }
 0x21d   :  { %v273_v38 = vsel %vm198_vm8, %v265_v31, %v272_v34  ;;  %v225_v40 = vsel %vm198_vm8, %v217_v32, %v224_v36  ;;  %v229_v51 = vperm.slane %v223_v46, %v4073_v23  ;;  %v277_v52 = vperm.slane %v271_v47, %v4073_v23 }
 0x21e   :  { %v281_v43 = vperm.slane %v273_v38, %v4073_v23  ;;  %506 = vrot.lane.b32.xlu2 %v180_v2, %s3937_s21  ;;  %v233_v48 = vperm.slane %v225_v40, %v4073_v23  ;;  %v422_v12 = vrot.slane %v241_v45, 4  ;;  %v406_v24 = vrot.slane %v405_v50, 4 }
 0x21f   :  { %834 = vrot.lane.b32.xlu1 %v180_v2, %s3941_s2  ;;  %v297_v62 = vperm.slane %v229_v51, %v4050_v5  ;;  %v301_v63 = vperm.slane %v277_v52, %v4050_v5  ;;  %v318_v0 = vrot.slane %v229_v51, 4  ;;  %v324_v1 = vrot.slane %v277_v52, 4 }
 0x220   :  { %v353_v49 = vperm.slane %v281_v43, %v4050_v5  ;;  %v376_v53 = vrot.slane %v281_v43, 4  ;;  %v349_v56 = vperm.slane %v233_v48, %v4050_v5  ;;  %v370_v61 = vrot.slane %v233_v48, 4 }
 0x221   :  { %v302_v8 = vrot.slane %v301_v63, 4  ;;  %v304_v9 = vrot.slane %v297_v62, 4  ;;  %v319_v10 = vsel %vm198_vm8, 0.0, %v318_v0  ;;  %v325_v11 = vsel %vm198_vm8, 0.0, %v324_v1 }
 0x222   :  { %v354_v59 = vrot.slane %v353_v49, 4  ;;  %v356_v4 = vrot.slane %v349_v56, 4  ;;  %v371_v6 = vsel %vm198_vm8, 0.0, %v370_v61  ;;  %v377_v7 = vsel %vm198_vm8, 0.0, %v376_v53 }
 0x223   :  { %v323_v15 = vperm.slane %v319_v10, %v4050_v5  ;;  %v329_v16 = vperm.slane %v325_v11, %v4050_v5  ;;  %v375_v17 = vperm.slane %v371_v6, %v4050_v5  ;;  %v303_v18 = vsel %vm198_vm8, %v302_v8, %v297_v62 }
 0x224   :  { %v4106_v2 = vsel %vm198_vm8, %v354_v59, %v349_v56  ;;  %v4121_v19 = vsel %vm198_vm8, %v301_v63, %v304_v9  ;;  %v381_v20 = vperm.slane %v377_v7, %v4050_v5  ;;  %v4125_v21 = vsel %vm198_vm8, %v353_v49, %v356_v4  ;;  %v505_v63 = vpop.permute.xlu0 %504 }
 0x225   :  { %v332_v22 = vrot.slane %v323_v15, 4  ;;  %v293_v25 = vperm.slane %v285_v35, %v4073_v23  ;;  %v237_v26 = vsel %vm198_vm8, %v4059_v13, %v236_v44  ;;  %v384_v30 = vrot.slane %v375_v17, 4 }
 0x226   :  { %842 = vrot.lane.b32.xlu2 %v4044_v3, %s3941_s2  ;;  %v330_v3 = vrot.slane %v329_v16, 4  ;;  %v382_v27 = vrot.slane %v381_v20, 4  ;;  %v429_v31 = vsel %vm198_vm8, 0.0, %v428_v54  ;;  %v423_v33 = vsel %vm198_vm8, 0.0, %v422_v12 }
 0x227   :  { %830 = vrot.lane.b32.xlu1 %v4018_v55, %s3941_s2  ;;  %v401_v55 = vperm.slane %v241_v45, %v4050_v5  ;;  %v333_v29 = vsel %vm198_vm8, %v329_v16, %v332_v22  ;;  %v245_v34 = vperm.slane %v237_v26, %v4073_v23  ;;  %v457_v13 = vperm.slane %v293_v25, %v4050_v5 }
 0x228   :  { %v331_v28 = vsel %vm198_vm8, %v330_v3, %v323_v15  ;;  %v383_v32 = vsel %vm198_vm8, %v382_v27, %v375_v17  ;;  %v385_v37 = vsel %vm198_vm8, %v381_v20, %v384_v30  ;;  %v427_v38 = vperm.slane %v423_v33, %v4050_v5 }
 0x229   :  { %v407_v35 = vsel %vm198_vm8, %v406_v24, %v401_v55  ;;  %v408_v36 = vrot.slane %v401_v55, 4  ;;  %v433_v39 = vperm.slane %v429_v31, %v4050_v5  ;;  %v474_v40 = vrot.slane %v245_v34, 4 }
 0x22a   :  { %v436_v42 = vrot.slane %v427_v38, 4  ;;  %v480_v43 = vrot.slane %v293_v25, 4  ;;  %v453_v45 = vperm.slane %v245_v34, %v4050_v5  ;;  %v458_v46 = vrot.slane %v457_v13, 4 }
 0x22b   :  { %v434_v41 = vrot.slane %v433_v39, 4  ;;  %v4147_v44 = vsel %vm198_vm8, %v405_v50, %v408_v36  ;;  %v475_v49 = vsel %vm198_vm8, 0.0, %v474_v40  ;;  %v4182_v9 = vperm.slane %v4106_v2, %v4073_v23 }
 0x22c   :  { %v4154_v47 = vsel %vm198_vm8, %v433_v39, %v436_v42  ;;  %v4157_v48 = vsel %vm198_vm8, %v458_v46, %v453_v45  ;;  %v479_v51 = vperm.slane %v475_v49, %v4050_v5  ;;  %v481_v50 = vsel %vm198_vm8, 0.0, %v480_v43 }
 0x22d   :  { %v485_v52 = vperm.slane %v481_v50, %v4050_v5  ;;  %v4187_v12 = vperm.slane %v303_v18, %v4073_v23  ;;  %v576_v15 = vrot.slane %v505_v63, 4  ;;  %v4193_v17 = vperm.slane %v4121_v19, %v4073_v23 }
 0x22e   :  { %832 = vrot.lane.b32.xlu2 %v4021_v57, %s3941_s2  ;;  %v4151_v57 = vsel %vm198_vm8, %v434_v41, %v427_v38  ;;  %v488_v54 = vrot.slane %v479_v51, 4  ;;  %v366_v20 = vrot.slane %v4182_v9, 4  ;;  %v4197_v24 = vperm.slane %v331_v28, %v4073_v23 }
 0x22f   :  { %840 = vrot.lane.b32.xlu1 %v4061_v14, %s3941_s2  ;;  %v460_v14 = vrot.slane %v453_v45, 4  ;;  %v486_v56 = vrot.slane %v485_v52, 4  ;;  %v4201_v25 = vperm.slane %v4125_v21, %v4073_v23  ;;  %v314_v55 = vrot.slane %v4187_v12, 4 }
 0x230   :  { %v4169_v59 = vsel %vm198_vm8, %v485_v52, %v488_v54  ;;  %v4207_v19 = vperm.slane %v333_v29, %v4073_v23  ;;  %v4211_v31 = vperm.slane %v383_v32, %v4073_v23  ;;  %v4214_v28 = vperm.slane %v407_v35, %v4073_v23 }
 0x231   :  { %v4166_v53 = vsel %vm198_vm8, %v457_v13, %v460_v14  ;;  %v4172_v61 = vsel %vm198_vm8, %v486_v56, %v479_v51  ;;  %v316_v21 = vrot.slane %v4193_v17, 4  ;;  %v4218_v33 = vperm.slane %v385_v37, %v4073_v23 }
 0x232   :  { %v342_v36 = vrot.slane %v4197_v24, 4  ;;  %v344_v35 = vrot.slane %v4207_v19, 4  ;;  %v368_v39 = vrot.slane %v4201_v25, 4  ;;  %v4230_v37 = vsel %vm198_vm8, 0.0, %v314_v55 }
 0x233   :  { %v4233_v40 = vsel %vm198_vm8, 0.0, %v366_v20  ;;  %v394_v41 = vrot.slane %v4211_v31, 4  ;;  %v418_v42 = vrot.slane %v4214_v28, 4  ;;  %v4241_v46 = vsel %vm198_vm8, 0.0, %v316_v21 }
 0x234   :  { %v4245_v14 = vperm.slane %v4151_v57, %v4073_v23  ;;  %v396_v49 = vrot.slane %v4218_v33, 4  ;;  %v4250_v56 = vsel %vm198_vm8, 0.0, %v342_v36 }
 0x236   :  { %844 = vrot.lane.b32.xlu2 %v4030_v58, %s3941_s2 }
 0x23e   :  { %836 = vrot.lane.b32.xlu2 %v4035_v60, %s3941_s2 }
 0x258   :  { %v517_v62 = vpop.permute.xlu2 %516 }
 0x259   :  { %v586_v1 = vrot.slane %v517_v62, 4 }
 0x270   :  { %v513_v0 = vpop.permute.xlu2 %512 }
 0x271   :  { %v574_v58 = vrot.slane %v513_v0, 4  ;;  %v577_v18 = vsel %vm198_vm8, %v513_v0, %v576_v15  ;;  %v4272_v15 = vsel %vm198_vm8, 0.0, %v396_v49 }
 0x272   :  { %v585_v34 = vperm.slane %v577_v18, %v4050_v5 }
 0x273   :  { %v575_v7 = vsel %vm198_vm8, %v574_v58, %v505_v63  ;;  %v4253_v58 = vsel %vm198_vm8, 0.0, %v344_v35 }
 0x274   :  { %v581_v10 = vperm.slane %v575_v7, %v4050_v5  ;;  %v612_v51 = vrot.slane %v585_v34, 4  ;;  %v4263_v7 = vsel %vm198_vm8, 0.0, %v418_v42 }
 0x276   :  { %v600_v3 = vrot.slane %v581_v10, 4 }
 0x278   :  { %v509_v4 = vpop.permute.xlu0 %508  ;;  %v4176_v6 = vpop.permute.xlu2 %506 }
 0x279   :  { %v587_v8 = vsel %vm198_vm8, %v586_v1, %v509_v4  ;;  %v588_v11 = vrot.slane %v509_v4, 4  ;;  %v4256_v1 = vsel %vm198_vm8, 0.0, %v368_v39  ;;  %v4260_v4 = vsel %vm198_vm8, 0.0, %v394_v41 }
 0x27a   :  { %v593_v60 = vperm.slane %v587_v8, %v4050_v5  ;;  %v4267_v8 = vperm.slane %v4147_v44, %v4073_v23 }
 0x27b   :  { %v589_v26 = vsel %vm198_vm8, %v517_v62, %v588_v11  ;;  %v446_v11 = vrot.slane %v4245_v14, 4 }
 0x27c   :  { %v598_v2 = vrot.slane %v593_v60, 4  ;;  %v601_v27 = vsel %vm198_vm8, %v593_v60, %v600_v3  ;;  %v597_v13 = vperm.slane %v589_v26, %v4050_v5  ;;  %v540_v3 = vrot.slane %v4176_v6, 4 }
 0x27d   :  { %v609_v38 = vperm.slane %v601_v27, %v4073_v23  ;;  %v4286_v27 = vperm.slane %v4157_v48, %v4073_v23 }
 0x27e   :  { %v599_v29 = vsel %vm198_vm8, %v598_v2, %v581_v10  ;;  %v610_v50 = vrot.slane %v597_v13, 4  ;;  %v613_v57 = vsel %vm198_vm8, %v597_v13, %v612_v51 }
 0x27f   :  { %v605_v43 = vperm.slane %v599_v29, %v4073_v23  ;;  %v704_v62 = vrot.slane %v609_v38, 4  ;;  %v4278_v26 = vperm.slane %v613_v57, %v4073_v23  ;;  %v4281_v44 = vperm.slane %v609_v38, %v4050_v5 }
 0x280   :  { %v4189_v16 = vpop.permute.xlu2 %842  ;;  %v515_v22 = vpop.permute.xlu1 %514  ;;  %v611_v20 = vsel %vm198_vm8, %v610_v50, %v585_v34 }
 0x281   :  { %v538_v30 = vrot.slane %v515_v22, 4  ;;  %v503_v63 = vpop.permute.xlu0 %502  ;;  %v652_v10 = vrot.slane %v605_v43, 4  ;;  %v705_v55 = vsel %vm198_vm8, 0.0, %v704_v62  ;;  %v541_v21 = vsel %vm198_vm8, %v515_v22, %v540_v3 }
 0x282   :  { %v4291_v13 = vperm.slane %v611_v20, %v4073_v23  ;;  %v629_v38 = vperm.slane %v605_v43, %v4050_v5  ;;  %v4300_v22 = vsel %vm198_vm8, 0.0, %v446_v11  ;;  %v682_v41 = vrot.slane %v4281_v44, 4 }
 0x283   :  { %v539_v32 = vsel %vm198_vm8, %v538_v30, %v4176_v6  ;;  %v528_v30 = vrot.slane %v503_v63, 4  ;;  %v4305_v42 = vperm.slane %v705_v55, %v4050_v5  ;;  %v4309_v49 = vperm.slane %v4278_v26, %v4050_v5 }
 0x284   :  { %v545_v52 = vperm.slane %v539_v32, %v4050_v5  ;;  %v653_v32 = vsel %vm198_vm8, 0.0, %v652_v10  ;;  %v4312_v43 = vperm.slane %v541_v21, %v4050_v5  ;;  %v808_v51 = vrot.slane %v4278_v26, 4 }
 0x285   :  { %v4317_v62 = vperm.slane %v653_v32, %v4050_v5  ;;  %v756_v11 = vrot.slane %v4291_v13, 4  ;;  %v866_v20 = vrot.slane %v4189_v16, 4 }
 0x286   :  { %v550_v2 = vrot.slane %v545_v52, 4 }
 0x288   :  { %v4238_v45 = vpop.permute.xlu2 %832 }
 0x289   :  { %v511_v54 = vpop.permute.xlu1 %510 }
 0x28a   :  { %v526_v0 = vrot.slane %v511_v54, 4  ;;  %v529_v48 = vsel %vm198_vm8, %v511_v54, %v528_v30 }
 0x28b   :  { %v537_v57 = vperm.slane %v529_v48, %v4050_v5 }
 0x28c   :  { %v527_v60 = vsel %vm198_vm8, %v526_v0, %v503_v63  ;;  %v4321_v63 = vperm.slane %v4291_v13, %v4050_v5  ;;  %v839_v0 = vpop.permute.xlu0 %838 }
 0x28d   :  { %v533_v18 = vperm.slane %v527_v60, %v4050_v5  ;;  %v630_v60 = vrot.slane %v629_v38, 4  ;;  %v854_v30 = vrot.slane %v839_v0, 4  ;;  %v564_v48 = vrot.slane %v537_v57, 4 }
 0x28f   :  { %v552_v34 = vrot.slane %v533_v18, 4  ;;  %v551_v6 = vsel %vm198_vm8, %v550_v2, %v533_v18  ;;  %v562_v2 = vrot.slane %v4312_v43, 4 }
 0x290   :  { %v4293_v29 = vpop.permute.xlu2 %844  ;;  %v557_v36 = vperm.slane %v551_v6, %v4073_v23  ;;  %v658_v6 = vrot.slane %v4317_v62, 4 }
 0x291   :  { %v835_v35 = vpop.permute.xlu1 %834  ;;  %v553_v50 = vsel %vm198_vm8, %v545_v52, %v552_v34  ;;  %v563_v13 = vsel %vm198_vm8, %v562_v2, %v537_v57 }
 0x292   :  { %v868_v54 = vrot.slane %v835_v35, 4  ;;  %v625_v10 = vperm.slane %v557_v36, %v4050_v5  ;;  %v646_v3 = vrot.slane %v557_v36, 4  ;;  %v561_v18 = vperm.slane %v553_v50, %v4073_v23 }
 0x293   :  { %v867_v50 = vsel %vm198_vm8, %v866_v20, %v835_v35 }
 0x294   :  { %v869_v52 = vsel %vm198_vm8, %v4189_v16, %v868_v54  ;;  %v631_v26 = vsel %vm198_vm8, %v630_v60, %v625_v10  ;;  %v632_v55 = vrot.slane %v625_v10, 4  ;;  %v647_v34 = vsel %vm198_vm8, 0.0, %v646_v3 }
 0x295   :  { %v637_v21 = vperm.slane %v631_v26, %v4073_v23  ;;  %v877_v32 = vperm.slane %v869_v52, %v4050_v5  ;;  %v651_v36 = vperm.slane %v647_v34, %v4050_v5  ;;  %v4345_v52 = vperm.slane %v561_v18, %v4050_v5 }
 0x296   :  { %v633_v16 = vsel %vm198_vm8, %v629_v38, %v632_v55  ;;  %v569_v38 = vperm.slane %v563_v13, %v4073_v23  ;;  %v698_v57 = vrot.slane %v561_v18, 4  ;;  %v873_v55 = vperm.slane %v867_v50, %v4050_v5 }
 0x297   :  { %3541 = vmatpush.xpose.msk.msra.mxu1 %vm1158_vm9, %v637_v21  ;;  %v641_v54 = vperm.slane %v633_v16, %v4073_v23  ;;  %v642_v60 = vrot.slane %v637_v21, 4  ;;  %v659_v2 = vsel %vm198_vm8, %v658_v6, %v651_v36  ;;  %v890_v21 = vrot.slane %v877_v32, 4 }
 0x298   :  { %v837_v3 = vpop.permute.xlu2 %836  ;;  %v665_v34 = vperm.slane %v659_v2, %v4073_v23 }
 0x299   :  { %v831_v10 = vpop.permute.xlu1 %830  ;;  %3545 = vmatpush.xpose.msk.msrb.mxu0 %vm1158_vm9, %v641_v54  ;;  %v643_v20 = vsel %vm198_vm8, 0.0, %v642_v60  ;;  %v916_v6 = vrot.slane %v837_v3, 4  ;;  %v644_v16 = vrot.slane %v641_v54, 4  ;;  %v660_v60 = vrot.slane %v651_v36, 4 }
 0x29a   :  { %v855_v26 = vsel %vm198_vm8, %v854_v30, %v831_v10  ;;  %v856_v39 = vrot.slane %v831_v10, 4  ;;  %3542 = vmatmul.msk.f32.vlgmr.msra.gmra.mxu1 %vm1158_vm9, %v4187_v12  ;;  %3543 = vmatpush.xpose.msk.msra.mxu2 %vm1158_vm9, %v643_v20  ;;  %v809_v10 = vsel %vm198_vm8, 0.0, %v808_v51  ;;  %v683_v12 = vsel %vm198_vm8, %v682_v41, %v4345_v52 }
 0x29b   :  { %v861_v35 = vperm.slane %v855_v26, %v4050_v5  ;;  %v645_v51 = vsel %vm198_vm8, 0.0, %v644_v16  ;;  %v914_v36 = vrot.slane %v4293_v29, 4  ;;  %v699_v41 = vsel %vm198_vm8, 0.0, %v698_v57 }
 0x29c   :  { %v857_v30 = vsel %vm198_vm8, %v839_v0, %v856_v39  ;;  %3546 = vmatmul.msk.f32.vlgmr.msrb.gmra.mxu0 %vm1158_vm9, %v4193_v17  ;;  %v757_v39 = vsel %vm198_vm8, 0.0, %v756_v11  ;;  %v565_v17 = vsel %vm198_vm8, %v4312_v43, %v564_v48  ;;  %3547 = vmatpush.xpose.msk.msrb.mxu1 %vm1158_vm9, %v645_v51  ;;  %v710_v11 = vrot.slane %v4305_v42, 4 }
 0x29d   :  { %v865_v18 = vperm.slane %v857_v30, %v4050_v5  ;;  %v880_v13 = vrot.slane %v861_v35, 4  ;;  %3544 = vmatmul.msk.f32.vlgmr.msra.gmra.mxu2 %vm1158_vm9, %v4230_v37  ;;  %v750_v26 = vrot.slane %v569_v38, 4  ;;  %v917_v2 = vsel %vm198_vm8, %v4293_v29, %v916_v6 }
 0x29e   :  { %3549 = vmatpush.xpose.msk.msrb.mxu2 %vm1158_vm9, %v665_v34  ;;  %v689_v37 = vperm.slane %v683_v12, %v4073_v23  ;;  %v670_v43 = vrot.slane %v665_v34, 4  ;;  %v734_v48 = vrot.slane %v4321_v63, 4  ;;  %v4389_v30 = vperm.slane %v757_v39, %v4050_v5 }
 0x29f   :  { %v4366_v0 = vsel %vm198_vm8, %v873_v55, %v880_v13  ;;  %v4369_v50 = vsel %vm198_vm8, %v890_v21, %v865_v18  ;;  %v892_v54 = vrot.slane %v865_v18, 4  ;;  %v915_v21 = vsel %vm198_vm8, %v914_v36, %v837_v3 }
 0x2a0   :  { %v904_v57 = vrot.slane %v4238_v45, 4  ;;  %v661_v18 = vsel %vm198_vm8, %v4317_v62, %v660_v60  ;;  %v703_v29 = vperm.slane %v699_v41, %v4050_v5  ;;  %v4399_v6 = vperm.slane %v565_v17, %v4073_v23 }
 0x2a1   :  { %v4383_v20 = vsel %vm198_vm8, %v877_v32, %v892_v54  ;;  %v4396_v32 = vperm.slane %v809_v10, %v4050_v5  ;;  %v878_v3 = vrot.slane %v873_v55, 4  ;;  %v925_v34 = vperm.slane %v917_v2, %v4050_v5  ;;  %v841_v16 = vpop.permute.xlu1 %840 }
 0x2a2   :  { %v694_v13 = vrot.slane %v689_v37, 4  ;;  %3548 = vmatmul.msk.f32.vlgmr.msrb.gmra.mxu1 %vm1158_vm9, %v4241_v46  ;;  %v4405_v12 = vperm.slane %v569_v38, %v4050_v5  ;;  %v751_v62 = vsel %vm198_vm8, 0.0, %v750_v26  ;;  %v921_v60 = vperm.slane %v915_v21, %v4050_v5 }
 0x2a3   :  { %v684_v10 = vrot.slane %v4345_v52, 4  ;;  %v879_v39 = vsel %vm198_vm8, %v878_v3, %v861_v35  ;;  %v671_v54 = vsel %vm198_vm8, 0.0, %v670_v43  ;;  %v669_v51 = vperm.slane %v661_v18, %v4073_v23 }
 0x2a4   :  { %v695_v55 = vsel %vm198_vm8, 0.0, %v694_v13  ;;  %3551 = vmatpush.xpose.msk.msra.mxu3 %vm1158_vm9, %v671_v54  ;;  %v711_v46 = vsel %vm198_vm8, %v710_v11, %v703_v29  ;;  %v712_v38 = vrot.slane %v703_v29, 4  ;;  %v902_v17 = vrot.slane %v841_v16, 4 }
 0x2a5   :  { %3559 = vmatpush.xpose.msk.msra.mxu0 %vm1158_vm9, %v695_v55  ;;  %v905_v36 = vsel %vm198_vm8, %v841_v16, %v904_v57  ;;  %v938_v41 = vrot.slane %v925_v34, 4  ;;  %3553 = vmatpush.xpose.msk.msra.mxu1 %vm1158_vm9, %v669_v51  ;;  %v672_v52 = vrot.slane %v669_v51, 4  ;;  %v717_v35 = vperm.slane %v711_v46, %v4073_v23 }
 0x2a6   :  { %v913_v26 = vperm.slane %v905_v36, %v4050_v5  ;;  %v903_v2 = vsel %vm198_vm8, %v902_v17, %v4238_v45  ;;  %v685_v11 = vsel %vm198_vm8, %v4281_v44, %v684_v10  ;;  %v735_v21 = vsel %vm198_vm8, %v734_v48, %v4405_v12  ;;  %3550 = vmatmul.msk.f32.vlgmr.msrb.gmra.mxu2 %vm1158_vm9, %v4197_v24 }
 0x2a7   :  { %v673_v43 = vsel %vm198_vm8, 0.0, %v672_v52  ;;  %v722_v57 = vrot.slane %v717_v35, 4  ;;  %3552 = vmatmul.msk.f32.vlgmr.msra.gmra.mxu3 %vm1158_vm9, %v4250_v56  ;;  %v909_v45 = vperm.slane %v903_v2, %v4050_v5  ;;  %v4441_v44 = vperm.slane %v4399_v6, %v4050_v5 }
 0x2a8   :  { %3557 = vmatpush.xpose.msk.msrb.mxu3 %vm1158_vm9, %v689_v37  ;;  %v713_v37 = vsel %vm198_vm8, %v4305_v42, %v712_v38  ;;  %v939_v18 = vsel %vm198_vm8, %v938_v41, %v913_v26  ;;  %3560 = vmatmul.msk.f32.vlgmr.msra.gmra.mxu0 %vm1158_vm9, %v4233_v40  ;;  %v940_v24 = vrot.slane %v913_v26, 4  ;;  %v693_v42 = vperm.slane %v685_v11, %v4073_v23 }
 0x2a9   :  { %3555 = vmatpush.xpose.msk.msra.mxu2 %vm1158_vm9, %v673_v43  ;;  %v741_v56 = vperm.slane %v735_v21, %v4073_v23  ;;  %v4448_v48 = vperm.slane %v751_v62, %v4050_v5  ;;  %v723_v29 = vsel %vm198_vm8, 0.0, %v722_v57  ;;  %v928_v3 = vrot.slane %v909_v45, 4 }
 0x2aa   :  { %3554 = vmatmul.msk.f32.vlgmr.msra.gmra.mxu1 %vm1158_vm9, %v4207_v19  ;;  %v721_v40 = vperm.slane %v713_v37, %v4073_v23  ;;  %v802_v13 = vrot.slane %v4399_v6, 4  ;;  %v4456_v16 = vperm.slane %v879_v39, %v4073_v23  ;;  %v889_v10 = vperm.slane %v4366_v0, %v4073_v23  ;;  %3567 = vmatpush.xpose.msk.msrb.mxu0 %vm1158_vm9, %v723_v29 }
 0x2ab   :  { %v941_v62 = vsel %vm198_vm8, %v925_v34, %v940_v24  ;;  %3561 = vmatpush.xpose.msk.msrb.mxu1 %vm1158_vm9, %v693_v42  ;;  %v926_v55 = vrot.slane %v921_v60, 4  ;;  %v929_v54 = vsel %vm198_vm8, %v921_v60, %v928_v3  ;;  %v746_v19 = vrot.slane %v741_v56, 4 }
 0x2ac   :  { %3565 = vmatpush.xpose.msk.msra.mxu3 %vm1158_vm9, %v717_v35  ;;  %v696_v51 = vrot.slane %v693_v42, 4  ;;  %v736_v6 = vrot.slane %v4405_v12, 4  ;;  %v762_v39 = vrot.slane %v4389_v30, 4  ;;  %v786_v46 = vrot.slane %v4309_v49, 4 }
 0x2ad   :  { %v814_v0 = vrot.slane %v4396_v32, 4  ;;  %v764_v38 = vrot.slane %v4448_v48, 4  ;;  %v788_v34 = vrot.slane %v4441_v44, 4  ;;  %v927_v17 = vsel %vm198_vm8, %v926_v55, %v909_v45 }
 0x2ae   :  { %v747_v60 = vsel %vm198_vm8, 0.0, %v746_v19  ;;  %v803_v36 = vsel %vm198_vm8, 0.0, %v802_v13  ;;  %v4476_v41 = vperm.slane %v4369_v50, %v4073_v23  ;;  %v4480_v12 = vperm.slane %v4456_v16, %v4050_v5  ;;  %3556 = vmatmul.msk.f32.vlgmr.msra.gmra.mxu2 %vm1158_vm9, %v4253_v58 }
 0x2af   :  { %3569 = vmatpush.xpose.msk.msra.mxu1 %vm1158_vm9, %v721_v40  ;;  %v1026_v52 = vrot.slane %v889_v10, 4  ;;  %3575 = vmatpush.xpose.msk.msra.mxu0 %vm1158_vm9, %v747_v60  ;;  %v4487_v35 = vperm.slane %v4383_v20, %v4073_v23  ;;  %v945_v26 = vperm.slane %v939_v18, %v4073_v23  ;;  %v697_v2 = vsel %vm198_vm8, 0.0, %v696_v51 }
 0x2b0   :  { %3558 = vmatmul.msk.f32.vlgmr.msrb.gmra.mxu3 %vm1158_vm9, %v4182_v9  ;;  %3568 = vmatmul.msk.f32.vlgmr.msrb.gmra.mxu0 %vm1158_vm9, %v4260_v4  ;;  %v763_v50 = vsel %vm198_vm8, %v762_v39, %v4448_v48  ;;  %v974_v11 = vrot.slane %v4456_v16, 4  ;;  %v1005_v58 = vperm.slane %v889_v10, %v4050_v5  ;;  %v933_v20 = vperm.slane %v927_v17, %v4073_v23 }
 0x2b1   :  { %3563 = vmatpush.xpose.msk.msrb.mxu2 %vm1158_vm9, %v697_v2  ;;  %3573 = vmatpush.xpose.msk.msrb.mxu3 %vm1158_vm9, %v741_v56  ;;  %v769_v21 = vperm.slane %v763_v50, %v4073_v23  ;;  %v937_v9 = vperm.slane %v929_v54, %v4073_v23  ;;  %v724_v37 = vrot.slane %v721_v40, 4  ;;  %v737_v4 = vsel %vm198_vm8, %v4321_v63, %v736_v6 }
 0x2b2   :  { %3562 = vmatmul.msk.f32.vlgmr.msrb.gmra.mxu1 %vm1158_vm9, %v4201_v25  ;;  %v787_v43 = vsel %vm198_vm8, %v786_v46, %v4441_v44  ;;  %v1027_v57 = vsel %vm198_vm8, 0.0, %v1026_v52  ;;  %v745_v18 = vperm.slane %v737_v4, %v4073_v23  ;;  %v949_v42 = vperm.slane %v941_v62, %v4073_v23 }
 0x2b3   :  { %v774_v45 = vrot.slane %v769_v21, 4  ;;  %v4513_v24 = vperm.slane %v787_v43, %v4073_v23  ;;  %v1084_v56 = vrot.slane %v945_v26, 4  ;;  %v725_v48 = vsel %vm198_vm8, 0.0, %v724_v37 }
 0x2b4   :  { %v4518_v25 = vperm.slane %v803_v36, %v4050_v5  ;;  %v4521_v63 = vperm.slane %v933_v20, %v4050_v5  ;;  %3577 = vmatpush.xpose.msk.msrb.mxu1 %vm1158_vm9, %v745_v18  ;;  %v748_v40 = vrot.slane %v745_v18, 4  ;;  %v980_v13 = vrot.slane %v933_v20, 4 }
 0x2b5   :  { %v775_v29 = vsel %vm198_vm8, 0.0, %v774_v45  ;;  %3571 = vmatpush.xpose.msk.msra.mxu2 %vm1158_vm9, %v725_v48  ;;  %v798_v3 = vrot.slane %v4513_v24, 4  ;;  %v1009_v16 = vperm.slane %v937_v9, %v4050_v5  ;;  %v765_v10 = vsel %vm198_vm8, %v4389_v30, %v764_v38 }
 0x2b6   :  { %3583 = vmatpush.xpose.msk.msrb.mxu0 %vm1158_vm9, %v775_v29  ;;  %v815_v62 = vsel %vm198_vm8, %v814_v0, %v4518_v25  ;;  %v1012_v55 = vrot.slane %v1005_v58, 4  ;;  %v1057_v54 = vperm.slane %v4476_v41, %v4050_v5  ;;  %v1078_v19 = vrot.slane %v4476_v41, 4  ;;  %3564 = vmatmul.msk.f32.vlgmr.msrb.gmra.mxu2 %vm1158_vm9, %v4256_v1 }
 0x2b7   :  { %v1061_v51 = vperm.slane %v945_v26, %v4050_v5  ;;  %v1031_v6 = vperm.slane %v1027_v57, %v4050_v5  ;;  %v1032_v39 = vrot.slane %v937_v9, 4  ;;  %v799_v30 = vsel %vm198_vm8, 0.0, %v798_v3 }
 0x2b8   :  { %3566 = vmatmul.msk.f32.vlgmr.msra.gmra.mxu3 %vm1158_vm9, %v4211_v31  ;;  %3576 = vmatmul.msk.f32.vlgmr.msra.gmra.mxu0 %vm1158_vm9, %v4263_v7  ;;  %v4546_v46 = vperm.slane %v815_v62, %v4073_v23  ;;  %v1085_v0 = vsel %vm198_vm8, 0.0, %v1084_v56  ;;  %v749_v1 = vsel %vm198_vm8, 0.0, %v748_v40  ;;  %v773_v38 = vperm.slane %v765_v10, %v4073_v23 }
 0x2b9   :  { %3581 = vmatpush.xpose.msk.msra.mxu3 %vm1158_vm9, %v769_v21  ;;  %v958_v31 = vrot.slane %v4521_v63, 4  ;;  %v981_v17 = vsel %vm198_vm8, 0.0, %v980_v13  ;;  %v1113_v7 = vperm.slane %v949_v42, %v4050_v5  ;;  %3579 = vmatpush.xpose.msk.msrb.mxu2 %vm1158_vm9, %v749_v1  ;;  %v4560_v60 = vsel %vm198_vm8, %v1009_v16, %v1012_v55 }
 0x2ba   :  { %3591 = vmatpush.xpose.msk.msra.mxu0 %vm1158_vm9, %v799_v30  ;;  %3570 = vmatmul.msk.f32.vlgmr.msra.gmra.mxu1 %vm1158_vm9, %v4218_v33  ;;  %v1010_v36 = vrot.slane %v1009_v16, 4  ;;  %v975_v41 = vsel %vm198_vm8, 0.0, %v974_v11  ;;  %v1064_v52 = vrot.slane %v1057_v54, 4  ;;  %v1062_v26 = vrot.slane %v1061_v51, 4 }
 0x2bb   :  { %v1136_v2 = vrot.slane %v949_v42, 4  ;;  %3585 = vmatpush.xpose.msk.msra.mxu1 %vm1158_vm9, %v773_v38  ;;  %v1033_v50 = vsel %vm198_vm8, 0.0, %v1032_v39  ;;  %v1089_v20 = vperm.slane %v1085_v0, %v4050_v5  ;;  %v826_v21 = vrot.slane %v4546_v46, 4 }
 0x2bc   :  { %v4568_v9 = vsel %vm198_vm8, %v1010_v36, %v1005_v58  ;;  %v776_v33 = vrot.slane %v773_v38, 4  ;;  %v789_v11 = vsel %vm198_vm8, %v4309_v49, %v788_v34  ;;  %v959_v37 = vsel %vm198_vm8, %v958_v31, %v4480_v12 }
 0x2bd   :  { %v4577_v4 = vperm.slane %v981_v17, %v4050_v5  ;;  %v1040_v43 = vrot.slane %v1031_v6, 4  ;;  %v1079_v57 = vsel %vm198_vm8, 0.0, %v1078_v19  ;;  %v1109_v45 = vperm.slane %v4487_v35, %v4050_v5 }
 0x2be   :  { %v1114_v58 = vrot.slane %v1113_v7, 4  ;;  %v1137_v18 = vsel %vm198_vm8, 0.0, %v1136_v2  ;;  %3572 = vmatmul.msk.f32.vlgmr.msra.gmra.mxu2 %vm1158_vm9, %v4272_v15  ;;  %v1037_v49 = vperm.slane %v1033_v50, %v4050_v5  ;;  %v4587_v44 = vsel %vm198_vm8, %v1062_v26, %v1057_v54 }
 0x2bf   :  { %v4590_v34 = vsel %vm198_vm8, %v1061_v51, %v1064_v52  ;;  %v1090_v42 = vrot.slane %v1089_v20, 4  ;;  %v827_v56 = vsel %vm198_vm8, 0.0, %v826_v21  ;;  %v797_v48 = vperm.slane %v789_v11, %v4073_v23 }
 0x2c0   :  { %3574 = vmatmul.msk.f32.vlgmr.msrb.gmra.mxu3 %vm1158_vm9, %v4214_v28  ;;  %3584 = vmatmul.msk.f32.vlgmr.msrb.gmra.mxu0 %vm1158_vm9, %v4300_v22  ;;  %v4599_v15 = vperm.slane %v959_v37, %v4073_v23  ;;  %v777_v29 = vsel %vm198_vm8, 0.0, %v776_v33  ;;  %v986_v3 = vrot.slane %v4577_v4, 4  ;;  %v1038_v28 = vrot.slane %v1037_v49, 4 }
 0x2c1   :  { %3589 = vmatpush.xpose.msk.msrb.mxu3 %vm1158_vm9, %v4513_v24  ;;  %3599 = vmatpush.xpose.msk.msrb.mxu0 %vm1158_vm9, %v827_v56  ;;  %v4607_v40 = vsel %vm198_vm8, %v1037_v49, %v1040_v43  ;;  %v4610_v22 = vperm.slane %v975_v41, %v4050_v5  ;;  %v1141_v13 = vperm.slane %v1137_v18, %v4050_v5  ;;  %v816_v16 = vrot.slane %v4518_v25, 4 }
 0x2c2   :  { %3587 = vmatpush.xpose.msk.msra.mxu2 %vm1158_vm9, %v777_v29  ;;  %3578 = vmatmul.msk.f32.vlgmr.msrb.gmra.mxu1 %vm1158_vm9, %v4267_v8  ;;  %v470_v24 = vrot.slane %v4286_v27, 4  ;;  %v1130_v10 = vrot.slane %v4487_v35, 4  ;;  %v4621_v62 = vsel %vm198_vm8, %v1038_v28, %v1031_v6  ;;  %v1083_v55 = vperm.slane %v1079_v57, %v4050_v5 }
 0x2c3   :  { %3593 = vmatpush.xpose.msk.msrb.mxu1 %vm1158_vm9, %v797_v48  ;;  %v1116_v54 = vrot.slane %v1109_v45, 4  ;;  %v970_v19 = vrot.slane %v4599_v15, 4  ;;  %v800_v25 = vrot.slane %v797_v48, 4  ;;  %v445_v51 = vperm.slane %v4154_v47, %v4073_v23 }
 0x2c4   :  { %v4628_v39 = vsel %vm198_vm8, %v1114_v58, %v1109_v45  ;;  %v987_v35 = vsel %vm198_vm8, %v986_v3, %v4610_v22  ;;  %v4633_v30 = vsel %vm198_vm8, %v1090_v42, %v1083_v55  ;;  %v1092_v6 = vrot.slane %v1083_v55, 4 }
 0x2c5   :  { %v4636_v0 = vsel %vm198_vm8, %v1113_v7, %v1116_v54  ;;  %v1142_v1 = vrot.slane %v1141_v13, 4  ;;  %v5254_v38 = vrot.slane %v4267_v8, 4  ;;  %v817_v47 = vsel %vm198_vm8, %v4396_v32, %v816_v16 }
 0x2c6   :  { %v471_v17 = vsel %vm198_vm8, 0.0, %v470_v24  ;;  %v493_v36 = vperm.slane %v4172_v61, %v4073_v23  ;;  %v4648_v41 = vsel %vm198_vm8, %v1089_v20, %v1092_v6  ;;  %v1131_v7 = vsel %vm198_vm8, 0.0, %v1130_v10 }
 0x2c7   :  { %v421_v31 = vsel %vm198_vm8, 0.0, %v5254_v38  ;;  %v971_v8 = vsel %vm198_vm8, 0.0, %v970_v19  ;;  %v993_v32 = vperm.slane %v987_v35, %v4073_v23  ;;  %v1135_v52 = vperm.slane %v1131_v7, %v4050_v5 }
 0x2c8   :  { %3580 = vmatmul.msk.f32.vlgmr.msrb.gmra.mxu2 %vm1158_vm9, %v421_v31  ;;  %3582 = vmatmul.msk.f32.vlgmr.msra.gmra.mxu3 %vm1158_vm9, %v4245_v14  ;;  %v801_v61 = vsel %vm198_vm8, 0.0, %v800_v25  ;;  %v825_v26 = vperm.slane %v817_v47, %v4073_v23  ;;  %v960_v2 = vrot.slane %v4480_v12, 4  ;;  %v448_v14 = vrot.slane %v445_v51, 4 }
 0x2c9   :  { %3592 = vmatmul.msk.f32.vlgmr.msra.gmra.mxu0 %vm1158_vm9, %v471_v17  ;;  %3597 = vmatpush.xpose.msk.msra.mxu3 %vm1158_vm9, %v4546_v46  ;;  %v4666_v50 = vsel %vm198_vm8, %v1142_v1, %v1135_v52  ;;  %v1144_v20 = vrot.slane %v1135_v52, 4  ;;  %v498_v46 = vrot.slane %v493_v36, 4  ;;  %v998_v21 = vrot.slane %v993_v32, 4 }
 0x2ca   :  { %3607 = vmatpush.msk.msra.mxu0 %vm2348_vm10, %v971_v8  ;;  %3595 = vmatpush.xpose.msk.msrb.mxu2 %vm1158_vm9, %v801_v61  ;;  %v961_v33 = vsel %vm198_vm8, %v4521_v63, %v960_v2  ;;  %v828_v12 = vrot.slane %v825_v26, 4  ;;  %v449_v37 = vsel %vm198_vm8, 0.0, %v448_v14  ;;  %v469_v43 = vperm.slane %v4166_v53, %v4073_v23 }
 0x2cb   :  { %3586 = vmatmul.msk.f32.vlgmr.msra.gmra.mxu1 %vm1158_vm9, %v445_v51  ;;  %v4672_v11 = vsel %vm198_vm8, %v1141_v13, %v1144_v20  ;;  %v499_v57 = vsel %vm198_vm8, 0.0, %v498_v46  ;;  %v969_v45 = vperm.slane %v961_v33, %v4073_v23  ;;  %v999_v63 = vsel %vm198_vm8, 0.0, %v998_v21 }
 0x2cc   :  { %3601 = vmatpush.xpose.msk.msra.mxu1 %vm1158_vm9, %v825_v26  ;;  %v829_v53 = vsel %vm198_vm8, 0.0, %v828_v12  ;;  %v988_v58 = vrot.slane %v4610_v22, 4  ;;  %v472_v18 = vrot.slane %v469_v43, 4  ;;  %v497_v56 = vperm.slane %v4169_v59, %v4073_v23 }
 0x2ce   :  { %v989_v49 = vsel %vm198_vm8, %v4577_v4, %v988_v58  ;;  %v473_v42 = vsel %vm198_vm8, 0.0, %v472_v18  ;;  %v500_v4 = vrot.slane %v497_v56, 4 }
 0x2d0   :  { %3588 = vmatmul.msk.f32.vlgmr.msra.gmra.mxu2 %vm1158_vm9, %v449_v37  ;;  %3590 = vmatmul.msk.f32.vlgmr.msrb.gmra.mxu3 %vm1158_vm9, %v4286_v27  ;;  %v972_v27 = vrot.slane %v969_v45, 4  ;;  %v501_v59 = vsel %vm198_vm8, 0.0, %v500_v4 }
 0x2d1   :  { %3600 = vmatmul.msk.f32.vlgmr.msrb.gmra.mxu0 %vm1158_vm9, %v499_v57  ;;  %3605 = vmatpush.msk.msrb.mxu3 %vm2348_vm10, %v4599_v15  ;;  %v997_v15 = vperm.slane %v989_v49, %v4073_v23 }
 0x2d2   :  { %3615 = vmatpush.msk.msrb.mxu0 %vm2348_vm10, %v999_v63  ;;  %3603 = vmatpush.xpose.msk.msra.mxu2 %vm1158_vm9, %v829_v53  ;;  %v973_v48 = vsel %vm198_vm8, 0.0, %v972_v27 }
 0x2d3   :  { %3594 = vmatmul.msk.f32.vlgmr.msrb.gmra.mxu1 %vm1158_vm9, %v469_v43  ;;  %v1000_v29 = vrot.slane %v997_v15, 4 }
 0x2d4   :  { %3609 = vmatpush.msk.msrb.mxu1 %vm2348_vm10, %v969_v45 }
 0x2d5   :  { %v1001_v3 = vsel %vm198_vm8, 0.0, %v1000_v29 }
 0x2d8   :  { %3596 = vmatmul.msk.f32.vlgmr.msrb.gmra.mxu2 %vm1158_vm9, %v473_v42  ;;  %3598 = vmatmul.msk.f32.vlgmr.msra.gmra.mxu3 %vm1158_vm9, %v493_v36 }
 0x2d9   :  { %3611 = vmatpush.msk.msrb.mxu2 %vm2348_vm10, %v973_v48  ;;  %3613 = vmatpush.msk.msra.mxu3 %vm2348_vm10, %v993_v32 }
 0x2db   :  { %3602 = vmatmul.msk.f32.vlgmr.msra.gmra.mxu1 %vm1158_vm9, %v497_v56 }
 0x2dc   :  { %3617 = vmatpush.msk.msra.mxu1 %vm2348_vm10, %v997_v15 }
 0x2e0   :  { %3604 = vmatmul.msk.f32.vlgmr.msra.gmra.mxu2 %vm1158_vm9, %v501_v59 }
 0x2e1   :  { %3619 = vmatpush.msk.msra.mxu2 %vm2348_vm10, %v1001_v3 }
 0x317   :  { %v4709_v28 = vpop.f32.mrf.mxu1 }
 0x318   :  { %v1992_v22 = vsel %vm1991_vm11, %v4709_v28, -inf }
 0x319   :  { %v4713_v13 = vpop.f32.mrf.mxu0  ;;  %1993 = vmax.xlane.f32.xlu1 %v1992_v22 }
 0x31a   :  { %v1998_v16 = vsel %vm1991_vm11, %v4713_v13, -inf }
 0x31b   :  { %1999 = vmax.xlane.f32.xlu2 %v1998_v16 }
 0x31f   :  { %v4717_v24 = vpop.f32.mrf.mxu1 }
 0x320   :  { %v4719_v10 = vpop.f32.mrf.mxu2  ;;  %v2001_v54 = vsel %vm1991_vm11, %v4717_v24, -inf }
 0x321   :  { %v1995_v55 = vsel %vm1991_vm11, %v4719_v10, -inf }
 0x322   :  { %1996 = vmax.xlane.f32.xlu0 %v1995_v55 }
 0x323   :  { %2002 = vmax.xlane.f32.xlu2 %v2001_v54 }
 0x325   :  { %v4725_v19 = vpop.f32.mrf.mxu0 }
 0x326   :  { %v2019_v25 = vsel %vm1991_vm11, %v4725_v19, -inf }
 0x327   :  { %2020 = vmax.xlane.f32.xlu1 %v2019_v25  ;;  %v4729_v51 = vpop.f32.mrf.mxu1 }
 0x328   :  { %v2010_v31 = vsel %vm1991_vm11, %v4729_v51, -inf }
 0x329   :  { %v4731_v35 = vpop.f32.mrf.mxu2 }
 0x32a   :  { %v4733_v6 = vpop.f32.mrf.mxu3  ;;  %v2004_v52 = vsel %vm1991_vm11, %v4731_v35, -inf }
 0x32b   :  { %v2007_v1 = vsel %vm1991_vm11, %v4733_v6, -inf }
 0x32c   :  { %2008 = vmax.xlane.f32.xlu2 %v2007_v1 }
 0x32d   :  { %v4737_v38 = vpop.f32.mrf.mxu0 }
 0x32e   :  { %v2031_v47 = vsel %vm1991_vm11, %v4737_v38, -inf }
 0x32f   :  { %2011 = vmax.xlane.f32.xlu1 %v2010_v31  ;;  %2032 = vmax.xlane.f32.xlu0 %v2031_v47  ;;  %v4743_v17 = vpop.f32.mrf.mxu1 }
 0x330   :  { %v2022_v20 = vsel %vm1991_vm11, %v4743_v17, -inf }
 0x331   :  { %v4745_v36 = vpop.f32.mrf.mxu2 }
 0x332   :  { %v2013_v32 = vsel %vm1991_vm11, %v4745_v36, -inf }
 0x333   :  { %v4747_v7 = vpop.f32.mrf.mxu3 }
 0x334   :  { %v2016_v8 = vsel %vm1991_vm11, %v4747_v7, -inf }
 0x335   :  { %2017 = vmax.xlane.f32.xlu2 %v2016_v8  ;;  %v4755_v61 = vpop.f32.mrf.mxu0 }
 0x336   :  { %v2043_v14 = vsel %vm1991_vm11, %v4755_v61, -inf }
 0x337   :  { %2005 = vmax.xlane.f32.xlu0 %v2004_v52  ;;  %2014 = vmax.xlane.f32.xlu1 %v2013_v32  ;;  %v4759_v2 = vpop.f32.mrf.mxu1 }
 0x338   :  { %v2034_v37 = vsel %vm1991_vm11, %v4759_v2, -inf }
 0x339   :  { %v4767_v21 = vpop.f32.mrf.mxu2 }
 0x33a   :  { %v2025_v45 = vsel %vm1991_vm11, %v4767_v21, -inf }
 0x33b   :  { %v4757_v26 = vpop.f32.mrf.mxu3 }
 0x33c   :  { %v2028_v46 = vsel %vm1991_vm11, %v4757_v26, -inf }
 0x33d   :  { %2044 = vmax.xlane.f32.xlu2 %v2043_v14  ;;  %v4769_v33 = vpop.f32.mrf.mxu0 }
 0x33e   :  { %v2055_v57 = vsel %vm1991_vm11, %v4769_v33, -inf }
 0x33f   :  { %2023 = vmax.xlane.f32.xlu0 %v2022_v20  ;;  %2029 = vmax.xlane.f32.xlu1 %v2028_v46  ;;  %v4775_v43 = vpop.f32.mrf.mxu1 }
 0x340   :  { %v2046_v48 = vsel %vm1991_vm11, %v4775_v43, -inf }
 0x341   :  { %v4781_v63 = vpop.f32.mrf.mxu2 }
 0x342   :  { %v2037_v58 = vsel %vm1991_vm11, %v4781_v63, -inf }
 0x343   :  { %v4771_v12 = vpop.f32.mrf.mxu3 }
 0x344   :  { %v2040_v49 = vsel %vm1991_vm11, %v4771_v12, -inf }
 0x345   :  { %2035 = vmax.xlane.f32.xlu2 %v2034_v37 }
 0x346   :  { %v4783_v53 = vpop.f32.mrf.mxu0 }
 0x347   :  { %2056 = vmax.xlane.f32.xlu1 %v2055_v57  ;;  %2026 = vmax.xlane.f32.xlu0 %v2025_v45  ;;  %v2067_v27 = vsel %vm1991_vm11, %v4783_v53, -inf }
 0x348   :  { %v4793_v42 = vpop.f32.mrf.mxu1 }
 0x349   :  { %v2058_v56 = vsel %vm1991_vm11, %v4793_v42, -inf }
 0x34b   :  { %v4787_v18 = vpop.f32.mrf.mxu3  ;;  %v4805_v59 = vpop.f32.mrf.mxu2 }
 0x34c   :  { %v2052_v15 = vsel %vm1991_vm11, %v4787_v18, -inf  ;;  %v2049_v55 = vsel %vm1991_vm11, %v4805_v59, -inf }
 0x34d   :  { %2038 = vmax.xlane.f32.xlu2 %v2037_v58 }
 0x34e   :  { %v4807_v3 = vpop.f32.mrf.mxu0 }
 0x34f   :  { %2068 = vmax.xlane.f32.xlu1 %v2067_v27  ;;  %2041 = vmax.xlane.f32.xlu0 %v2040_v49  ;;  %v2079_v16 = vsel %vm1991_vm11, %v4807_v3, -inf }
 0x350   :  { %v4803_v29 = vpop.f32.mrf.mxu1 }
 0x351   :  { %v2070_v22 = vsel %vm1991_vm11, %v4803_v29, -inf }
 0x353   :  { %v4801_v4 = vpop.f32.mrf.mxu3  ;;  %v4825_v8 = vpop.f32.mrf.mxu2 }
 0x354   :  { %v2064_v31 = vsel %vm1991_vm11, %v4801_v4, -inf  ;;  %v2061_v32 = vsel %vm1991_vm11, %v4825_v8, -inf }
 0x355   :  { %2059 = vmax.xlane.f32.xlu2 %v2058_v56 }
 0x357   :  { %2047 = vmax.xlane.f32.xlu1 %v2046_v48  ;;  %2053 = vmax.xlane.f32.xlu0 %v2052_v15 }
 0x358   :  { %v4817_v25 = vpop.f32.mrf.mxu1 }
 0x359   :  { %v2082_v47 = vsel %vm1991_vm11, %v4817_v25, -inf }
 0x35b   :  { %v4815_v54 = vpop.f32.mrf.mxu3  ;;  %v4829_v52 = vpop.f32.mrf.mxu2 }
 0x35c   :  { %v2076_v1 = vsel %vm1991_vm11, %v4815_v54, -inf  ;;  %v2073_v14 = vsel %vm1991_vm11, %v4829_v52, -inf }
 0x35d   :  { %2071 = vmax.xlane.f32.xlu2 %v2070_v22 }
 0x35f   :  { %2080 = vmax.xlane.f32.xlu0 %v2079_v16  ;;  %2050 = vmax.xlane.f32.xlu1 %v2049_v55 }
 0x363   :  { %v4833_v20 = vpop.f32.mrf.mxu2 }
 0x364   :  { %v2085_v46 = vsel %vm1991_vm11, %v4833_v20, -inf }
 0x365   :  { %2077 = vmax.xlane.f32.xlu2 %v2076_v1 }
 0x367   :  { %2065 = vmax.xlane.f32.xlu0 %v2064_v31  ;;  %2083 = vmax.xlane.f32.xlu1 %v2082_v47 }
 0x36f   :  { %2062 = vmax.xlane.f32.xlu0 %v2061_v32 }
 0x377   :  { %2074 = vmax.xlane.f32.xlu0 %v2073_v14 }
 0x37f   :  { %2086 = vmax.xlane.f32.xlu0 %v2085_v46 }
 0x38c   :  { %v1994_v37 = vpop.xlane.xlu1 %1993 }
 0x38d   :  { %v2088_v58 = vsub.f32 %v4709_v28, %v1994_v37 }
 0x38e   :  { %v2000_v57 = vpop.xlane.xlu2 %1999 }
 0x38f   :  { %v2090_v45 = vsub.f32 %v4713_v13, %v2000_v57  ;;  %v2120_v49 = vmul.f32 1.442695, %v2088_v58 }
 0x391   :  { %v2124_v27 = vmul.f32 1.442695, %v2090_v45 }
 0x393   :  { %3697 = vpow2.f32 %v2124_v27 }
 0x394   :  { %3699 = vpow2.f32 %v2120_v49 }
 0x395   :  { %v1997_v56 = vpop.xlane.xlu0 %1996 }
 0x396   :  { %v2003_v48 = vpop.xlane.xlu2 %2002  ;;  %v2089_v22 = vsub.f32 %v4719_v10, %v1997_v56 }
 0x397   :  { %v2091_v15 = vsub.f32 %v4717_v24, %v2003_v48 }
 0x398   :  { %v2122_v13 = vmul.f32 1.442695, %v2089_v22 }
 0x399   :  { %v4841_v16 = vpop.eup %3697  ;;  %v2126_v55 = vmul.f32 1.442695, %v2091_v15 }
 0x39a   :  { %v2021_v1 = vpop.xlane.xlu1 %2020  ;;  %v2190_v31 = vsel %vm1991_vm11, %v4841_v16, 0.0  ;;  %v4846_v32 = vpop.eup %3699 }
 0x39b   :  { %3701 = vpow2.f32 %v2126_v55  ;;  %v2097_v28 = vsub.f32 %v4725_v19, %v2021_v1  ;;  %2191 = vadd.xlane.f32.xlu1 %v2190_v31  ;;  %v2184_v19 = vsel %vm1991_vm11, %v4846_v32, 0.0 }
 0x39c   :  { %3703 = vpow2.f32 %v2122_v13 }
 0x39d   :  { %v2138_v47 = vmul.f32 1.442695, %v2097_v28 }
 0x39f   :  { %v2009_v24 = vpop.xlane.xlu2 %2008  ;;  %3705 = vpow2.f32 %v2138_v47 }
 0x3a0   :  { %v2093_v10 = vsub.f32 %v4733_v6, %v2009_v24 }
 0x3a1   :  { %v4848_v14 = vpop.eup %3701 }
 0x3a2   :  { %v4851_v46 = vpop.xlane.xlu0 %2032  ;;  %v2012_v37 = vpop.xlane.xlu1 %2011  ;;  %v2193_v57 = vsel %vm1991_vm11, %v4848_v14, 0.0  ;;  %v2130_v58 = vmul.f32 1.442695, %v2093_v10 }
 0x3a3   :  { %v2094_v45 = vsub.f32 %v4729_v51, %v2012_v37  ;;  %2194 = vadd.xlane.f32.xlu0 %v2193_v57  ;;  %2185 = vadd.xlane.f32.xlu1 %v2184_v19  ;;  %v4858_v49 = vpop.eup %3703 }
 0x3a4   :  { %3707 = vpow2.f32 %v2130_v58  ;;  %v2187_v55 = vsel %vm1991_vm11, %v4858_v49, 0.0 }
 0x3a5   :  { %v2132_v27 = vmul.f32 1.442695, %v2094_v45  ;;  %v4860_v56 = vpop.eup %3705 }
 0x3a6   :  { %v2211_v51 = vsel %vm1991_vm11, %v4860_v56, 0.0 }
 0x3a7   :  { %3709 = vpow2.f32 %v2132_v27 }
 0x3a8   :  { %v2018_v6 = vpop.xlane.xlu2 %2017 }
 0x3a9   :  { %v2096_v48 = vsub.f32 %v4747_v7, %v2018_v6 }
 0x3aa   :  { %v2006_v15 = vpop.xlane.xlu0 %2005  ;;  %v2015_v22 = vpop.xlane.xlu1 %2014 }
 0x3ab   :  { %v2092_v1 = vsub.f32 %v4731_v35, %v2006_v15  ;;  %2188 = vadd.xlane.f32.xlu0 %v2187_v55  ;;  %2212 = vadd.xlane.f32.xlu1 %v2211_v51  ;;  %v2136_v31 = vmul.f32 1.442695, %v2096_v48  ;;  %v4868_v13 = vpop.eup %3707  ;;  %v2095_v45 = vsub.f32 %v4745_v36, %v2015_v22 }
 0x3ac   :  { %v2199_v37 = vsel %vm1991_vm11, %v4868_v13, 0.0 }
 0x3ad   :  { %v2128_v28 = vmul.f32 1.442695, %v2092_v1  ;;  %v4870_v47 = vpop.eup %3709  ;;  %v2134_v55 = vmul.f32 1.442695, %v2095_v45 }
 0x3ae   :  { %v2202_v57 = vsel %vm1991_vm11, %v4870_v47, 0.0 }
 0x3af   :  { %3711 = vpow2.f32 %v2128_v28 }
 0x3b0   :  { %v2045_v7 = vpop.xlane.xlu2 %2044  ;;  %3713 = vpow2.f32 %v2136_v31 }
 0x3b2   :  { %v2024_v24 = vpop.xlane.xlu0 %2023  ;;  %v2030_v10 = vpop.xlane.xlu1 %2029 }
 0x3b3   :  { %v2098_v35 = vsub.f32 %v4743_v17, %v2024_v24  ;;  %v2100_v19 = vsub.f32 %v4757_v26, %v2030_v10  ;;  %2200 = vadd.xlane.f32.xlu0 %v2199_v37  ;;  %2203 = vadd.xlane.f32.xlu1 %v2202_v57 }
 0x3b5   :  { %v4879_v58 = vpop.eup %3711  ;;  %v2140_v27 = vmul.f32 1.442695, %v2098_v35  ;;  %v2144_v6 = vmul.f32 1.442695, %v2100_v19 }
 0x3b6   :  { %v2196_v48 = vsel %vm1991_vm11, %v4879_v58, 0.0  ;;  %v4883_v15 = vpop.eup %3713 }
 0x3b7   :  { %3715 = vpow2.f32 %v2140_v27  ;;  %2197 = vadd.xlane.f32.xlu2 %v2196_v48  ;;  %v2208_v36 = vsel %vm1991_vm11, %v4883_v15, 0.0 }
 0x3b8   :  { %3717 = vpow2.f32 %v2144_v6  ;;  %v2036_v17 = vpop.xlane.xlu2 %2035  ;;  %v2105_v6 = vsub.f32 %v4755_v61, %v2045_v7 }
 0x3b9   :  { %v2102_v26 = vsub.f32 %v4759_v2, %v2036_v17  ;;  %3719 = vpow2.f32 %v2134_v55  ;;  %v2101_v17 = vsub.f32 %v4737_v38, %v4851_v46 }
 0x3ba   :  { %v2027_v51 = vpop.xlane.xlu0 %2026  ;;  %v4886_v1 = vpop.xlane.xlu1 %2056 }
 0x3bb   :  { %v2148_v22 = vmul.f32 1.442695, %v2102_v26  ;;  %2209 = vadd.xlane.f32.xlu0 %v2208_v36  ;;  %v2099_v31 = vsub.f32 %v4767_v21, %v2027_v51  ;;  %v2154_v26 = vmul.f32 1.442695, %v2105_v6  ;;  %v2146_v51 = vmul.f32 1.442695, %v2101_v17 }
 0x3bd   :  { %v4891_v28 = vpop.eup %3715  ;;  %3721 = vpow2.f32 %v2148_v22  ;;  %v2142_v37 = vmul.f32 1.442695, %v2099_v31 }
 0x3be   :  { %v4893_v24 = vpop.eup %3717  ;;  %v2214_v10 = vsel %vm1991_vm11, %v4891_v28, 0.0 }
 0x3bf   :  { %2215 = vadd.xlane.f32.xlu2 %v2214_v10  ;;  %v2220_v2 = vsel %vm1991_vm11, %v4893_v24, 0.0  ;;  %v4900_v19 = vpop.eup %3719  ;;  %3723 = vpow2.f32 %v2142_v37 }
 0x3c0   :  { %2221 = vadd.xlane.f32.xlu1 %v2220_v2  ;;  %v2039_v57 = vpop.xlane.xlu2 %2038 }
 0x3c1   :  { %v2103_v35 = vsub.f32 %v4781_v63, %v2039_v57  ;;  %v2205_v63 = vsel %vm1991_vm11, %v4900_v19, 0.0 }
 0x3c2   :  { %v2042_v21 = vpop.xlane.xlu0 %2041  ;;  %v4902_v45 = vpop.xlane.xlu1 %2068 }
 0x3c3   :  { %v4904_v27 = vpop.eup %3721  ;;  %v2150_v48 = vmul.f32 1.442695, %v2103_v35  ;;  %v2104_v46 = vsub.f32 %v4771_v12, %v2042_v21 }
 0x3c4   :  { %v2226_v55 = vsel %vm1991_vm11, %v4904_v27, 0.0 }
 0x3c5   :  { %3725 = vpow2.f32 %v2150_v48  ;;  %2227 = vadd.xlane.f32.xlu0 %v2226_v55  ;;  %v4913_v36 = vpop.eup %3723  ;;  %v2152_v6 = vmul.f32 1.442695, %v2104_v46 }
 0x3c6   :  { %3727 = vpow2.f32 %v2154_v26  ;;  %v2217_v37 = vsel %vm1991_vm11, %v4913_v36, 0.0 }
 0x3c7   :  { %2206 = vadd.xlane.f32.xlu2 %v2205_v63  ;;  %3729 = vpow2.f32 %v2146_v51  ;;  %v2109_v63 = vsub.f32 %v4769_v33, %v4886_v1 }
 0x3c8   :  { %v2060_v1 = vpop.xlane.xlu2 %2059 }
 0x3ca   :  { %v2054_v22 = vpop.xlane.xlu0 %2053  ;;  %v2048_v61 = vpop.xlane.xlu1 %2047 }
 0x3cb   :  { %v4915_v7 = vpop.eup %3725  ;;  %v2108_v31 = vsub.f32 %v4787_v18, %v2054_v22  ;;  %v2106_v10 = vsub.f32 %v4775_v43, %v2048_v61  ;;  %v2162_v22 = vmul.f32 1.442695, %v2109_v63 }
 0x3cc   :  { %v2229_v38 = vsel %vm1991_vm11, %v4915_v7, 0.0  ;;  %v4924_v35 = vpop.eup %3727 }
 0x3cd   :  { %v2156_v2 = vmul.f32 1.442695, %v2106_v10  ;;  %2230 = vadd.xlane.f32.xlu0 %v2229_v38  ;;  %v2160_v57 = vmul.f32 1.442695, %v2108_v31  ;;  %v4928_v48 = vpop.eup %3729  ;;  %v2235_v12 = vsel %vm1991_vm11, %v4924_v35, 0.0 }
 0x3ce   :  { %v2223_v26 = vsel %vm1991_vm11, %v4928_v48, 0.0 }
 0x3cf   :  { %2218 = vadd.xlane.f32.xlu2 %v2217_v37  ;;  %3731 = vpow2.f32 %v2156_v2 }
 0x3d0   :  { %3733 = vpow2.f32 %v2160_v57 }
 0x3d1   :  { %3735 = vpow2.f32 %v2152_v6 }
 0x3d2   :  { %v4926_v18 = vpop.xlane.xlu0 %2080  ;;  %v2051_v43 = vpop.xlane.xlu1 %2050 }
 0x3d3   :  { %v2107_v55 = vsub.f32 %v4805_v59, %v2051_v43 }
 0x3d5   :  { %v2158_v21 = vmul.f32 1.442695, %v2107_v55  ;;  %2236 = vadd.xlane.f32.xlu0 %v2235_v12  ;;  %v4933_v17 = vpop.eup %3731  ;;  %v2110_v55 = vsub.f32 %v4793_v42, %v2060_v1 }
 0x3d6   :  { %v2238_v51 = vsel %vm1991_vm11, %v4933_v17, 0.0  ;;  %v4941_v59 = vpop.eup %3733 }
 0x3d7   :  { %2224 = vadd.xlane.f32.xlu2 %v2223_v26  ;;  %3737 = vpow2.f32 %v2158_v21  ;;  %2239 = vadd.xlane.f32.xlu1 %v2238_v51  ;;  %v4943_v31 = vpop.eup %3735  ;;  %v2244_v10 = vsel %vm1991_vm11, %v4941_v59, 0.0  ;;  %v2072_v21 = vpop.xlane.xlu2 %2071  ;;  %v2164_v63 = vmul.f32 1.442695, %v2110_v55 }
 0x3d8   :  { %3739 = vpow2.f32 %v2162_v22  ;;  %v2232_v46 = vsel %vm1991_vm11, %v4943_v31, 0.0  ;;  %v2114_v42 = vsub.f32 %v4803_v29, %v2072_v21  ;;  %v2117_v29 = vsub.f32 %v4807_v3, %v4926_v18 }
 0x3da   :  { %v2066_v61 = vpop.xlane.xlu0 %2065 }
 0x3db   :  { %v2112_v38 = vsub.f32 %v4801_v4, %v2066_v61 }
 0x3dd   :  { %2245 = vadd.xlane.f32.xlu0 %v2244_v10  ;;  %v4947_v33 = vpop.eup %3737  ;;  %v2168_v37 = vmul.f32 1.442695, %v2112_v38 }
 0x3de   :  { %v2241_v2 = vsel %vm1991_vm11, %v4947_v33, 0.0  ;;  %v4955_v43 = vpop.eup %3739 }
 0x3df   :  { %2233 = vadd.xlane.f32.xlu2 %v2232_v46  ;;  %2242 = vadd.xlane.f32.xlu1 %v2241_v2  ;;  %3741 = vpow2.f32 %v2168_v37  ;;  %v2247_v4 = vsel %vm1991_vm11, %v4955_v43, 0.0  ;;  %v2172_v46 = vmul.f32 1.442695, %v2114_v42  ;;  %v2078_v2 = vpop.xlane.xlu2 %2077 }
 0x3e0   :  { %v2116_v55 = vsub.f32 %v4815_v54, %v2078_v2 }
 0x3e2   :  { %v2063_v57 = vpop.xlane.xlu0 %2062 }
 0x3e3   :  { %v2111_v6 = vsub.f32 %v4825_v8, %v2063_v57  ;;  %v2113_v8 = vsub.f32 %v4783_v53, %v4902_v45  ;;  %v2084_v45 = vpop.xlane.xlu1 %2083 }
 0x3e5   :  { %v2166_v12 = vmul.f32 1.442695, %v2111_v6  ;;  %v4961_v22 = vpop.eup %3741 }
 0x3e6   :  { %v2256_v38 = vsel %vm1991_vm11, %v4961_v22, 0.0 }
 0x3e7   :  { %3743 = vpow2.f32 %v2166_v12  ;;  %2248 = vadd.xlane.f32.xlu1 %v2247_v4  ;;  %v2118_v4 = vsub.f32 %v4817_v25, %v2084_v45 }
 0x3e8   :  { %3745 = vpow2.f32 %v2164_v63 }
 0x3e9   :  { %v2180_v18 = vmul.f32 1.442695, %v2118_v4 }
 0x3ea   :  { %v2075_v26 = vpop.xlane.xlu0 %2074 }
 0x3eb   :  { %v2115_v51 = vsub.f32 %v4829_v52, %v2075_v26  ;;  %v2170_v52 = vmul.f32 1.442695, %v2113_v8  ;;  %v2176_v26 = vmul.f32 1.442695, %v2116_v55 }
 0x3ed   :  { %v4965_v61 = vpop.eup %3743  ;;  %v2174_v10 = vmul.f32 1.442695, %v2115_v51 }
 0x3ee   :  { %v2253_v1 = vsel %vm1991_vm11, %v4965_v61, 0.0  ;;  %v4972_v53 = vpop.eup %3745 }
 0x3ef   :  { %3747 = vpow2.f32 %v2174_v10  ;;  %2254 = vadd.xlane.f32.xlu2 %v2253_v1  ;;  %2257 = vadd.xlane.f32.xlu1 %v2256_v38  ;;  %v2250_v63 = vsel %vm1991_vm11, %v4972_v53, 0.0 }
 0x3f0   :  { %3749 = vpow2.f32 %v2170_v52 }
 0x3f1   :  { %3751 = vpow2.f32 %v2172_v46 }
 0x3f2   :  { %v2087_v37 = vpop.xlane.xlu0 %2086 }
 0x3f3   :  { %v2119_v57 = vsub.f32 %v4833_v20, %v2087_v37  ;;  %v2178_v20 = vmul.f32 1.442695, %v2117_v29 }
 0x3f5   :  { %v4977_v6 = vpop.eup %3747  ;;  %v2182_v12 = vmul.f32 1.442695, %v2119_v57 }
 0x3f6   :  { %v2265_v21 = vsel %vm1991_vm11, %v4977_v6, 0.0  ;;  %v4985_v3 = vpop.eup %3749 }
 0x3f7   :  { %3753 = vpow2.f32 %v2182_v12  ;;  %2266 = vadd.xlane.f32.xlu0 %v2265_v21  ;;  %2251 = vadd.xlane.f32.xlu2 %v2250_v63  ;;  %v4987_v51 = vpop.eup %3751  ;;  %v2259_v8 = vsel %vm1991_vm11, %v4985_v3, 0.0  ;;  %v1021_v12 = vperm.slane %v4560_v60, %v4073_v23  ;;  %v1017_v60 = vperm.slane %v4568_v9, %v4073_v23 }
 0x3f8   :  { %3755 = vpow2.f32 %v2178_v20  ;;  %v2262_v25 = vsel %vm1991_vm11, %v4987_v51, 0.0 }
 0x3f9   :  { %3757 = vpow2.f32 %v2176_v26  ;;  %v1024_v4 = vrot.slane %v1021_v12, 4 }
 0x3fa   :  { %3759 = vpow2.f32 %v2180_v18 }
 0x3fd   :  { %v4989_v54 = vpop.eup %3753 }
 0x3fe   :  { %v2277_v42 = vsel %vm1991_vm11, %v4989_v54, 0.0  ;;  %v4997_v10 = vpop.eup %3755 }
 0x3ff   :  { %2263 = vadd.xlane.f32.xlu0 %v2262_v25  ;;  %2260 = vadd.xlane.f32.xlu2 %v2259_v8  ;;  %v4999_v1 = vpop.eup %3757  ;;  %v2271_v52 = vsel %vm1991_vm11, %v4997_v10, 0.0  ;;  %v1025_v25 = vsel %vm198_vm8, 0.0, %v1024_v4  ;;  %v1022_v8 = vrot.slane %v1017_v60, 4  ;;  %v1069_v4 = vperm.slane %v4587_v44, %v4073_v23 }
 0x400   :  { %2278 = vadd.xlane.f32.xlu1 %v2277_v42  ;;  %v5001_v38 = vpop.eup %3759  ;;  %v2268_v46 = vsel %vm1991_vm11, %v4999_v1, 0.0 }
 0x401   :  { %v2274_v2 = vsel %vm1991_vm11, %v5001_v38, 0.0  ;;  %v1023_v9 = vsel %vm198_vm8, 0.0, %v1022_v8 }
 0x407   :  { %2272 = vadd.xlane.f32.xlu0 %v2271_v52  ;;  %2269 = vadd.xlane.f32.xlu2 %v2268_v46  ;;  %v1045_v46 = vperm.slane %v4621_v62, %v4073_v23  ;;  %v1049_v62 = vperm.slane %v4607_v40, %v4073_v23 }
 0x408   :  { %2275 = vadd.xlane.f32.xlu1 %v2274_v2 }
 0x40e   :  { %v2192_v37 = vpop.xlane.xlu1 %2191 }
 0x40f   :  { %3761 = vrcp.f32 %v2192_v37  ;;  %v1050_v37 = vrot.slane %v1045_v46, 4 }
 0x415   :  { %v3762_v45 = vpop.eup %3761 }
 0x416   :  { %v2314_v57 = vmul.f32 %v3762_v45, %v4841_v16  ;;  %v2195_v29 = vpop.xlane.xlu0 %2194  ;;  %v2186_v55 = vpop.xlane.xlu1 %2185 }
 0x417   :  { %3763 = vrcp.f32 %v2195_v29 }
 0x418   :  { %3765 = vrcp.f32 %v2186_v55  ;;  %3610 = vmatmul.msk.f32.vlgmr.msrb.gmra.mxu1 %vm2344_vm12, %v2314_v57 }
 0x419   :  { %3625 = vmatpush.msk.msrb.mxu1 %vm2348_vm10, %v1021_v12  ;;  %v1051_v12 = vsel %vm198_vm8, 0.0, %v1050_v37  ;;  %v1097_v37 = vperm.slane %v4633_v30, %v4073_v23 }
 0x41d   :  { %v3764_v21 = vpop.eup %3763 }
 0x41e   :  { %v3766_v63 = vpop.eup %3765  ;;  %v2315_v20 = vmul.f32 %v3764_v21, %v4848_v14  ;;  %v2189_v26 = vpop.xlane.xlu0 %2188 }
 0x41f   :  { %v2213_v18 = vpop.xlane.xlu1 %2212  ;;  %v2312_v16 = vmul.f32 %v3766_v63, %v4846_v32  ;;  %3767 = vrcp.f32 %v2189_v26 }
 0x420   :  { %3612 = vmatmul.msk.f32.vlgmr.msrb.gmra.mxu2 %vm2344_vm12, %v2315_v20  ;;  %v1074_v20 = vrot.slane %v1069_v4, 4 }
 0x421   :  { %3606 = vmatmul.msk.f32.vlgmr.msrb.gmra.mxu3 %vm2344_vm12, %v2312_v16  ;;  %3627 = vmatpush.msk.msrb.mxu2 %vm2348_vm10, %v1025_v25 }
 0x422   :  { %3621 = vmatpush.msk.msrb.mxu3 %vm2348_vm10, %v1017_v60 }
 0x425   :  { %v3768_v14 = vpop.eup %3767 }
 0x426   :  { %v2313_v42 = vmul.f32 %v3768_v14, %v4858_v49  ;;  %v2201_v52 = vpop.xlane.xlu0 %2200  ;;  %v1073_v14 = vperm.slane %v4590_v34, %v4073_v23 }
 0x427   :  { %v2204_v32 = vpop.xlane.xlu1 %2203  ;;  %3769 = vrcp.f32 %v2201_v52 }
 0x428   :  { %3771 = vrcp.f32 %v2204_v32  ;;  %3608 = vmatmul.msk.f32.vlgmr.msra.gmra.mxu0 %vm2344_vm12, %v2313_v42  ;;  %v1052_v42 = vrot.slane %v1049_v62, 4 }
 0x429   :  { %3623 = vmatpush.msk.msra.mxu0 %vm2348_vm10, %v1023_v9 }
 0x42a   :  { %v2198_v2 = vpop.xlane.xlu2 %2197 }
 0x42b   :  { %3773 = vrcp.f32 %v2198_v2  ;;  %v1053_v2 = vsel %vm198_vm8, 0.0, %v1052_v42 }
 0x42c   :  { %3775 = vrcp.f32 %v2213_v18 }
 0x42d   :  { %v3770_v45 = vpop.eup %3769 }
 0x42e   :  { %v3772_v57 = vpop.eup %3771  ;;  %v2317_v49 = vmul.f32 %v3770_v45, %v4868_v13  ;;  %v2210_v29 = vpop.xlane.xlu0 %2209  ;;  %v1101_v45 = vperm.slane %v4648_v41, %v4073_v23 }
 0x42f   :  { %v2318_v55 = vmul.f32 %v3772_v57, %v4870_v47  ;;  %3777 = vrcp.f32 %v2210_v29 }
 0x430   :  { %3616 = vmatmul.msk.f32.vlgmr.msrb.gmra.mxu0 %vm2344_vm12, %v2317_v49 }
 0x431   :  { %v3774_v21 = vpop.eup %3773  ;;  %3618 = vmatmul.msk.f32.vlgmr.msra.gmra.mxu1 %vm2344_vm12, %v2318_v55  ;;  %3631 = vmatpush.msk.msrb.mxu0 %vm2348_vm10, %v1051_v12  ;;  %v1102_v55 = vrot.slane %v1097_v37, 4 }
 0x432   :  { %v2316_v13 = vmul.f32 %v3774_v21, %v4879_v58  ;;  %v2216_v63 = vpop.xlane.xlu2 %2215  ;;  %3633 = vmatpush.msk.msra.mxu1 %vm2348_vm10, %v1049_v62  ;;  %v3776_v47 = vpop.eup %3775  ;;  %v1075_v58 = vsel %vm198_vm8, 0.0, %v1074_v20  ;;  %v1104_v62 = vrot.slane %v1101_v45, 4 }
 0x433   :  { %3779 = vrcp.f32 %v2216_v63  ;;  %v2222_v40 = vpop.xlane.xlu1 %2221  ;;  %v2321_v44 = vmul.f32 %v3776_v47, %v4860_v56  ;;  %v1103_v20 = vsel %vm198_vm8, 0.0, %v1102_v55 }
 0x434   :  { %3614 = vmatmul.msk.f32.vlgmr.msra.gmra.mxu3 %vm2344_vm12, %v2316_v13  ;;  %3781 = vrcp.f32 %v2222_v40 }
 0x435   :  { %v3778_v26 = vpop.eup %3777  ;;  %3629 = vmatpush.msk.msra.mxu3 %vm2348_vm10, %v1045_v46 }
 0x436   :  { %v2320_v18 = vmul.f32 %v3778_v26, %v4883_v15  ;;  %v1125_v26 = vperm.slane %v4636_v0, %v4073_v23 }
 0x438   :  { %v2228_v16 = vpop.xlane.xlu0 %2227  ;;  %3624 = vmatmul.msk.f32.vlgmr.msra.gmra.mxu0 %vm2344_vm12, %v2321_v44 }
 0x439   :  { %v3780_v60 = vpop.eup %3779  ;;  %3783 = vrcp.f32 %v2228_v16  ;;  %3639 = vmatpush.msk.msra.mxu0 %vm2348_vm10, %v1075_v58  ;;  %v1128_v16 = vrot.slane %v1125_v26, 4 }
 0x43a   :  { %v2322_v25 = vmul.f32 %v3780_v60, %v4891_v28  ;;  %v2207_v8 = vpop.xlane.xlu2 %2206  ;;  %v3782_v56 = vpop.eup %3781 }
 0x43b   :  { %3785 = vrcp.f32 %v2207_v8  ;;  %v2324_v28 = vmul.f32 %v3782_v56, %v4893_v24  ;;  %v1076_v24 = vrot.slane %v1073_v14, 4 }
 0x43c   :  { %3622 = vmatmul.msk.f32.vlgmr.msrb.gmra.mxu3 %vm2344_vm12, %v2320_v18  ;;  %3626 = vmatmul.msk.f32.vlgmr.msrb.gmra.mxu1 %vm2344_vm12, %v2322_v25 }
 0x43d   :  { %3637 = vmatpush.msk.msrb.mxu3 %vm2348_vm10, %v1069_v4  ;;  %3641 = vmatpush.msk.msrb.mxu1 %vm2348_vm10, %v1073_v14  ;;  %v1077_v41 = vsel %vm198_vm8, 0.0, %v1076_v24  ;;  %v1129_v14 = vsel %vm198_vm8, 0.0, %v1128_v16 }
 0x43f   :  { %v3784_v15 = vpop.eup %3783 }
 0x440   :  { %v2326_v32 = vmul.f32 %v3784_v15, %v4904_v27  ;;  %v2231_v46 = vpop.xlane.xlu0 %2230 }
 0x441   :  { %v3786_v52 = vpop.eup %3785 }
 0x442   :  { %v2319_v9 = vmul.f32 %v3786_v52, %v4900_v19  ;;  %v2219_v34 = vpop.xlane.xlu2 %2218 }
 0x443   :  { %3787 = vrcp.f32 %v2219_v34 }
 0x444   :  { %3620 = vmatmul.msk.f32.vlgmr.msra.gmra.mxu2 %vm2344_vm12, %v2319_v9  ;;  %3630 = vmatmul.msk.f32.vlgmr.msra.gmra.mxu3 %vm2344_vm12, %v2324_v28  ;;  %3789 = vrcp.f32 %v2231_v46 }
 0x445   :  { %3634 = vmatmul.msk.f32.vlgmr.msra.gmra.mxu1 %vm2344_vm12, %v2326_v32  ;;  %3635 = vmatpush.msk.msra.mxu2 %vm2348_vm10, %v1053_v2 }
 0x446   :  { %3645 = vmatpush.msk.msra.mxu3 %vm2348_vm10, %v1097_v37  ;;  %3649 = vmatpush.msk.msra.mxu1 %vm2348_vm10, %v1101_v45 }
 0x448   :  { %v2237_v30 = vpop.xlane.xlu0 %2236 }
 0x449   :  { %v3788_v19 = vpop.eup %3787 }
 0x44a   :  { %v2323_v27 = vmul.f32 %v3788_v19, %v4913_v36  ;;  %v2225_v57 = vpop.xlane.xlu2 %2224  ;;  %v2240_v49 = vpop.xlane.xlu1 %2239 }
 0x44b   :  { %3791 = vrcp.f32 %v2225_v57  ;;  %v3790_v29 = vpop.eup %3789 }
 0x44c   :  { %3793 = vrcp.f32 %v2240_v49  ;;  %3628 = vmatmul.msk.f32.vlgmr.msrb.gmra.mxu2 %vm2344_vm12, %v2323_v27  ;;  %v2327_v21 = vmul.f32 %v3790_v29, %v4915_v7  ;;  %v1105_v7 = vsel %vm198_vm8, 0.0, %v1104_v62 }
 0x44d   :  { %3643 = vmatpush.msk.msrb.mxu2 %vm2348_vm10, %v1077_v41  ;;  %3795 = vrcp.f32 %v2237_v30 }
 0x451   :  { %v3792_v12 = vpop.eup %3791 }
 0x452   :  { %v3794_v4 = vpop.eup %3793  ;;  %v2325_v36 = vmul.f32 %v3792_v12, %v4928_v48  ;;  %v2234_v13 = vpop.xlane.xlu2 %2233  ;;  %v1121_v48 = vperm.slane %v4628_v39, %v4073_v23 }
 0x453   :  { %v2330_v63 = vmul.f32 %v3794_v4, %v4933_v17  ;;  %3797 = vrcp.f32 %v2234_v13  ;;  %v2243_v47 = vpop.xlane.xlu1 %2242  ;;  %v2246_v17 = vpop.xlane.xlu0 %2245 }
 0x454   :  { %3799 = vrcp.f32 %v2243_v47  ;;  %3632 = vmatmul.msk.f32.vlgmr.msrb.gmra.mxu0 %vm2344_vm12, %v2325_v36  ;;  %3636 = vmatmul.msk.f32.vlgmr.msra.gmra.mxu2 %vm2344_vm12, %v2327_v21  ;;  %v3796_v40 = vpop.eup %3795  ;;  %v1126_v18 = vrot.slane %v1121_v48, 4 }
 0x455   :  { %3642 = vmatmul.msk.f32.vlgmr.msrb.gmra.mxu1 %vm2344_vm12, %v2330_v63  ;;  %3647 = vmatpush.msk.msrb.mxu0 %vm2348_vm10, %v1103_v20  ;;  %3801 = vrcp.f32 %v2246_v17  ;;  %v2329_v58 = vmul.f32 %v3796_v40, %v4924_v35  ;;  %v1149_v35 = vperm.slane %v4666_v50, %v4073_v23  ;;  %v1153_v50 = vperm.slane %v4672_v11, %v4073_v23 }
 0x456   :  { %3651 = vmatpush.msk.msra.mxu2 %vm2348_vm10, %v1105_v7  ;;  %3657 = vmatpush.msk.msrb.mxu1 %vm2348_vm10, %v1125_v26  ;;  %v1127_v39 = vsel %vm198_vm8, 0.0, %v1126_v18 }
 0x459   :  { %v3798_v44 = vpop.eup %3797 }
 0x45a   :  { %v3800_v0 = vpop.eup %3799  ;;  %v2328_v60 = vmul.f32 %v3798_v44, %v4943_v31 }
 0x45b   :  { %v2331_v25 = vmul.f32 %v3800_v0, %v4947_v33  ;;  %v2249_v8 = vpop.xlane.xlu1 %2248  ;;  %v3802_v31 = vpop.eup %3801  ;;  %v1154_v33 = vrot.slane %v1149_v35, 4 }
 0x45c   :  { %3803 = vrcp.f32 %v2249_v8  ;;  %3638 = vmatmul.msk.f32.vlgmr.msrb.gmra.mxu3 %vm2344_vm12, %v2328_v60  ;;  %3640 = vmatmul.msk.f32.vlgmr.msra.gmra.mxu0 %vm2344_vm12, %v2329_v58  ;;  %v2332_v15 = vmul.f32 %v3802_v31, %v4941_v59  ;;  %v1156_v59 = vrot.slane %v1153_v50, 4 }
 0x45d   :  { %3644 = vmatmul.msk.f32.vlgmr.msrb.gmra.mxu2 %vm2344_vm12, %v2331_v25  ;;  %3653 = vmatpush.msk.msrb.mxu3 %vm2348_vm10, %v1121_v48  ;;  %v1155_v28 = vsel %vm198_vm8, 0.0, %v1154_v33 }
 0x45e   :  { %3655 = vmatpush.msk.msra.mxu0 %vm2348_vm10, %v1127_v39  ;;  %3659 = vmatpush.msk.msrb.mxu2 %vm2348_vm10, %v1129_v14  ;;  %v1157_v11 = vsel %vm198_vm8, 0.0, %v1156_v59 }
 0x462   :  { %v3804_v56 = vpop.eup %3803  ;;  %v2255_v42 = vpop.xlane.xlu2 %2254 }
 0x463   :  { %v2333_v52 = vmul.f32 %v3804_v56, %v4955_v43  ;;  %3805 = vrcp.f32 %v2255_v42  ;;  %v2258_v32 = vpop.xlane.xlu1 %2257 }
 0x464   :  { %3807 = vrcp.f32 %v2258_v32  ;;  %3646 = vmatmul.msk.f32.vlgmr.msra.gmra.mxu3 %vm2344_vm12, %v2332_v15 }
 0x465   :  { %3648 = vmatmul.msk.f32.vlgmr.msrb.gmra.mxu0 %vm2344_vm12, %v2333_v52  ;;  %3661 = vmatpush.msk.msra.mxu3 %vm2348_vm10, %v1149_v35 }
 0x466   :  { %3663 = vmatpush.msk.msrb.mxu0 %vm2348_vm10, %v1155_v28 }
 0x469   :  { %v3806_v9 = vpop.eup %3805 }
 0x46a   :  { %v3808_v46 = vpop.eup %3807  ;;  %v2335_v43 = vmul.f32 %v3806_v9, %v4965_v61  ;;  %v2267_v34 = vpop.xlane.xlu0 %2266 }
 0x46b   :  { %v2252_v2 = vpop.xlane.xlu2 %2251  ;;  %v2336_v37 = vmul.f32 %v3808_v46, %v4961_v22  ;;  %3809 = vrcp.f32 %v2267_v34 }
 0x46c   :  { %3811 = vrcp.f32 %v2252_v2  ;;  %3652 = vmatmul.msk.f32.vlgmr.msra.gmra.mxu2 %vm2344_vm12, %v2335_v43 }
 0x46d   :  { %3654 = vmatmul.msk.f32.vlgmr.msrb.gmra.mxu3 %vm2344_vm12, %v2336_v37  ;;  %3667 = vmatpush.msk.msra.mxu2 %vm2348_vm10, %v1157_v11 }
 0x471   :  { %v3810_v45 = vpop.eup %3809 }
 0x472   :  { %v3812_v24 = vpop.eup %3811  ;;  %v2339_v19 = vmul.f32 %v3810_v45, %v4977_v6  ;;  %v2264_v27 = vpop.xlane.xlu0 %2263 }
 0x473   :  { %v2261_v61 = vpop.xlane.xlu2 %2260  ;;  %v2334_v57 = vmul.f32 %v3812_v24, %v4972_v53  ;;  %3813 = vrcp.f32 %v2264_v27  ;;  %v2279_v22 = vpop.xlane.xlu1 %2278 }
 0x474   :  { %3815 = vrcp.f32 %v2261_v61  ;;  %3660 = vmatmul.msk.f32.vlgmr.msrb.gmra.mxu2 %vm2344_vm12, %v2339_v19 }
 0x475   :  { %3817 = vrcp.f32 %v2279_v22  ;;  %3650 = vmatmul.msk.f32.vlgmr.msra.gmra.mxu1 %vm2344_vm12, %v2334_v57 }
 0x476   :  { %3665 = vmatpush.msk.msra.mxu1 %vm2348_vm10, %v1153_v50 }
 0x479   :  { %v3814_v49 = vpop.eup %3813 }
 0x47a   :  { %v3816_v30 = vpop.eup %3815  ;;  %v2338_v41 = vmul.f32 %v3814_v49, %v4987_v51  ;;  %v2273_v29 = vpop.xlane.xlu0 %2272 }
 0x47b   :  { %v2270_v6 = vpop.xlane.xlu2 %2269  ;;  %v3818_v55 = vpop.eup %3817  ;;  %v2337_v12 = vmul.f32 %v3816_v30, %v4985_v3  ;;  %3819 = vrcp.f32 %v2273_v29 }
 0x47c   :  { %v2276_v53 = vpop.xlane.xlu1 %2275  ;;  %v2343_v62 = vmul.f32 %v3818_v55, %v4989_v54  ;;  %3821 = vrcp.f32 %v2270_v6 }
 0x47d   :  { %3823 = vrcp.f32 %v2276_v53  ;;  %3656 = vmatmul.msk.f32.vlgmr.msra.gmra.mxu0 %vm2344_vm12, %v2337_v12  ;;  %3658 = vmatmul.msk.f32.vlgmr.msrb.gmra.mxu1 %vm2344_vm12, %v2338_v41 }
 0x47e   :  { %3668 = vmatmul.msk.f32.vlgmr.msra.gmra.mxu2 %vm2344_vm12, %v2343_v62 }
 0x481   :  { %v3820_v4 = vpop.eup %3819 }
 0x482   :  { %v3822_v21 = vpop.eup %3821  ;;  %v2341_v51 = vmul.f32 %v3820_v4, %v4997_v10 }
 0x483   :  { %v3824_v36 = vpop.eup %3823  ;;  %v2340_v13 = vmul.f32 %v3822_v21, %v4999_v1 }
 0x484   :  { %v2342_v3 = vmul.f32 %v3824_v36, %v5001_v38 }
 0x485   :  { %3662 = vmatmul.msk.f32.vlgmr.msra.gmra.mxu3 %vm2344_vm12, %v2340_v13  ;;  %3664 = vmatmul.msk.f32.vlgmr.msrb.gmra.mxu0 %vm2344_vm12, %v2341_v51 }
 0x486   :  { %3666 = vmatmul.msk.f32.vlgmr.msra.gmra.mxu1 %vm2344_vm12, %v2342_v3 }
 0x495   :  { %v2421_v20 = vpop.f32.mrf.mxu1 }
 0x496   :  { %v3178_v61 = vrot.slane %v2421_v20, 4 }
 0x4a3   :  { %v2447_v54 = vpop.f32.mrf.mxu2 }
 0x4a4   :  { %v2369_v47 = vpop.f32.mrf.mxu3  ;;  %v3184_v33 = vrot.slane %v2447_v54, 4 }
 0x4a5   :  { %v2395_v63 = vpop.f32.mrf.mxu0  ;;  %v3179_v6 = vsel %vm198_vm8, %v3178_v61, %v2369_v47 }
 0x4a6   :  { %v3185_v46 = vsel %vm198_vm8, %v3184_v33, %v2395_v63  ;;  %v3183_v20 = vperm.slane %v3179_v6, %v4050_v5 }
 0x4a7   :  { %v3189_v24 = vperm.slane %v3185_v46, %v4050_v5 }
 0x4a9   :  { %v3190_v62 = vrot.slane %v3189_v24, 4 }
 0x4ad   :  { %v2499_v7 = vpop.f32.mrf.mxu0 }
 0x4ae   :  { %v2525_v17 = vpop.f32.mrf.mxu1 }
 0x4af   :  { %v3198_v57 = vrot.slane %v2525_v17, 4 }
 0x4b5   :  { %v2603_v40 = vpop.f32.mrf.mxu0 }
 0x4b7   :  { %v2473_v48 = vpop.f32.mrf.mxu3 }
 0x4b8   :  { %v3199_v55 = vsel %vm198_vm8, %v3198_v57, %v2473_v48 }
 0x4b9   :  { %v2629_v1 = vpop.f32.mrf.mxu1  ;;  %v3203_v47 = vperm.slane %v3199_v55, %v4050_v5 }
 0x4ba   :  { %v3218_v52 = vrot.slane %v2629_v1, 4  ;;  %v3191_v1 = vsel %vm198_vm8, %v3190_v62, %v3183_v20 }
 0x4bf   :  { %v2577_v44 = vpop.f32.mrf.mxu3 }
 0x4c0   :  { %v3219_v43 = vsel %vm198_vm8, %v3218_v52, %v2577_v44 }
 0x4c1   :  { %v3223_v19 = vperm.slane %v3219_v43, %v4050_v5 }
 0x4c2   :  { %v2733_v0 = vpop.f32.mrf.mxu1 }
 0x4c3   :  { %v3238_v28 = vrot.slane %v2733_v0, 4 }
 0x4c7   :  { %v2551_v26 = vpop.f32.mrf.mxu2  ;;  %v2681_v16 = vpop.f32.mrf.mxu3 }
 0x4c8   :  { %v3204_v56 = vrot.slane %v2551_v26, 4  ;;  %v3239_v37 = vsel %vm198_vm8, %v3238_v28, %v2681_v16 }
 0x4c9   :  { %v3243_v22 = vperm.slane %v3239_v37, %v4050_v5 }
 0x4ca   :  { %v3205_v34 = vsel %vm198_vm8, %v3204_v56, %v2499_v7 }
 0x4cb   :  { %v3209_v27 = vperm.slane %v3205_v34, %v4050_v5 }
 0x4cd   :  { %v3210_v4 = vrot.slane %v3209_v27, 4 }
 0x4cf   :  { %v2655_v10 = vpop.f32.mrf.mxu2  ;;  %v3211_v0 = vsel %vm198_vm8, %v3210_v4, %v3203_v47 }
 0x4d0   :  { %v3224_v8 = vrot.slane %v2655_v10, 4  ;;  %v3215_v56 = vperm.slane %v3211_v0, %v4073_v23 }
 0x4d1   :  { %v2707_v18 = vpop.f32.mrf.mxu0 }
 0x4d2   :  { %v2837_v39 = vpop.f32.mrf.mxu1  ;;  %v3225_v35 = vsel %vm198_vm8, %v3224_v8, %v2603_v40 }
 0x4d3   :  { %v3229_v42 = vperm.slane %v3225_v35, %v4050_v5  ;;  %v3258_v3 = vrot.slane %v2837_v39, 4 }
 0x4d5   :  { %v3230_v11 = vrot.slane %v3229_v42, 4 }
 0x4d7   :  { %v2759_v38 = vpop.f32.mrf.mxu2  ;;  %v3231_v41 = vsel %vm198_vm8, %v3230_v11, %v3223_v19 }
 0x4d8   :  { %v3244_v14 = vrot.slane %v2759_v38, 4  ;;  %v3235_v13 = vperm.slane %v3231_v41, %v4073_v23 }
 0x4d9   :  { %v2811_v58 = vpop.f32.mrf.mxu0 }
 0x4da   :  { %v3245_v31 = vsel %vm198_vm8, %v3244_v14, %v2707_v18  ;;  %v3195_v14 = vperm.slane %v3191_v1, %v4073_v23 }
 0x4db   :  { %v3249_v32 = vperm.slane %v3245_v31, %v4050_v5 }
 0x4dd   :  { %v3250_v45 = vrot.slane %v3249_v32, 4 }
 0x4df   :  { %v2785_v25 = vpop.f32.mrf.mxu3  ;;  %v3251_v12 = vsel %vm198_vm8, %v3250_v45, %v3243_v22  ;;  %v3216_v22 = vrot.slane %v3215_v56, 4 }
 0x4e0   :  { %v2863_v60 = vpop.f32.mrf.mxu2  ;;  %v3255_v26 = vperm.slane %v3251_v12, %v4073_v23  ;;  %v3259_v17 = vsel %vm198_vm8, %v3258_v3, %v2785_v25 }
 0x4e1   :  { %v3264_v2 = vrot.slane %v2863_v60, 4  ;;  %v3263_v8 = vperm.slane %v3259_v17, %v4050_v5  ;;  %v3217_v3 = vsel %vm198_vm8, 0.0, %v3216_v22 }
 0x4e2   :  { %v2915_v50 = vpop.f32.mrf.mxu0  ;;  %v3256_v60 = vrot.slane %v3255_v26, 4 }
 0x4e3   :  { %v3265_v49 = vsel %vm198_vm8, %v3264_v2, %v2811_v58  ;;  %v3236_v58 = vrot.slane %v3235_v13, 4  ;;  %v3196_v2 = vrot.slane %v3195_v14, 4 }
 0x4e4   :  { %v3269_v21 = vperm.slane %v3265_v49, %v4050_v5  ;;  %v3343_v34 = vsel %vm198_vm8, %v3256_v60, %v3215_v56  ;;  %v3257_v11 = vsel %vm198_vm8, 0.0, %v3256_v60 }
 0x4e5   :  { %v3237_v32 = vsel %vm198_vm8, 0.0, %v3236_v58  ;;  %v3338_v28 = vsel %vm198_vm8, %v3236_v58, %v3195_v14  ;;  %v3347_v57 = vperm.slane %v3343_v34, %v4050_v5  ;;  %v3197_v41 = vsel %vm198_vm8, 0.0, %v3196_v2 }
 0x4e6   :  { %v3270_v18 = vrot.slane %v3269_v21, 4  ;;  %v3342_v24 = vperm.slane %v3338_v28, %v4050_v5  ;;  %v3390_v19 = vrot.slane %v3237_v32, 4 }
 0x4e7   :  { %v2889_v59 = vpop.f32.mrf.mxu3 }
 0x4e8   :  { %v3360_v4 = vrot.slane %v3342_v24, 4  ;;  %v3391_v13 = vsel %vm198_vm8, %v3390_v19, %v3197_v41 }
 0x4ef   :  { %v2967_v15 = vpop.f32.mrf.mxu2 }
 0x4f0   :  { %v3284_v53 = vrot.slane %v2967_v15, 4  ;;  %v2993_v7 = vpop.f32.mrf.mxu3  ;;  %v3271_v15 = vsel %vm198_vm8, %v3270_v18, %v3263_v8 }
 0x4f1   :  { %v3275_v37 = vperm.slane %v3271_v15, %v4073_v23 }
 0x4f2   :  { %v2941_v9 = vpop.f32.mrf.mxu1  ;;  %v3285_v10 = vsel %vm198_vm8, %v3284_v53, %v2915_v50 }
 0x4f3   :  { %v3278_v40 = vrot.slane %v2941_v9, 4  ;;  %v3289_v39 = vperm.slane %v3285_v10, %v4050_v5  ;;  %v3276_v6 = vrot.slane %v3275_v37, 4 }
 0x4f5   :  { %v3279_v35 = vsel %vm198_vm8, %v3278_v40, %v2889_v59  ;;  %v3290_v9 = vrot.slane %v3289_v39, 4  ;;  %v3277_v20 = vsel %vm198_vm8, 0.0, %v3276_v6 }
 0x4f6   :  { %v3283_v46 = vperm.slane %v3279_v35, %v4050_v5 }
 0x4f7   :  { %v3071_v30 = vpop.f32.mrf.mxu2 }
 0x4f8   :  { %v3304_v29 = vrot.slane %v3071_v30, 4  ;;  %v3291_v49 = vsel %vm198_vm8, %v3290_v9, %v3283_v46 }
 0x4f9   :  { %v3295_v21 = vperm.slane %v3291_v49, %v4073_v23 }
 0x4fa   :  { %v3019_v51 = vpop.f32.mrf.mxu0  ;;  %v3045_v36 = vpop.f32.mrf.mxu1 }
 0x4fb   :  { %v3305_v54 = vsel %vm198_vm8, %v3304_v29, %v3019_v51  ;;  %v3298_v63 = vrot.slane %v3045_v36, 4  ;;  %v3396_v29 = vrot.slane %v3257_v11, 4  ;;  %v3358_v36 = vrot.slane %v3347_v57, 4 }
 0x4fc   :  { %v3309_v48 = vperm.slane %v3305_v54, %v4050_v5  ;;  %v3296_v10 = vrot.slane %v3295_v21, 4 }
 0x4fd   :  { %v3299_v44 = vsel %vm198_vm8, %v3298_v63, %v2993_v7  ;;  %v3361_v63 = vsel %vm198_vm8, %v3347_v57, %v3360_v4  ;;  %v3397_v26 = vsel %vm198_vm8, %v3396_v29, %v3217_v3  ;;  %v3359_v1 = vsel %vm198_vm8, %v3358_v36, %v3342_v24  ;;  %v3479_v4 = vld [vmem:[#allocation7 + $0x8] sm:$0xff] }
 0x4fe   :  { %v3310_v38 = vrot.slane %v3309_v48, 4  ;;  %v3303_v16 = vperm.slane %v3299_v44, %v4050_v5  ;;  %v3395_v48 = vperm.slane %v3391_v13, %v4050_v5  ;;  %v3369_v44 = vperm.slane %v3361_v63, %v4073_v23 }
 0x4ff   :  { %v3401_v18 = vperm.slane %v3397_v26, %v4050_v5  ;;  %v3365_v39 = vperm.slane %v3359_v1, %v4073_v23  ;;  %v3297_v14 = vsel %vm198_vm8, 0.0, %v3296_v10  ;;  %v3690_v10 = vld [vmem:[%s5250_s4] ss:$0 sm:$0xff] }
 0x500   :  { %v3311_v25 = vsel %vm198_vm8, %v3310_v38, %v3303_v16  ;;  %v3416_v35 = vrot.slane %v3395_v48, 4  ;;  %v3825_v1 = vld [vmem:[#allocation2] sm:$0xff] }
 0x501   :  { %v3315_v31 = vperm.slane %v3311_v25, %v4073_v23  ;;  %v3175_v33 = vpop.f32.mrf.mxu2  ;;  %v3388_v25 = vrot.slane %v3369_v44, 4  ;;  %v3414_v15 = vrot.slane %v3401_v18, 4  ;;  %v3384_v9 = vrot.slane %v3365_v39, 4 }
 0x502   :  { %v3324_v42 = vrot.slane %v3175_v33, 4  ;;  %v3123_v52 = vpop.f32.mrf.mxu0  ;;  %v3417_v32 = vsel %vm198_vm8, %v3401_v18, %v3416_v35 }
 0x503   :  { %v3316_v50 = vrot.slane %v3315_v31, 4  ;;  %v3149_v59 = vpop.f32.mrf.mxu1  ;;  %v3425_v2 = vperm.slane %v3417_v32, %v4073_v23 }
 0x504   :  { %v3325_v43 = vsel %vm198_vm8, %v3324_v42, %v3123_v52  ;;  %v3318_v61 = vrot.slane %v3149_v59, 4 }
 0x505   :  { %v3329_v45 = vperm.slane %v3325_v43, %v4050_v5  ;;  %v3317_v27 = vsel %vm198_vm8, 0.0, %v3316_v50  ;;  %v3348_v51 = vsel %vm198_vm8, %v3316_v50, %v3275_v37  ;;  %v3415_v37 = vsel %vm198_vm8, %v3414_v15, %v3395_v48 }
 0x506   :  { %v3402_v12 = vrot.slane %v3317_v27, 4  ;;  %v3352_v7 = vperm.slane %v3348_v51, %v4050_v5  ;;  %v3444_v49 = vrot.slane %v3425_v2, 4 }
 0x507   :  { %v3330_v53 = vrot.slane %v3329_v45, 4 }
 0x508   :  { %v3097_v30 = vpop.f32.mrf.mxu3  ;;  %v3403_v17 = vsel %vm198_vm8, %v3402_v12, %v3277_v20  ;;  %v3372_v8 = vrot.slane %v3352_v7, 4 }
 0x509   :  { %v3319_v55 = vsel %vm198_vm8, %v3318_v61, %v3097_v30  ;;  %v3407_v0 = vperm.slane %v3403_v17, %v4050_v5  ;;  %v3421_v61 = vperm.slane %v3415_v37, %v4073_v23 }
 0x50a   :  { %v3323_v62 = vperm.slane %v3319_v55, %v4050_v5 }
 0x50b   :  { %v3428_v50 = vrot.slane %v3407_v0, 4  ;;  %v3440_v6 = vrot.slane %v3421_v61, 4 }
 0x50c   :  { %v3331_v54 = vsel %vm198_vm8, %v3330_v53, %v3323_v62  ;;  %v3481_v62 = vld [vmem:[#allocation7 + $0x18] sm:$0xff] }
 0x50d   :  { %v3335_v47 = vperm.slane %v3331_v54, %v4073_v23  ;;  %3504 = vmatpush.msrb.mxu3 %v3481_v62 }
 0x50f   :  { %v3336_v40 = vrot.slane %v3335_v47, 4 }
 0x511   :  { %v3337_v38 = vsel %vm198_vm8, 0.0, %v3336_v40  ;;  %v3353_v16 = vsel %vm198_vm8, %v3336_v40, %v3295_v21  ;;  %v3478_v21 = vld [vmem:[#allocation7] sm:$0xff] }
 0x512   :  { %v3408_v58 = vrot.slane %v3337_v38, 4  ;;  %v3357_v60 = vperm.slane %v3353_v16, %v4050_v5 }
 0x514   :  { %v3373_v31 = vsel %vm198_vm8, %v3357_v60, %v3372_v8  ;;  %v3370_v33 = vrot.slane %v3357_v60, 4  ;;  %v3409_v56 = vsel %vm198_vm8, %v3408_v58, %v3297_v14 }
 0x515   :  { %v3381_v42 = vperm.slane %v3373_v31, %v4073_v23  ;;  %v3413_v52 = vperm.slane %v3409_v56, %v4050_v5 }
 0x516   :  { %v3371_v28 = vsel %vm198_vm8, %v3370_v33, %v3352_v7 }
 0x517   :  { %v3389_v46 = vsel %vm198_vm8, %v3381_v42, %v3388_v25  ;;  %v3386_v43 = vrot.slane %v3381_v42, 4  ;;  %v3377_v59 = vperm.slane %v3371_v28, %v4073_v23  ;;  %v3429_v34 = vsel %vm198_vm8, %v3413_v52, %v3428_v50 }
 0x518   :  { %3464 = vrot.lane.b32.xlu1 %v3389_v46, %s3942_s23  ;;  %v3426_v5 = vrot.slane %v3413_v52, 4  ;;  %v3437_v19 = vperm.slane %v3429_v34, %v4073_v23 }
 0x519   :  { %v3387_v11 = vsel %vm198_vm8, %v3386_v43, %v3369_v44  ;;  %v3385_v45 = vsel %vm198_vm8, %v3377_v59, %v3384_v9  ;;  %v3382_v24 = vrot.slane %v3377_v59, 4 }
 0x51a   :  { %3456 = vrot.lane.b32.xlu0 %v3387_v11, %s3943_s24  ;;  %3448 = vrot.lane.b32.xlu2 %v3385_v45, %s3931_s10  ;;  %v3427_v27 = vsel %vm198_vm8, %v3426_v5, %v3407_v0  ;;  %v3442_v30 = vrot.slane %v3437_v19, 4  ;;  %v3445_v29 = vsel %vm198_vm8, %v3437_v19, %v3444_v49  ;;  %v3826_v0 = vld [vmem:[#allocation2 + $0x8] sm:$0xff] }
 0x51b   :  { %v3433_v57 = vperm.slane %v3427_v27, %v4073_v23  ;;  %v3383_v22 = vsel %vm198_vm8, %v3382_v24, %v3365_v39  ;;  %v3480_v23 = vld [vmem:[#allocation7 + $0x10] sm:$0xff] }
 0x51c   :  { %v3443_v12 = vsel %vm198_vm8, %v3442_v30, %v3425_v2  ;;  %3505 = vmatpush.msrb.mxu3 %v3480_v23 }
 0x51d   :  { %v3438_v41 = vrot.slane %v3433_v57, 4  ;;  %v3441_v53 = vsel %vm198_vm8, %v3433_v57, %v3440_v6 }
 0x51e   :  { %3506 = vmatpush.msrb.mxu3 %v3479_v4 }
 0x51f   :  { %v3439_v55 = vsel %vm198_vm8, %v3438_v41, %v3421_v61 }
 0x520   :  { %3466 = vrot.lane.b32.xlu1 %v3445_v29, %s3942_s23  ;;  %3507 = vmatpush.msrb.mxu3 %v3478_v21 }
 0x522   :  { %3458 = vrot.lane.b32.xlu2 %v3443_v12, %s3943_s24  ;;  %3450 = vrot.lane.b32.xlu0 %v3441_v53, %s3931_s10 }
 0x574   :  { %v3449_v51 = vpop.permute.xlu2 %3448 }
 0x575   :  { %v3470_v36 = vsel %vm1158_vm9, %v3383_v22, %v3449_v51 }
 0x57c   :  { %v3459_v47 = vpop.permute.xlu2 %3458 }
 0x58a   :  { %v3465_v13 = vpop.permute.xlu1 %3464 }
 0x58c   :  { %v3457_v3 = vpop.permute.xlu0 %3456 }
 0x58d   :  { %v3473_v54 = vsel %vm3472_vm13, %v3470_v36, %v3457_v3 }
 0x58e   :  { %v3476_v63 = vsel %vm3475_vm14, %v3473_v54, %v3465_v13 }
 0x58f   :  { %3669 = vmatmul.msk.f32.vlgmr.msrb.gmra.mxu3 %vm76_vm0, %v3476_v63 }
 0x592   :  { %v3467_v7 = vpop.permute.xlu1 %3466 }
 0x594   :  { %v3451_v20 = vpop.permute.xlu0 %3450 }
 0x595   :  { %v3471_v26 = vsel %vm1158_vm9, %v3439_v55, %v3451_v20 }
 0x596   :  { %v3474_v48 = vsel %vm3472_vm13, %v3471_v26, %v3459_v47 }
 0x597   :  { %v3477_v17 = vsel %vm3475_vm14, %v3474_v48, %v3467_v7 }
 0x598   :  { %3670 = vmatmul.msk.f32.gmra.mxu3 %vm76_vm0, %v3477_v17 }
 0x612   :  { %v3509_v40 = vpop.f32.mrf.mxu3 }
 0x613   :  { %v3510_v44 = vadd.f32 %v3690_v10, %v3509_v40 }
 0x615   :  { %v3515_v18 = vadd.f32 %v3825_v1, %v3510_v44 }
 0x617   :  { %3517 = vst.msk [vmem:[#allocation8] sm:$0xff] %vm76_vm0, %v3515_v18 }
 0x61b   :  { %v3512_v38 = vpop.f32.mrf.mxu3 }
 0x61c   :  { %v3513_v16 = vadd.f32 %v3690_v10, %v3512_v38 }
 0x61e   :  { %v3516_v58 = vadd.f32 %v3826_v0, %v3513_v16 }
 0x620   :  { %3518 = vst.msk [vmem:[#allocation8 + $0x8] sm:$0xff] %vm76_vm0, %v3516_v58 }
 0x621   :  { %3531 = dma.vmem_to_hbm [thread:$0]  %s3524_s28, 256, %s3526_s8, [#allocation4], %s3930_s9, %s3930_s9, %s3931_s10  }
 0x622   :  { %3927 = dma.done.wait [#allocation4], 256  }
 0x623   :  { %3928 = vsyncadd [#allocation4], 4294967040 }
 0x624   :  { %3536 = vsyncpa [#allocation3], 1 }
 0x625   :  { %3537 = vsyncpa [#allocation6], 1 }
 0x626   :  { %3538 = vsyncpa [#allocation4], 1 }

// kernel: tpu_custom_call.1
= control target key start
LH: loop header
LB: loop body
LE: loop exit
PB: predicated region body
PF: predicated region fallthrough
CT: control target
= control target key end

     0   :  { %12 = vsyncpa [#allocation3], 0  ;;  %s5246_s0 = inlined_call_operand.hbm [shape: f32[2,8,32], index: 0, kind: input, shape index: {}]   ;;  %s5247_s1 = inlined_call_operand.hbm [shape: f32[32,96], index: 1, kind: input, shape index: {}]   ;;  %s5248_s2 = inlined_call_operand.vmem [shape: f32[1,96], index: 2, kind: input, shape index: {}]   ;;  %s5249_s3 = inlined_call_operand.hbm [shape: f32[32,32], index: 3, kind: input, shape index: {}]   ;;  %s5250_s4 = inlined_call_operand.vmem [shape: f32[1,32], index: 4, kind: input, shape index: {}]   ;;  %s5251_s5 = inlined_call_operand.vmem [shape: f32[1,32], index: 5, kind: input, shape index: {}]   ;;  %s5252_s6 = inlined_call_operand.vmem [shape: f32[1,32], index: 6, kind: input, shape index: {}]   ;;  %s5253_s7 = inlined_call_operand.hbm [shape: f32[2,8,32], index: 7, kind: output, shape index: {}]  }
   0x1   :  { %13 = vsyncpa [#allocation6], 0 }
   0x2   :  { %14 = vsyncpa [#allocation4], 0  ;;  %s32_s26 = sshll.u32 %s5247_s1, 4  ;;  %s3929_s27 = smov [#allocation5]   ;;  %s33_s26 = int_to_ptr.hbm [resolvable:$true] %s32_s26 }
   0x3   :  { %s34_s28 = sshll.u32 %s3929_s27, 4  ;;  %s19_s8 = sshll.u32 %s5246_s0, 4  ;;  %s35_s28 = int_to_ptr.vmem [resolvable:$true] %s34_s28  ;;  %s20_s8 = int_to_ptr.hbm [resolvable:$true] %s19_s8 }
   0x4   :  { %s3930_s9 = smov 128   ;;  %s3931_s10 = smov 8  }
   0x5   :  { %40 = dma.hbm_to_vmem [thread:$0]  %s33_s26, 512, %s35_s28, [#allocation6], %s3930_s9, %s3930_s9, %s3931_s10  }
   0x6   :  { %s3932_s11 = smov [#allocation2]   ;;  %s47_s1 = sshll.u32 %s5249_s3, 4  ;;  %s48_s1 = int_to_ptr.hbm [resolvable:$true] %s47_s1 }
   0x7   :  { %s21_s12 = sshll.u32 %s3932_s11, 4  ;;  %s3933_s0 = smov [#allocation7]   ;;  %s22_s12 = int_to_ptr.vmem [resolvable:$true] %s21_s12 }
   0x8   :  { %27 = dma.hbm_to_vmem [thread:$0]  %s20_s8, 256, %s22_s12, [#allocation3], %s3930_s9, %s3930_s9, %s3931_s10  }
   0x9   :  { %s49_s15 = sshll.u32 %s3933_s0, 4  ;;  %s50_s15 = int_to_ptr.vmem [resolvable:$true] %s49_s15 }
   0xa   :  { %55 = dma.hbm_to_vmem [thread:$0]  %s48_s1, 512, %s50_s15, [#allocation6], %s3930_s9, %s3930_s9, %s3931_s10  }
   0xb   :  { %3923 = dma.done.wait [#allocation3], 256  }
   0xc   :  { %3924 = vsyncadd [#allocation3], 4294967040 }
   0xd   :  { %3925 = dma.done.wait [#allocation6], 1024  }
   0xe   :  { %3926 = vsyncadd [#allocation6], 4294966272  ;;  %vm76_vm0 = vcmask 261120   ;;  %v74_v0 = vld [vmem:[#allocation2] sm:$0xff]  ;;  %v75_v2 = vld [vmem:[#allocation2 + $0x8] sm:$0xff]  ;;  %v3934_v4 = vmov 32.0  }
   0xf   :  { %v77_v1 = vsel %vm76_vm0, %v74_v0, 0.0  ;;  %v80_v3 = vsel %vm76_vm0, %v75_v2, 0.0  ;;  %3691 = vrcp.f32 %v3934_v4  ;;  %v143_v21 = vld [vmem:[#allocation5 + $0x18] sm:$0xff]  ;;  %v142_v22 = vld [vmem:[#allocation5 + $0x10] sm:$0xff]  ;;  %v141_v23 = vld [vmem:[#allocation5 + $0x8] sm:$0xff]  ;;  %s3936_s20 = smov 112  }
  0x10   :  { %78 = vadd.xlane.f32.xlu0 %v77_v1  ;;  %166 = vmatpush.msra.mxu0 %v143_v21  ;;  %v140_v24 = vld [vmem:[#allocation5] sm:$0xff]  ;;  %v3687_v39 = vld [vmem:[%s5251_s5] ss:$0 sm:$0xff]  ;;  %s3937_s21 = smov 96   ;;  %s3938_s22 = smov 120   ;;  %vm198_vm8 = vcmask 1047556  }
  0x11   :  { %v3688_v43 = vld [vmem:[%s5252_s6] ss:$0 sm:$0xff]  ;;  %s3935_s6 = smov 104   ;;  %vm1158_vm9 = vcmask 64512   ;;  %vm2348_vm10 = vcmask 1041408   ;;  %vm1991_vm11 = vcmask 9216  }
  0x12   :  { %167 = vmatpush.msra.mxu0 %v142_v22  ;;  %v3689_v53 = vld [vmem:[%s5248_s2] ss:$0 sm:$0xff]  ;;  %s3941_s2 = smov 64   ;;  %vm2344_vm12 = vcmask 15360   ;;  %s3942_s23 = smov 24   ;;  %vm3472_vm13 = vcmask 130048  }
  0x13   :  { %s3943_s24 = smov 16   ;;  %vm3475_vm14 = vcmask 195584   ;;  %s3944_s27 = smov [#allocation8]  }
  0x14   :  { %168 = vmatpush.msra.mxu0 %v141_v23  ;;  %s3523_s28 = sshll.u32 %s3944_s27, 4  ;;  %s3525_s8 = sshll.u32 %s5253_s7, 4  ;;  %s3524_s28 = int_to_ptr.vmem [resolvable:$true] %s3523_s28  ;;  %s3526_s8 = int_to_ptr.hbm [resolvable:$true] %s3525_s8 }
  0x15   :  { %v3692_v5 = vpop.eup %3691 }
  0x16   :  { %v84_v6 = vmul.f32 32.0, %v3692_v5  ;;  %vm88_vm1 = vweird.f32 %v3692_v5  ;;  %169 = vmatpush.msra.mxu0 %v140_v24 }
  0x18   :  { %81 = vadd.xlane.f32.xlu0 %v80_v3  ;;  %v85_v7 = vsub.f32 1.0, %v84_v6 }
  0x1a   :  { %v86_v8 = vmul.f32 %v3692_v5, %v85_v7 }
  0x1c   :  { %v87_v9 = vadd.f32 %v3692_v5, %v86_v8 }
  0x1e   :  { %v89_v10 = vsel %vm88_vm1, %v3692_v5, %v87_v9  ;;  %v3940_v9 = vmov 1934713408  }
  0x83   :  { %v79_v11 = vpop.xlane.xlu0 %78 }
  0x84   :  { %v90_v12 = vmul.f32 %v89_v10, %v79_v11 }
  0x86   :  { %v92_v13 = vsub.f32 %v74_v0, %v90_v12  ;;  %v3939_v0 = vmov 1983009808  }
  0x87   :  { %v203_v1 = vunpack.c.l.s4 %v3939_v0 }
  0x88   :  { %v94_v14 = vmul.f32 %v92_v13, %v92_v13 }
  0x89   :  { %v4050_v5 = vunpack.c.0.s8 %v203_v1 }
  0x8a   :  { %v96_v15 = vsel %vm76_vm0, %v94_v14, 0.0 }
  0x8b   :  { %97 = vadd.xlane.f32.xlu1 %v96_v15  ;;  %v82_v16 = vpop.xlane.xlu0 %81 }
  0x8c   :  { %v91_v17 = vmul.f32 %v89_v10, %v82_v16 }
  0x8e   :  { %v93_v18 = vsub.f32 %v75_v2, %v91_v17 }
  0x90   :  { %v95_v19 = vmul.f32 %v93_v18, %v93_v18 }
  0x92   :  { %v99_v20 = vsel %vm76_vm0, %v95_v19, 0.0 }
  0x93   :  { %100 = vadd.xlane.f32.xlu1 %v99_v20 }
  0xfe   :  { %v98_v25 = vpop.xlane.xlu1 %97 }
  0xff   :  { %v102_v26 = vmul.f32 %v98_v25, %v89_v10 }
 0x101   :  { %v104_v27 = vadd.f32 1e-06, %v102_v26 }
 0x103   :  { %3693 = vrsqrt.f32 %v104_v27  ;;  %vm112_vm3 = vweird.f32 %v104_v27 }
 0x106   :  { %v101_v28 = vpop.xlane.xlu1 %100 }
 0x107   :  { %v103_v29 = vmul.f32 %v101_v28, %v89_v10  ;;  %v227_v10 = vunpack.c.l.s4 %v3940_v9 }
 0x109   :  { %v3694_v30 = vpop.eup %3693  ;;  %v105_v31 = vadd.f32 1e-06, %v103_v29  ;;  %v4073_v23 = vunpack.c.0.s8 %v227_v10 }
 0x10a   :  { %v107_v32 = vmul.f32 %v3694_v30, %v104_v27  ;;  %vm113_vm2 = vweird.f32 %v3694_v30 }
 0x10b   :  { %3695 = vrsqrt.f32 %v105_v31  ;;  %vm114_vm4 = vmor %vm112_vm3, %vm113_vm2  ;;  %vm122_vm6 = vweird.f32 %v105_v31 }
 0x10c   :  { %v108_v33 = vmul.f32 %v3694_v30, %v107_v32 }
 0x10e   :  { %v109_v34 = vmul.f32 0.5, %v108_v33 }
 0x110   :  { %v110_v35 = vsub.f32 1.5, %v109_v34 }
 0x111   :  { %v3696_v36 = vpop.eup %3695 }
 0x112   :  { %v111_v37 = vmul.f32 %v3694_v30, %v110_v35  ;;  %v117_v38 = vmul.f32 %v3696_v36, %v105_v31  ;;  %vm123_vm5 = vweird.f32 %v3696_v36 }
 0x113   :  { %vm124_vm7 = vmor %vm122_vm6, %vm123_vm5 }
 0x114   :  { %v115_v40 = vsel %vm114_vm4, %v3694_v30, %v111_v37  ;;  %v118_v41 = vmul.f32 %v3696_v36, %v117_v38 }
 0x115   :  { %v126_v42 = vmul.f32 %v115_v40, %v92_v13 }
 0x116   :  { %v119_v44 = vmul.f32 0.5, %v118_v41 }
 0x117   :  { %v132_v45 = vmul.f32 %v3687_v39, %v126_v42 }
 0x118   :  { %v120_v46 = vsub.f32 1.5, %v119_v44 }
 0x119   :  { %v138_v47 = vadd.f32 %v3688_v43, %v132_v45 }
 0x11a   :  { %v121_v48 = vmul.f32 %v3696_v36, %v120_v46 }
 0x11b   :  { %3539 = vmatmul.msk.f32.vlgmr.msra.gmra.mxu0 %vm76_vm0, %v138_v47 }
 0x11c   :  { %v125_v49 = vsel %vm124_vm7, %v3696_v36, %v121_v48 }
 0x11d   :  { %v127_v50 = vmul.f32 %v125_v49, %v93_v18 }
 0x11f   :  { %v133_v51 = vmul.f32 %v3687_v39, %v127_v50 }
 0x121   :  { %v139_v52 = vadd.f32 %v3688_v43, %v133_v51 }
 0x123   :  { %3540 = vmatmul.msk.f32.gmra.mxu0 %vm76_vm0, %v139_v52 }
 0x198   :  { %v171_v54 = vpop.f32.mrf.mxu0 }
 0x199   :  { %v4018_v55 = vadd.f32 %v3689_v53, %v171_v54 }
 0x19b   :  { %191 = vrot.lane.b32.xlu1 %v4018_v55, %s3935_s6  ;;  %v200_v12 = vrot.slane %v4018_v55, 4 }
 0x1a0   :  { %v174_v56 = vpop.f32.mrf.mxu0 }
 0x1a1   :  { %v4021_v57 = vadd.f32 %v3689_v53, %v174_v56 }
 0x1a3   :  { %187 = vrot.lane.b32.xlu0 %v4021_v57, %s3936_s20  ;;  %193 = vrot.lane.b32.xlu2 %v4021_v57, %s3935_s6  ;;  %v248_v11 = vrot.slane %v4021_v57, 4 }
 0x1ab   :  { %504 = vrot.lane.b32.xlu0 %v4021_v57, %s3937_s21  ;;  %181 = vrot.lane.b32.xlu2 %v4021_v57, %s3938_s22 }
 0x1b3   :  { %179 = vrot.lane.b32.xlu2 %v4018_v55, %s3938_s22 }
 0x1bb   :  { %185 = vrot.lane.b32.xlu2 %v4018_v55, %s3936_s20 }
 0x1fd   :  { %v4030_v58 = vpop.permute.xlu2 %193 }
 0x1fe   :  { %516 = vrot.lane.b32.xlu2 %v4030_v58, %s3937_s21  ;;  %v258_v59 = vrot.slane %v4030_v58, 4 }
 0x205   :  { %v4035_v60 = vpop.permute.xlu2 %181 }
 0x206   :  { %v259_v61 = vsel %vm198_vm8, %v258_v59, %v4035_v60  ;;  %v260_v62 = vrot.slane %v4035_v60, 4  ;;  %508 = vrot.lane.b32.xlu0 %v4035_v60, %s3937_s21 }
 0x207   :  { %v265_v31 = vperm.slane %v259_v61, %v4050_v5 }
 0x208   :  { %v261_v63 = vsel %vm198_vm8, %v4030_v58, %v260_v62 }
 0x209   :  { %v269_v7 = vperm.slane %v261_v63, %v4050_v5  ;;  %v270_v41 = vrot.slane %v265_v31, 4 }
 0x20b   :  { %v282_v20 = vrot.slane %v269_v7, 4 }
 0x20d   :  { %v180_v2 = vpop.permute.xlu2 %179  ;;  %v4044_v3 = vpop.permute.xlu1 %191 }
 0x20e   :  { %v212_v4 = vrot.slane %v180_v2, 4  ;;  %502 = vrot.lane.b32.xlu0 %v4018_v55, %s3937_s21  ;;  %514 = vrot.lane.b32.xlu1 %v4044_v3, %s3937_s21  ;;  %v210_v8 = vrot.slane %v4044_v3, 4 }
 0x210   :  { %v213_v6 = vsel %vm198_vm8, %v4044_v3, %v212_v4  ;;  %v211_v21 = vsel %vm198_vm8, %v210_v8, %v180_v2 }
 0x211   :  { %v4059_v13 = vperm.slane %v213_v6, %v4050_v5  ;;  %v217_v32 = vperm.slane %v211_v21, %v4050_v5 }
 0x213   :  { %v234_v33 = vrot.slane %v4059_v13, 4  ;;  %v222_v42 = vrot.slane %v217_v32, 4 }
 0x215   :  { %v4061_v14 = vpop.permute.xlu0 %187  ;;  %v186_v15 = vpop.permute.xlu2 %185 }
 0x216   :  { %v246_v16 = vrot.slane %v4061_v14, 4  ;;  %v249_v17 = vsel %vm198_vm8, %v4061_v14, %v248_v11  ;;  %v197_v18 = vrot.slane %v186_v15, 4  ;;  %v201_v19 = vsel %vm198_vm8, %v186_v15, %v200_v12  ;;  %512 = vrot.lane.b32.xlu2 %v4061_v14, %s3937_s21  ;;  %838 = vrot.lane.b32.xlu0 %v186_v15, %s3941_s2 }
 0x217   :  { %v257_v22 = vperm.slane %v249_v17, %v4050_v5  ;;  %510 = vrot.lane.b32.xlu1 %v186_v15, %s3937_s21  ;;  %v209_v26 = vperm.slane %v201_v19, %v4050_v5 }
 0x218   :  { %v247_v24 = vsel %vm198_vm8, %v246_v16, %v4021_v57  ;;  %v199_v25 = vsel %vm198_vm8, %v197_v18, %v4018_v55 }
 0x219   :  { %v253_v27 = vperm.slane %v247_v24, %v4050_v5  ;;  %v283_v28 = vsel %vm198_vm8, %v282_v20, %v257_v22  ;;  %v284_v29 = vrot.slane %v257_v22, 4  ;;  %v205_v30 = vperm.slane %v199_v25, %v4050_v5 }
 0x21a   :  { %v235_v37 = vsel %vm198_vm8, %v234_v33, %v209_v26  ;;  %v289_v39 = vperm.slane %v283_v28, %v4073_v23  ;;  %v236_v44 = vrot.slane %v209_v26, 4 }
 0x21b   :  { %v272_v34 = vrot.slane %v253_v27, 4  ;;  %v285_v35 = vsel %vm198_vm8, %v269_v7, %v284_v29  ;;  %v224_v36 = vrot.slane %v205_v30, 4  ;;  %v241_v45 = vperm.slane %v235_v37, %v4073_v23 }
 0x21c   :  { %v223_v46 = vsel %vm198_vm8, %v222_v42, %v205_v30  ;;  %v271_v47 = vsel %vm198_vm8, %v270_v41, %v253_v27  ;;  %v405_v50 = vperm.slane %v289_v39, %v4050_v5  ;;  %v428_v54 = vrot.slane %v289_v39, 4 }
 0x21d   :  { %v273_v38 = vsel %vm198_vm8, %v265_v31, %v272_v34  ;;  %v225_v40 = vsel %vm198_vm8, %v217_v32, %v224_v36  ;;  %v229_v51 = vperm.slane %v223_v46, %v4073_v23  ;;  %v277_v52 = vperm.slane %v271_v47, %v4073_v23 }
 0x21e   :  { %v281_v43 = vperm.slane %v273_v38, %v4073_v23  ;;  %506 = vrot.lane.b32.xlu2 %v180_v2, %s3937_s21  ;;  %v233_v48 = vperm.slane %v225_v40, %v4073_v23  ;;  %v422_v12 = vrot.slane %v241_v45, 4  ;;  %v406_v24 = vrot.slane %v405_v50, 4 }
 0x21f   :  { %834 = vrot.lane.b32.xlu1 %v180_v2, %s3941_s2  ;;  %v297_v62 = vperm.slane %v229_v51, %v4050_v5  ;;  %v301_v63 = vperm.slane %v277_v52, %v4050_v5  ;;  %v318_v0 = vrot.slane %v229_v51, 4  ;;  %v324_v1 = vrot.slane %v277_v52, 4 }
 0x220   :  { %v353_v49 = vperm.slane %v281_v43, %v4050_v5  ;;  %v376_v53 = vrot.slane %v281_v43, 4  ;;  %v349_v56 = vperm.slane %v233_v48, %v4050_v5  ;;  %v370_v61 = vrot.slane %v233_v48, 4 }
 0x221   :  { %v302_v8 = vrot.slane %v301_v63, 4  ;;  %v304_v9 = vrot.slane %v297_v62, 4  ;;  %v319_v10 = vsel %vm198_vm8, 0.0, %v318_v0  ;;  %v325_v11 = vsel %vm198_vm8, 0.0, %v324_v1 }
 0x222   :  { %v354_v59 = vrot.slane %v353_v49, 4  ;;  %v356_v4 = vrot.slane %v349_v56, 4  ;;  %v371_v6 = vsel %vm198_vm8, 0.0, %v370_v61  ;;  %v377_v7 = vsel %vm198_vm8, 0.0, %v376_v53 }
 0x223   :  { %v323_v15 = vperm.slane %v319_v10, %v4050_v5  ;;  %v329_v16 = vperm.slane %v325_v11, %v4050_v5  ;;  %v375_v17 = vperm.slane %v371_v6, %v4050_v5  ;;  %v303_v18 = vsel %vm198_vm8, %v302_v8, %v297_v62 }
 0x224   :  { %v4106_v2 = vsel %vm198_vm8, %v354_v59, %v349_v56  ;;  %v4121_v19 = vsel %vm198_vm8, %v301_v63, %v304_v9  ;;  %v381_v20 = vperm.slane %v377_v7, %v4050_v5  ;;  %v4125_v21 = vsel %vm198_vm8, %v353_v49, %v356_v4  ;;  %v505_v63 = vpop.permute.xlu0 %504 }
 0x225   :  { %v332_v22 = vrot.slane %v323_v15, 4  ;;  %v293_v25 = vperm.slane %v285_v35, %v4073_v23  ;;  %v237_v26 = vsel %vm198_vm8, %v4059_v13, %v236_v44  ;;  %v384_v30 = vrot.slane %v375_v17, 4 }
 0x226   :  { %842 = vrot.lane.b32.xlu2 %v4044_v3, %s3941_s2  ;;  %v330_v3 = vrot.slane %v329_v16, 4  ;;  %v382_v27 = vrot.slane %v381_v20, 4  ;;  %v429_v31 = vsel %vm198_vm8, 0.0, %v428_v54  ;;  %v423_v33 = vsel %vm198_vm8, 0.0, %v422_v12 }
 0x227   :  { %830 = vrot.lane.b32.xlu1 %v4018_v55, %s3941_s2  ;;  %v401_v55 = vperm.slane %v241_v45, %v4050_v5  ;;  %v333_v29 = vsel %vm198_vm8, %v329_v16, %v332_v22  ;;  %v245_v34 = vperm.slane %v237_v26, %v4073_v23  ;;  %v457_v13 = vperm.slane %v293_v25, %v4050_v5 }
 0x228   :  { %v331_v28 = vsel %vm198_vm8, %v330_v3, %v323_v15  ;;  %v383_v32 = vsel %vm198_vm8, %v382_v27, %v375_v17  ;;  %v385_v37 = vsel %vm198_vm8, %v381_v20, %v384_v30  ;;  %v427_v38 = vperm.slane %v423_v33, %v4050_v5 }
 0x229   :  { %v407_v35 = vsel %vm198_vm8, %v406_v24, %v401_v55  ;;  %v408_v36 = vrot.slane %v401_v55, 4  ;;  %v433_v39 = vperm.slane %v429_v31, %v4050_v5  ;;  %v474_v40 = vrot.slane %v245_v34, 4 }
 0x22a   :  { %v436_v42 = vrot.slane %v427_v38, 4  ;;  %v480_v43 = vrot.slane %v293_v25, 4  ;;  %v453_v45 = vperm.slane %v245_v34, %v4050_v5  ;;  %v458_v46 = vrot.slane %v457_v13, 4 }
 0x22b   :  { %v434_v41 = vrot.slane %v433_v39, 4  ;;  %v4147_v44 = vsel %vm198_vm8, %v405_v50, %v408_v36  ;;  %v475_v49 = vsel %vm198_vm8, 0.0, %v474_v40  ;;  %v4182_v9 = vperm.slane %v4106_v2, %v4073_v23 }
 0x22c   :  { %v4154_v47 = vsel %vm198_vm8, %v433_v39, %v436_v42  ;;  %v4157_v48 = vsel %vm198_vm8, %v458_v46, %v453_v45  ;;  %v479_v51 = vperm.slane %v475_v49, %v4050_v5  ;;  %v481_v50 = vsel %vm198_vm8, 0.0, %v480_v43 }
 0x22d   :  { %v485_v52 = vperm.slane %v481_v50, %v4050_v5  ;;  %v4187_v12 = vperm.slane %v303_v18, %v4073_v23  ;;  %v576_v15 = vrot.slane %v505_v63, 4  ;;  %v4193_v17 = vperm.slane %v4121_v19, %v4073_v23 }
 0x22e   :  { %832 = vrot.lane.b32.xlu2 %v4021_v57, %s3941_s2  ;;  %v4151_v57 = vsel %vm198_vm8, %v434_v41, %v427_v38  ;;  %v488_v54 = vrot.slane %v479_v51, 4  ;;  %v366_v20 = vrot.slane %v4182_v9, 4  ;;  %v4197_v24 = vperm.slane %v331_v28, %v4073_v23 }
 0x22f   :  { %840 = vrot.lane.b32.xlu1 %v4061_v14, %s3941_s2  ;;  %v460_v14 = vrot.slane %v453_v45, 4  ;;  %v486_v56 = vrot.slane %v485_v52, 4  ;;  %v4201_v25 = vperm.slane %v4125_v21, %v4073_v23  ;;  %v314_v55 = vrot.slane %v4187_v12, 4 }
 0x230   :  { %v4169_v59 = vsel %vm198_vm8, %v485_v52, %v488_v54  ;;  %v4207_v19 = vperm.slane %v333_v29, %v4073_v23  ;;  %v4211_v31 = vperm.slane %v383_v32, %v4073_v23  ;;  %v4214_v28 = vperm.slane %v407_v35, %v4073_v23 }
 0x231   :  { %v4166_v53 = vsel %vm198_vm8, %v457_v13, %v460_v14  ;;  %v4172_v61 = vsel %vm198_vm8, %v486_v56, %v479_v51  ;;  %v316_v21 = vrot.slane %v4193_v17, 4  ;;  %v4218_v33 = vperm.slane %v385_v37, %v4073_v23 }
 0x232   :  { %v342_v36 = vrot.slane %v4197_v24, 4  ;;  %v344_v35 = vrot.slane %v4207_v19, 4  ;;  %v368_v39 = vrot.slane %v4201_v25, 4  ;;  %v4230_v37 = vsel %vm198_vm8, 0.0, %v314_v55 }
 0x233   :  { %v4233_v40 = vsel %vm198_vm8, 0.0, %v366_v20  ;;  %v394_v41 = vrot.slane %v4211_v31, 4  ;;  %v418_v42 = vrot.slane %v4214_v28, 4  ;;  %v4241_v46 = vsel %vm198_vm8, 0.0, %v316_v21 }
 0x234   :  { %v4245_v14 = vperm.slane %v4151_v57, %v4073_v23  ;;  %v396_v49 = vrot.slane %v4218_v33, 4  ;;  %v4250_v56 = vsel %vm198_vm8, 0.0, %v342_v36 }
 0x236   :  { %844 = vrot.lane.b32.xlu2 %v4030_v58, %s3941_s2 }
 0x23e   :  { %836 = vrot.lane.b32.xlu2 %v4035_v60, %s3941_s2 }
 0x258   :  { %v517_v62 = vpop.permute.xlu2 %516 }
 0x259   :  { %v586_v1 = vrot.slane %v517_v62, 4 }
 0x270   :  { %v513_v0 = vpop.permute.xlu2 %512 }
 0x271   :  { %v574_v58 = vrot.slane %v513_v0, 4  ;;  %v577_v18 = vsel %vm198_vm8, %v513_v0, %v576_v15  ;;  %v4272_v15 = vsel %vm198_vm8, 0.0, %v396_v49 }
 0x272   :  { %v585_v34 = vperm.slane %v577_v18, %v4050_v5 }
 0x273   :  { %v575_v7 = vsel %vm198_vm8, %v574_v58, %v505_v63  ;;  %v4253_v58 = vsel %vm198_vm8, 0.0, %v344_v35 }
 0x274   :  { %v581_v10 = vperm.slane %v575_v7, %v4050_v5  ;;  %v612_v51 = vrot.slane %v585_v34, 4  ;;  %v4263_v7 = vsel %vm198_vm8, 0.0, %v418_v42 }
 0x276   :  { %v600_v3 = vrot.slane %v581_v10, 4 }
 0x278   :  { %v509_v4 = vpop.permute.xlu0 %508  ;;  %v4176_v6 = vpop.permute.xlu2 %506 }
 0x279   :  { %v587_v8 = vsel %vm198_vm8, %v586_v1, %v509_v4  ;;  %v588_v11 = vrot.slane %v509_v4, 4  ;;  %v4256_v1 = vsel %vm198_vm8, 0.0, %v368_v39  ;;  %v4260_v4 = vsel %vm198_vm8, 0.0, %v394_v41 }
 0x27a   :  { %v593_v60 = vperm.slane %v587_v8, %v4050_v5  ;;  %v4267_v8 = vperm.slane %v4147_v44, %v4073_v23 }
 0x27b   :  { %v589_v26 = vsel %vm198_vm8, %v517_v62, %v588_v11  ;;  %v446_v11 = vrot.slane %v4245_v14, 4 }
 0x27c   :  { %v598_v2 = vrot.slane %v593_v60, 4  ;;  %v601_v27 = vsel %vm198_vm8, %v593_v60, %v600_v3  ;;  %v597_v13 = vperm.slane %v589_v26, %v4050_v5  ;;  %v540_v3 = vrot.slane %v4176_v6, 4 }
 0x27d   :  { %v609_v38 = vperm.slane %v601_v27, %v4073_v23  ;;  %v4286_v27 = vperm.slane %v4157_v48, %v4073_v23 }
 0x27e   :  { %v599_v29 = vsel %vm198_vm8, %v598_v2, %v581_v10  ;;  %v610_v50 = vrot.slane %v597_v13, 4  ;;  %v613_v57 = vsel %vm198_vm8, %v597_v13, %v612_v51 }
 0x27f   :  { %v605_v43 = vperm.slane %v599_v29, %v4073_v23  ;;  %v704_v62 = vrot.slane %v609_v38, 4  ;;  %v4278_v26 = vperm.slane %v613_v57, %v4073_v23  ;;  %v4281_v44 = vperm.slane %v609_v38, %v4050_v5 }
 0x280   :  { %v4189_v16 = vpop.permute.xlu2 %842  ;;  %v515_v22 = vpop.permute.xlu1 %514  ;;  %v611_v20 = vsel %vm198_vm8, %v610_v50, %v585_v34 }
 0x281   :  { %v538_v30 = vrot.slane %v515_v22, 4  ;;  %v503_v63 = vpop.permute.xlu0 %502  ;;  %v652_v10 = vrot.slane %v605_v43, 4  ;;  %v705_v55 = vsel %vm198_vm8, 0.0, %v704_v62  ;;  %v541_v21 = vsel %vm198_vm8, %v515_v22, %v540_v3 }
 0x282   :  { %v4291_v13 = vperm.slane %v611_v20, %v4073_v23  ;;  %v629_v38 = vperm.slane %v605_v43, %v4050_v5  ;;  %v4300_v22 = vsel %vm198_vm8, 0.0, %v446_v11  ;;  %v682_v41 = vrot.slane %v4281_v44, 4 }
 0x283   :  { %v539_v32 = vsel %vm198_vm8, %v538_v30, %v4176_v6  ;;  %v528_v30 = vrot.slane %v503_v63, 4  ;;  %v4305_v42 = vperm.slane %v705_v55, %v4050_v5  ;;  %v4309_v49 = vperm.slane %v4278_v26, %v4050_v5 }
 0x284   :  { %v545_v52 = vperm.slane %v539_v32, %v4050_v5  ;;  %v653_v32 = vsel %vm198_vm8, 0.0, %v652_v10  ;;  %v4312_v43 = vperm.slane %v541_v21, %v4050_v5  ;;  %v808_v51 = vrot.slane %v4278_v26, 4 }
 0x285   :  { %v4317_v62 = vperm.slane %v653_v32, %v4050_v5  ;;  %v756_v11 = vrot.slane %v4291_v13, 4  ;;  %v866_v20 = vrot.slane %v4189_v16, 4 }
 0x286   :  { %v550_v2 = vrot.slane %v545_v52, 4 }
 0x288   :  { %v4238_v45 = vpop.permute.xlu2 %832 }
 0x289   :  { %v511_v54 = vpop.permute.xlu1 %510 }
 0x28a   :  { %v526_v0 = vrot.slane %v511_v54, 4  ;;  %v529_v48 = vsel %vm198_vm8, %v511_v54, %v528_v30 }
 0x28b   :  { %v537_v57 = vperm.slane %v529_v48, %v4050_v5 }
 0x28c   :  { %v527_v60 = vsel %vm198_vm8, %v526_v0, %v503_v63  ;;  %v4321_v63 = vperm.slane %v4291_v13, %v4050_v5  ;;  %v839_v0 = vpop.permute.xlu0 %838 }
 0x28d   :  { %v533_v18 = vperm.slane %v527_v60, %v4050_v5  ;;  %v630_v60 = vrot.slane %v629_v38, 4  ;;  %v854_v30 = vrot.slane %v839_v0, 4  ;;  %v564_v48 = vrot.slane %v537_v57, 4 }
 0x28f   :  { %v552_v34 = vrot.slane %v533_v18, 4  ;;  %v551_v6 = vsel %vm198_vm8, %v550_v2, %v533_v18  ;;  %v562_v2 = vrot.slane %v4312_v43, 4 }
 0x290   :  { %v4293_v29 = vpop.permute.xlu2 %844  ;;  %v557_v36 = vperm.slane %v551_v6, %v4073_v23  ;;  %v658_v6 = vrot.slane %v4317_v62, 4 }
 0x291   :  { %v835_v35 = vpop.permute.xlu1 %834  ;;  %v553_v50 = vsel %vm198_vm8, %v545_v52, %v552_v34  ;;  %v563_v13 = vsel %vm198_vm8, %v562_v2, %v537_v57 }
 0x292   :  { %v868_v54 = vrot.slane %v835_v35, 4  ;;  %v625_v10 = vperm.slane %v557_v36, %v4050_v5  ;;  %v646_v3 = vrot.slane %v557_v36, 4  ;;  %v561_v18 = vperm.slane %v553_v50, %v4073_v23 }
 0x293   :  { %v867_v50 = vsel %vm198_vm8, %v866_v20, %v835_v35 }
 0x294   :  { %v869_v52 = vsel %vm198_vm8, %v4189_v16, %v868_v54  ;;  %v631_v26 = vsel %vm198_vm8, %v630_v60, %v625_v10  ;;  %v632_v55 = vrot.slane %v625_v10, 4  ;;  %v647_v34 = vsel %vm198_vm8, 0.0, %v646_v3 }
 0x295   :  { %v637_v21 = vperm.slane %v631_v26, %v4073_v23  ;;  %v877_v32 = vperm.slane %v869_v52, %v4050_v5  ;;  %v651_v36 = vperm.slane %v647_v34, %v4050_v5  ;;  %v4345_v52 = vperm.slane %v561_v18, %v4050_v5 }
 0x296   :  { %v633_v16 = vsel %vm198_vm8, %v629_v38, %v632_v55  ;;  %v569_v38 = vperm.slane %v563_v13, %v4073_v23  ;;  %v698_v57 = vrot.slane %v561_v18, 4  ;;  %v873_v55 = vperm.slane %v867_v50, %v4050_v5 }
 0x297   :  { %3541 = vmatpush.xpose.msk.msra.mxu1 %vm1158_vm9, %v637_v21  ;;  %v641_v54 = vperm.slane %v633_v16, %v4073_v23  ;;  %v642_v60 = vrot.slane %v637_v21, 4  ;;  %v659_v2 = vsel %vm198_vm8, %v658_v6, %v651_v36  ;;  %v890_v21 = vrot.slane %v877_v32, 4 }
 0x298   :  { %v837_v3 = vpop.permute.xlu2 %836  ;;  %v665_v34 = vperm.slane %v659_v2, %v4073_v23 }
 0x299   :  { %v831_v10 = vpop.permute.xlu1 %830  ;;  %3545 = vmatpush.xpose.msk.msrb.mxu0 %vm1158_vm9, %v641_v54  ;;  %v643_v20 = vsel %vm198_vm8, 0.0, %v642_v60  ;;  %v916_v6 = vrot.slane %v837_v3, 4  ;;  %v644_v16 = vrot.slane %v641_v54, 4  ;;  %v660_v60 = vrot.slane %v651_v36, 4 }
 0x29a   :  { %v855_v26 = vsel %vm198_vm8, %v854_v30, %v831_v10  ;;  %v856_v39 = vrot.slane %v831_v10, 4  ;;  %3542 = vmatmul.msk.f32.vlgmr.msra.gmra.mxu1 %vm1158_vm9, %v4187_v12  ;;  %3543 = vmatpush.xpose.msk.msra.mxu2 %vm1158_vm9, %v643_v20  ;;  %v809_v10 = vsel %vm198_vm8, 0.0, %v808_v51  ;;  %v683_v12 = vsel %vm198_vm8, %v682_v41, %v4345_v52 }
 0x29b   :  { %v861_v35 = vperm.slane %v855_v26, %v4050_v5  ;;  %v645_v51 = vsel %vm198_vm8, 0.0, %v644_v16  ;;  %v914_v36 = vrot.slane %v4293_v29, 4  ;;  %v699_v41 = vsel %vm198_vm8, 0.0, %v698_v57 }
 0x29c   :  { %v857_v30 = vsel %vm198_vm8, %v839_v0, %v856_v39  ;;  %3546 = vmatmul.msk.f32.vlgmr.msrb.gmra.mxu0 %vm1158_vm9, %v4193_v17  ;;  %v757_v39 = vsel %vm198_vm8, 0.0, %v756_v11  ;;  %v565_v17 = vsel %vm198_vm8, %v4312_v43, %v564_v48  ;;  %3547 = vmatpush.xpose.msk.msrb.mxu1 %vm1158_vm9, %v645_v51  ;;  %v710_v11 = vrot.slane %v4305_v42, 4 }
 0x29d   :  { %v865_v18 = vperm.slane %v857_v30, %v4050_v5  ;;  %v880_v13 = vrot.slane %v861_v35, 4  ;;  %3544 = vmatmul.msk.f32.vlgmr.msra.gmra.mxu2 %vm1158_vm9, %v4230_v37  ;;  %v750_v26 = vrot.slane %v569_v38, 4  ;;  %v917_v2 = vsel %vm198_vm8, %v4293_v29, %v916_v6 }
 0x29e   :  { %3549 = vmatpush.xpose.msk.msrb.mxu2 %vm1158_vm9, %v665_v34  ;;  %v689_v37 = vperm.slane %v683_v12, %v4073_v23  ;;  %v670_v43 = vrot.slane %v665_v34, 4  ;;  %v734_v48 = vrot.slane %v4321_v63, 4  ;;  %v4389_v30 = vperm.slane %v757_v39, %v4050_v5 }
 0x29f   :  { %v4366_v0 = vsel %vm198_vm8, %v873_v55, %v880_v13  ;;  %v4369_v50 = vsel %vm198_vm8, %v890_v21, %v865_v18  ;;  %v892_v54 = vrot.slane %v865_v18, 4  ;;  %v915_v21 = vsel %vm198_vm8, %v914_v36, %v837_v3 }
 0x2a0   :  { %v904_v57 = vrot.slane %v4238_v45, 4  ;;  %v661_v18 = vsel %vm198_vm8, %v4317_v62, %v660_v60  ;;  %v703_v29 = vperm.slane %v699_v41, %v4050_v5  ;;  %v4399_v6 = vperm.slane %v565_v17, %v4073_v23 }
 0x2a1   :  { %v4383_v20 = vsel %vm198_vm8, %v877_v32, %v892_v54  ;;  %v4396_v32 = vperm.slane %v809_v10, %v4050_v5  ;;  %v878_v3 = vrot.slane %v873_v55, 4  ;;  %v925_v34 = vperm.slane %v917_v2, %v4050_v5  ;;  %v841_v16 = vpop.permute.xlu1 %840 }
 0x2a2   :  { %v694_v13 = vrot.slane %v689_v37, 4  ;;  %3548 = vmatmul.msk.f32.vlgmr.msrb.gmra.mxu1 %vm1158_vm9, %v4241_v46  ;;  %v4405_v12 = vperm.slane %v569_v38, %v4050_v5  ;;  %v751_v62 = vsel %vm198_vm8, 0.0, %v750_v26  ;;  %v921_v60 = vperm.slane %v915_v21, %v4050_v5 }
 0x2a3   :  { %v684_v10 = vrot.slane %v4345_v52, 4  ;;  %v879_v39 = vsel %vm198_vm8, %v878_v3, %v861_v35  ;;  %v671_v54 = vsel %vm198_vm8, 0.0, %v670_v43  ;;  %v669_v51 = vperm.slane %v661_v18, %v4073_v23 }
 0x2a4   :  { %v695_v55 = vsel %vm198_vm8, 0.0, %v694_v13  ;;  %3551 = vmatpush.xpose.msk.msra.mxu3 %vm1158_vm9, %v671_v54  ;;  %v711_v46 = vsel %vm198_vm8, %v710_v11, %v703_v29  ;;  %v712_v38 = vrot.slane %v703_v29, 4  ;;  %v902_v17 = vrot.slane %v841_v16, 4 }
 0x2a5   :  { %3559 = vmatpush.xpose.msk.msra.mxu0 %vm1158_vm9, %v695_v55  ;;  %v905_v36 = vsel %vm198_vm8, %v841_v16, %v904_v57  ;;  %v938_v41 = vrot.slane %v925_v34, 4  ;;  %3553 = vmatpush.xpose.msk.msra.mxu1 %vm1158_vm9, %v669_v51  ;;  %v672_v52 = vrot.slane %v669_v51, 4  ;;  %v717_v35 = vperm.slane %v711_v46, %v4073_v23 }
 0x2a6   :  { %v913_v26 = vperm.slane %v905_v36, %v4050_v5  ;;  %v903_v2 = vsel %vm198_vm8, %v902_v17, %v4238_v45  ;;  %v685_v11 = vsel %vm198_vm8, %v4281_v44, %v684_v10  ;;  %v735_v21 = vsel %vm198_vm8, %v734_v48, %v4405_v12  ;;  %3550 = vmatmul.msk.f32.vlgmr.msrb.gmra.mxu2 %vm1158_vm9, %v4197_v24 }
 0x2a7   :  { %v673_v43 = vsel %vm198_vm8, 0.0, %v672_v52  ;;  %v722_v57 = vrot.slane %v717_v35, 4  ;;  %3552 = vmatmul.msk.f32.vlgmr.msra.gmra.mxu3 %vm1158_vm9, %v4250_v56  ;;  %v909_v45 = vperm.slane %v903_v2, %v4050_v5  ;;  %v4441_v44 = vperm.slane %v4399_v6, %v4050_v5 }
 0x2a8   :  { %3557 = vmatpush.xpose.msk.msrb.mxu3 %vm1158_vm9, %v689_v37  ;;  %v713_v37 = vsel %vm198_vm8, %v4305_v42, %v712_v38  ;;  %v939_v18 = vsel %vm198_vm8, %v938_v41, %v913_v26  ;;  %3560 = vmatmul.msk.f32.vlgmr.msra.gmra.mxu0 %vm1158_vm9, %v4233_v40  ;;  %v940_v24 = vrot.slane %v913_v26, 4  ;;  %v693_v42 = vperm.slane %v685_v11, %v4073_v23 }
 0x2a9   :  { %3555 = vmatpush.xpose.msk.msra.mxu2 %vm1158_vm9, %v673_v43  ;;  %v741_v56 = vperm.slane %v735_v21, %v4073_v23  ;;  %v4448_v48 = vperm.slane %v751_v62, %v4050_v5  ;;  %v723_v29 = vsel %vm198_vm8, 0.0, %v722_v57  ;;  %v928_v3 = vrot.slane %v909_v45, 4 }
 0x2aa   :  { %3554 = vmatmul.msk.f32.vlgmr.msra.gmra.mxu1 %vm1158_vm9, %v4207_v19  ;;  %v721_v40 = vperm.slane %v713_v37, %v4073_v23  ;;  %v802_v13 = vrot.slane %v4399_v6, 4  ;;  %v4456_v16 = vperm.slane %v879_v39, %v4073_v23  ;;  %v889_v10 = vperm.slane %v4366_v0, %v4073_v23  ;;  %3567 = vmatpush.xpose.msk.msrb.mxu0 %vm1158_vm9, %v723_v29 }
 0x2ab   :  { %v941_v62 = vsel %vm198_vm8, %v925_v34, %v940_v24  ;;  %3561 = vmatpush.xpose.msk.msrb.mxu1 %vm1158_vm9, %v693_v42  ;;  %v926_v55 = vrot.slane %v921_v60, 4  ;;  %v929_v54 = vsel %vm198_vm8, %v921_v60, %v928_v3  ;;  %v746_v19 = vrot.slane %v741_v56, 4 }
 0x2ac   :  { %3565 = vmatpush.xpose.msk.msra.mxu3 %vm1158_vm9, %v717_v35  ;;  %v696_v51 = vrot.slane %v693_v42, 4  ;;  %v736_v6 = vrot.slane %v4405_v12, 4  ;;  %v762_v39 = vrot.slane %v4389_v30, 4  ;;  %v786_v46 = vrot.slane %v4309_v49, 4 }
 0x2ad   :  { %v814_v0 = vrot.slane %v4396_v32, 4  ;;  %v764_v38 = vrot.slane %v4448_v48, 4  ;;  %v788_v34 = vrot.slane %v4441_v44, 4  ;;  %v927_v17 = vsel %vm198_vm8, %v926_v55, %v909_v45 }
 0x2ae   :  { %v747_v60 = vsel %vm198_vm8, 0.0, %v746_v19  ;;  %v803_v36 = vsel %vm198_vm8, 0.0, %v802_v13  ;;  %v4476_v41 = vperm.slane %v4369_v50, %v4073_v23  ;;  %v4480_v12 = vperm.slane %v4456_v16, %v4050_v5  ;;  %3556 = vmatmul.msk.f32.vlgmr.msra.gmra.mxu2 %vm1158_vm9, %v4253_v58 }
 0x2af   :  { %3569 = vmatpush.xpose.msk.msra.mxu1 %vm1158_vm9, %v721_v40  ;;  %v1026_v52 = vrot.slane %v889_v10, 4  ;;  %3575 = vmatpush.xpose.msk.msra.mxu0 %vm1158_vm9, %v747_v60  ;;  %v4487_v35 = vperm.slane %v4383_v20, %v4073_v23  ;;  %v945_v26 = vperm.slane %v939_v18, %v4073_v23  ;;  %v697_v2 = vsel %vm198_vm8, 0.0, %v696_v51 }
 0x2b0   :  { %3558 = vmatmul.msk.f32.vlgmr.msrb.gmra.mxu3 %vm1158_vm9, %v4182_v9  ;;  %3568 = vmatmul.msk.f32.vlgmr.msrb.gmra.mxu0 %vm1158_vm9, %v4260_v4  ;;  %v763_v50 = vsel %vm198_vm8, %v762_v39, %v4448_v48  ;;  %v974_v11 = vrot.slane %v4456_v16, 4  ;;  %v1005_v58 = vperm.slane %v889_v10, %v4050_v5  ;;  %v933_v20 = vperm.slane %v927_v17, %v4073_v23 }
 0x2b1   :  { %3563 = vmatpush.xpose.msk.msrb.mxu2 %vm1158_vm9, %v697_v2  ;;  %3573 = vmatpush.xpose.msk.msrb.mxu3 %vm1158_vm9, %v741_v56  ;;  %v769_v21 = vperm.slane %v763_v50, %v4073_v23  ;;  %v937_v9 = vperm.slane %v929_v54, %v4073_v23  ;;  %v724_v37 = vrot.slane %v721_v40, 4  ;;  %v737_v4 = vsel %vm198_vm8, %v4321_v63, %v736_v6 }
 0x2b2   :  { %3562 = vmatmul.msk.f32.vlgmr.msrb.gmra.mxu1 %vm1158_vm9, %v4201_v25  ;;  %v787_v43 = vsel %vm198_vm8, %v786_v46, %v4441_v44  ;;  %v1027_v57 = vsel %vm198_vm8, 0.0, %v1026_v52  ;;  %v745_v18 = vperm.slane %v737_v4, %v4073_v23  ;;  %v949_v42 = vperm.slane %v941_v62, %v4073_v23 }
 0x2b3   :  { %v774_v45 = vrot.slane %v769_v21, 4  ;;  %v4513_v24 = vperm.slane %v787_v43, %v4073_v23  ;;  %v1084_v56 = vrot.slane %v945_v26, 4  ;;  %v725_v48 = vsel %vm198_vm8, 0.0, %v724_v37 }
 0x2b4   :  { %v4518_v25 = vperm.slane %v803_v36, %v4050_v5  ;;  %v4521_v63 = vperm.slane %v933_v20, %v4050_v5  ;;  %3577 = vmatpush.xpose.msk.msrb.mxu1 %vm1158_vm9, %v745_v18  ;;  %v748_v40 = vrot.slane %v745_v18, 4  ;;  %v980_v13 = vrot.slane %v933_v20, 4 }
 0x2b5   :  { %v775_v29 = vsel %vm198_vm8, 0.0, %v774_v45  ;;  %3571 = vmatpush.xpose.msk.msra.mxu2 %vm1158_vm9, %v725_v48  ;;  %v798_v3 = vrot.slane %v4513_v24, 4  ;;  %v1009_v16 = vperm.slane %v937_v9, %v4050_v5  ;;  %v765_v10 = vsel %vm198_vm8, %v4389_v30, %v764_v38 }
 0x2b6   :  { %3583 = vmatpush.xpose.msk.msrb.mxu0 %vm1158_vm9, %v775_v29  ;;  %v815_v62 = vsel %vm198_vm8, %v814_v0, %v4518_v25  ;;  %v1012_v55 = vrot.slane %v1005_v58, 4  ;;  %v1057_v54 = vperm.slane %v4476_v41, %v4050_v5  ;;  %v1078_v19 = vrot.slane %v4476_v41, 4  ;;  %3564 = vmatmul.msk.f32.vlgmr.msrb.gmra.mxu2 %vm1158_vm9, %v4256_v1 }
 0x2b7   :  { %v1061_v51 = vperm.slane %v945_v26, %v4050_v5  ;;  %v1031_v6 = vperm.slane %v1027_v57, %v4050_v5  ;;  %v1032_v39 = vrot.slane %v937_v9, 4  ;;  %v799_v30 = vsel %vm198_vm8, 0.0, %v798_v3 }
 0x2b8   :  { %3566 = vmatmul.msk.f32.vlgmr.msra.gmra.mxu3 %vm1158_vm9, %v4211_v31  ;;  %3576 = vmatmul.msk.f32.vlgmr.msra.gmra.mxu0 %vm1158_vm9, %v4263_v7  ;;  %v4546_v46 = vperm.slane %v815_v62, %v4073_v23  ;;  %v1085_v0 = vsel %vm198_vm8, 0.0, %v1084_v56  ;;  %v749_v1 = vsel %vm198_vm8, 0.0, %v748_v40  ;;  %v773_v38 = vperm.slane %v765_v10, %v4073_v23 }
 0x2b9   :  { %3581 = vmatpush.xpose.msk.msra.mxu3 %vm1158_vm9, %v769_v21  ;;  %v958_v31 = vrot.slane %v4521_v63, 4  ;;  %v981_v17 = vsel %vm198_vm8, 0.0, %v980_v13  ;;  %v1113_v7 = vperm.slane %v949_v42, %v4050_v5  ;;  %3579 = vmatpush.xpose.msk.msrb.mxu2 %vm1158_vm9, %v749_v1  ;;  %v4560_v60 = vsel %vm198_vm8, %v1009_v16, %v1012_v55 }
 0x2ba   :  { %3591 = vmatpush.xpose.msk.msra.mxu0 %vm1158_vm9, %v799_v30  ;;  %3570 = vmatmul.msk.f32.vlgmr.msra.gmra.mxu1 %vm1158_vm9, %v4218_v33  ;;  %v1010_v36 = vrot.slane %v1009_v16, 4  ;;  %v975_v41 = vsel %vm198_vm8, 0.0, %v974_v11  ;;  %v1064_v52 = vrot.slane %v1057_v54, 4  ;;  %v1062_v26 = vrot.slane %v1061_v51, 4 }
 0x2bb   :  { %v1136_v2 = vrot.slane %v949_v42, 4  ;;  %3585 = vmatpush.xpose.msk.msra.mxu1 %vm1158_vm9, %v773_v38  ;;  %v1033_v50 = vsel %vm198_vm8, 0.0, %v1032_v39  ;;  %v1089_v20 = vperm.slane %v1085_v0, %v4050_v5  ;;  %v826_v21 = vrot.slane %v4546_v46, 4 }
 0x2bc   :  { %v4568_v9 = vsel %vm198_vm8, %v1010_v36, %v1005_v58  ;;  %v776_v33 = vrot.slane %v773_v38, 4  ;;  %v789_v11 = vsel %vm198_vm8, %v4309_v49, %v788_v34  ;;  %v959_v37 = vsel %vm198_vm8, %v958_v31, %v4480_v12 }
 0x2bd   :  { %v4577_v4 = vperm.slane %v981_v17, %v4050_v5  ;;  %v1040_v43 = vrot.slane %v1031_v6, 4  ;;  %v1079_v57 = vsel %vm198_vm8, 0.0, %v1078_v19  ;;  %v1109_v45 = vperm.slane %v4487_v35, %v4050_v5 }
 0x2be   :  { %v1114_v58 = vrot.slane %v1113_v7, 4  ;;  %v1137_v18 = vsel %vm198_vm8, 0.0, %v1136_v2  ;;  %3572 = vmatmul.msk.f32.vlgmr.msra.gmra.mxu2 %vm1158_vm9, %v4272_v15  ;;  %v1037_v49 = vperm.slane %v1033_v50, %v4050_v5  ;;  %v4587_v44 = vsel %vm198_vm8, %v1062_v26, %v1057_v54 }
 0x2bf   :  { %v4590_v34 = vsel %vm198_vm8, %v1061_v51, %v1064_v52  ;;  %v1090_v42 = vrot.slane %v1089_v20, 4  ;;  %v827_v56 = vsel %vm198_vm8, 0.0, %v826_v21  ;;  %v797_v48 = vperm.slane %v789_v11, %v4073_v23 }
 0x2c0   :  { %3574 = vmatmul.msk.f32.vlgmr.msrb.gmra.mxu3 %vm1158_vm9, %v4214_v28  ;;  %3584 = vmatmul.msk.f32.vlgmr.msrb.gmra.mxu0 %vm1158_vm9, %v4300_v22  ;;  %v4599_v15 = vperm.slane %v959_v37, %v4073_v23  ;;  %v777_v29 = vsel %vm198_vm8, 0.0, %v776_v33  ;;  %v986_v3 = vrot.slane %v4577_v4, 4  ;;  %v1038_v28 = vrot.slane %v1037_v49, 4 }
 0x2c1   :  { %3589 = vmatpush.xpose.msk.msrb.mxu3 %vm1158_vm9, %v4513_v24  ;;  %3599 = vmatpush.xpose.msk.msrb.mxu0 %vm1158_vm9, %v827_v56  ;;  %v4607_v40 = vsel %vm198_vm8, %v1037_v49, %v1040_v43  ;;  %v4610_v22 = vperm.slane %v975_v41, %v4050_v5  ;;  %v1141_v13 = vperm.slane %v1137_v18, %v4050_v5  ;;  %v816_v16 = vrot.slane %v4518_v25, 4 }
 0x2c2   :  { %3587 = vmatpush.xpose.msk.msra.mxu2 %vm1158_vm9, %v777_v29  ;;  %3578 = vmatmul.msk.f32.vlgmr.msrb.gmra.mxu1 %vm1158_vm9, %v4267_v8  ;;  %v470_v24 = vrot.slane %v4286_v27, 4  ;;  %v1130_v10 = vrot.slane %v4487_v35, 4  ;;  %v4621_v62 = vsel %vm198_vm8, %v1038_v28, %v1031_v6  ;;  %v1083_v55 = vperm.slane %v1079_v57, %v4050_v5 }
 0x2c3   :  { %3593 = vmatpush.xpose.msk.msrb.mxu1 %vm1158_vm9, %v797_v48  ;;  %v1116_v54 = vrot.slane %v1109_v45, 4  ;;  %v970_v19 = vrot.slane %v4599_v15, 4  ;;  %v800_v25 = vrot.slane %v797_v48, 4  ;;  %v445_v51 = vperm.slane %v4154_v47, %v4073_v23 }
 0x2c4   :  { %v4628_v39 = vsel %vm198_vm8, %v1114_v58, %v1109_v45  ;;  %v987_v35 = vsel %vm198_vm8, %v986_v3, %v4610_v22  ;;  %v4633_v30 = vsel %vm198_vm8, %v1090_v42, %v1083_v55  ;;  %v1092_v6 = vrot.slane %v1083_v55, 4 }
 0x2c5   :  { %v4636_v0 = vsel %vm198_vm8, %v1113_v7, %v1116_v54  ;;  %v1142_v1 = vrot.slane %v1141_v13, 4  ;;  %v5254_v38 = vrot.slane %v4267_v8, 4  ;;  %v817_v47 = vsel %vm198_vm8, %v4396_v32, %v816_v16 }
 0x2c6   :  { %v471_v17 = vsel %vm198_vm8, 0.0, %v470_v24  ;;  %v493_v36 = vperm.slane %v4172_v61, %v4073_v23  ;;  %v4648_v41 = vsel %vm198_vm8, %v1089_v20, %v1092_v6  ;;  %v1131_v7 = vsel %vm198_vm8, 0.0, %v1130_v10 }
 0x2c7   :  { %v421_v31 = vsel %vm198_vm8, 0.0, %v5254_v38  ;;  %v971_v8 = vsel %vm198_vm8, 0.0, %v970_v19  ;;  %v993_v32 = vperm.slane %v987_v35, %v4073_v23  ;;  %v1135_v52 = vperm.slane %v1131_v7, %v4050_v5 }
 0x2c8   :  { %3580 = vmatmul.msk.f32.vlgmr.msrb.gmra.mxu2 %vm1158_vm9, %v421_v31  ;;  %3582 = vmatmul.msk.f32.vlgmr.msra.gmra.mxu3 %vm1158_vm9, %v4245_v14  ;;  %v801_v61 = vsel %vm198_vm8, 0.0, %v800_v25  ;;  %v825_v26 = vperm.slane %v817_v47, %v4073_v23  ;;  %v960_v2 = vrot.slane %v4480_v12, 4  ;;  %v448_v14 = vrot.slane %v445_v51, 4 }
 0x2c9   :  { %3592 = vmatmul.msk.f32.vlgmr.msra.gmra.mxu0 %vm1158_vm9, %v471_v17  ;;  %3597 = vmatpush.xpose.msk.msra.mxu3 %vm1158_vm9, %v4546_v46  ;;  %v4666_v50 = vsel %vm198_vm8, %v1142_v1, %v1135_v52  ;;  %v1144_v20 = vrot.slane %v1135_v52, 4  ;;  %v498_v46 = vrot.slane %v493_v36, 4  ;;  %v998_v21 = vrot.slane %v993_v32, 4 }
 0x2ca   :  { %3607 = vmatpush.msk.msra.mxu0 %vm2348_vm10, %v971_v8  ;;  %3595 = vmatpush.xpose.msk.msrb.mxu2 %vm1158_vm9, %v801_v61  ;;  %v961_v33 = vsel %vm198_vm8, %v4521_v63, %v960_v2  ;;  %v828_v12 = vrot.slane %v825_v26, 4  ;;  %v449_v37 = vsel %vm198_vm8, 0.0, %v448_v14  ;;  %v469_v43 = vperm.slane %v4166_v53, %v4073_v23 }
 0x2cb   :  { %3586 = vmatmul.msk.f32.vlgmr.msra.gmra.mxu1 %vm1158_vm9, %v445_v51  ;;  %v4672_v11 = vsel %vm198_vm8, %v1141_v13, %v1144_v20  ;;  %v499_v57 = vsel %vm198_vm8, 0.0, %v498_v46  ;;  %v969_v45 = vperm.slane %v961_v33, %v4073_v23  ;;  %v999_v63 = vsel %vm198_vm8, 0.0, %v998_v21 }
 0x2cc   :  { %3601 = vmatpush.xpose.msk.msra.mxu1 %vm1158_vm9, %v825_v26  ;;  %v829_v53 = vsel %vm198_vm8, 0.0, %v828_v12  ;;  %v988_v58 = vrot.slane %v4610_v22, 4  ;;  %v472_v18 = vrot.slane %v469_v43, 4  ;;  %v497_v56 = vperm.slane %v4169_v59, %v4073_v23 }
 0x2ce   :  { %v989_v49 = vsel %vm198_vm8, %v4577_v4, %v988_v58  ;;  %v473_v42 = vsel %vm198_vm8, 0.0, %v472_v18  ;;  %v500_v4 = vrot.slane %v497_v56, 4 }
 0x2d0   :  { %3588 = vmatmul.msk.f32.vlgmr.msra.gmra.mxu2 %vm1158_vm9, %v449_v37  ;;  %3590 = vmatmul.msk.f32.vlgmr.msrb.gmra.mxu3 %vm1158_vm9, %v4286_v27  ;;  %v972_v27 = vrot.slane %v969_v45, 4  ;;  %v501_v59 = vsel %vm198_vm8, 0.0, %v500_v4 }
 0x2d1   :  { %3600 = vmatmul.msk.f32.vlgmr.msrb.gmra.mxu0 %vm1158_vm9, %v499_v57  ;;  %3605 = vmatpush.msk.msrb.mxu3 %vm2348_vm10, %v4599_v15  ;;  %v997_v15 = vperm.slane %v989_v49, %v4073_v23 }
 0x2d2   :  { %3615 = vmatpush.msk.msrb.mxu0 %vm2348_vm10, %v999_v63  ;;  %3603 = vmatpush.xpose.msk.msra.mxu2 %vm1158_vm9, %v829_v53  ;;  %v973_v48 = vsel %vm198_vm8, 0.0, %v972_v27 }
 0x2d3   :  { %3594 = vmatmul.msk.f32.vlgmr.msrb.gmra.mxu1 %vm1158_vm9, %v469_v43  ;;  %v1000_v29 = vrot.slane %v997_v15, 4 }
 0x2d4   :  { %3609 = vmatpush.msk.msrb.mxu1 %vm2348_vm10, %v969_v45 }
 0x2d5   :  { %v1001_v3 = vsel %vm198_vm8, 0.0, %v1000_v29 }
 0x2d8   :  { %3596 = vmatmul.msk.f32.vlgmr.msrb.gmra.mxu2 %vm1158_vm9, %v473_v42  ;;  %3598 = vmatmul.msk.f32.vlgmr.msra.gmra.mxu3 %vm1158_vm9, %v493_v36 }
 0x2d9   :  { %3611 = vmatpush.msk.msrb.mxu2 %vm2348_vm10, %v973_v48  ;;  %3613 = vmatpush.msk.msra.mxu3 %vm2348_vm10, %v993_v32 }
 0x2db   :  { %3602 = vmatmul.msk.f32.vlgmr.msra.gmra.mxu1 %vm1158_vm9, %v497_v56 }
 0x2dc   :  { %3617 = vmatpush.msk.msra.mxu1 %vm2348_vm10, %v997_v15 }
 0x2e0   :  { %3604 = vmatmul.msk.f32.vlgmr.msra.gmra.mxu2 %vm1158_vm9, %v501_v59 }
 0x2e1   :  { %3619 = vmatpush.msk.msra.mxu2 %vm2348_vm10, %v1001_v3 }
 0x317   :  { %v4709_v28 = vpop.f32.mrf.mxu1 }
 0x318   :  { %v1992_v22 = vsel %vm1991_vm11, %v4709_v28, -inf }
 0x319   :  { %v4713_v13 = vpop.f32.mrf.mxu0  ;;  %1993 = vmax.xlane.f32.xlu1 %v1992_v22 }
 0x31a   :  { %v1998_v16 = vsel %vm1991_vm11, %v4713_v13, -inf }
 0x31b   :  { %1999 = vmax.xlane.f32.xlu2 %v1998_v16 }
 0x31f   :  { %v4717_v24 = vpop.f32.mrf.mxu1 }
 0x320   :  { %v4719_v10 = vpop.f32.mrf.mxu2  ;;  %v2001_v54 = vsel %vm1991_vm11, %v4717_v24, -inf }
 0x321   :  { %v1995_v55 = vsel %vm1991_vm11, %v4719_v10, -inf }
 0x322   :  { %1996 = vmax.xlane.f32.xlu0 %v1995_v55 }
 0x323   :  { %2002 = vmax.xlane.f32.xlu2 %v2001_v54 }
 0x325   :  { %v4725_v19 = vpop.f32.mrf.mxu0 }
 0x326   :  { %v2019_v25 = vsel %vm1991_vm11, %v4725_v19, -inf }
 0x327   :  { %2020 = vmax.xlane.f32.xlu1 %v2019_v25  ;;  %v4729_v51 = vpop.f32.mrf.mxu1 }
 0x328   :  { %v2010_v31 = vsel %vm1991_vm11, %v4729_v51, -inf }
 0x329   :  { %v4731_v35 = vpop.f32.mrf.mxu2 }
 0x32a   :  { %v4733_v6 = vpop.f32.mrf.mxu3  ;;  %v2004_v52 = vsel %vm1991_vm11, %v4731_v35, -inf }
 0x32b   :  { %v2007_v1 = vsel %vm1991_vm11, %v4733_v6, -inf }
 0x32c   :  { %2008 = vmax.xlane.f32.xlu2 %v2007_v1 }
 0x32d   :  { %v4737_v38 = vpop.f32.mrf.mxu0 }
 0x32e   :  { %v2031_v47 = vsel %vm1991_vm11, %v4737_v38, -inf }
 0x32f   :  { %2011 = vmax.xlane.f32.xlu1 %v2010_v31  ;;  %2032 = vmax.xlane.f32.xlu0 %v2031_v47  ;;  %v4743_v17 = vpop.f32.mrf.mxu1 }
 0x330   :  { %v2022_v20 = vsel %vm1991_vm11, %v4743_v17, -inf }
 0x331   :  { %v4745_v36 = vpop.f32.mrf.mxu2 }
 0x332   :  { %v2013_v32 = vsel %vm1991_vm11, %v4745_v36, -inf }
 0x333   :  { %v4747_v7 = vpop.f32.mrf.mxu3 }
 0x334   :  { %v2016_v8 = vsel %vm1991_vm11, %v4747_v7, -inf }
 0x335   :  { %2017 = vmax.xlane.f32.xlu2 %v2016_v8  ;;  %v4755_v61 = vpop.f32.mrf.mxu0 }
 0x336   :  { %v2043_v14 = vsel %vm1991_vm11, %v4755_v61, -inf }
 0x337   :  { %2005 = vmax.xlane.f32.xlu0 %v2004_v52  ;;  %2014 = vmax.xlane.f32.xlu1 %v2013_v32  ;;  %v4759_v2 = vpop.f32.mrf.mxu1 }
 0x338   :  { %v2034_v37 = vsel %vm1991_vm11, %v4759_v2, -inf }
 0x339   :  { %v4767_v21 = vpop.f32.mrf.mxu2 }
 0x33a   :  { %v2025_v45 = vsel %vm1991_vm11, %v4767_v21, -inf }
 0x33b   :  { %v4757_v26 = vpop.f32.mrf.mxu3 }
 0x33c   :  { %v2028_v46 = vsel %vm1991_vm11, %v4757_v26, -inf }
 0x33d   :  { %2044 = vmax.xlane.f32.xlu2 %v2043_v14  ;;  %v4769_v33 = vpop.f32.mrf.mxu0 }
 0x33e   :  { %v2055_v57 = vsel %vm1991_vm11, %v4769_v33, -inf }
 0x33f   :  { %2023 = vmax.xlane.f32.xlu0 %v2022_v20  ;;  %2029 = vmax.xlane.f32.xlu1 %v2028_v46  ;;  %v4775_v43 = vpop.f32.mrf.mxu1 }
 0x340   :  { %v2046_v48 = vsel %vm1991_vm11, %v4775_v43, -inf }
 0x341   :  { %v4781_v63 = vpop.f32.mrf.mxu2 }
 0x342   :  { %v2037_v58 = vsel %vm1991_vm11, %v4781_v63, -inf }
 0x343   :  { %v4771_v12 = vpop.f32.mrf.mxu3 }
 0x344   :  { %v2040_v49 = vsel %vm1991_vm11, %v4771_v12, -inf }
 0x345   :  { %2035 = vmax.xlane.f32.xlu2 %v2034_v37 }
 0x346   :  { %v4783_v53 = vpop.f32.mrf.mxu0 }
 0x347   :  { %2056 = vmax.xlane.f32.xlu1 %v2055_v57  ;;  %2026 = vmax.xlane.f32.xlu0 %v2025_v45  ;;  %v2067_v27 = vsel %vm1991_vm11, %v4783_v53, -inf }
 0x348   :  { %v4793_v42 = vpop.f32.mrf.mxu1 }
 0x349   :  { %v2058_v56 = vsel %vm1991_vm11, %v4793_v42, -inf }
 0x34b   :  { %v4787_v18 = vpop.f32.mrf.mxu3  ;;  %v4805_v59 = vpop.f32.mrf.mxu2 }
 0x34c   :  { %v2052_v15 = vsel %vm1991_vm11, %v4787_v18, -inf  ;;  %v2049_v55 = vsel %vm1991_vm11, %v4805_v59, -inf }
 0x34d   :  { %2038 = vmax.xlane.f32.xlu2 %v2037_v58 }
 0x34e   :  { %v4807_v3 = vpop.f32.mrf.mxu0 }
 0x34f   :  { %2068 = vmax.xlane.f32.xlu1 %v2067_v27  ;;  %2041 = vmax.xlane.f32.xlu0 %v2040_v49  ;;  %v2079_v16 = vsel %vm1991_vm11, %v4807_v3, -inf }
 0x350   :  { %v4803_v29 = vpop.f32.mrf.mxu1 }
 0x351   :  { %v2070_v22 = vsel %vm1991_vm11, %v4803_v29, -inf }
 0x353   :  { %v4801_v4 = vpop.f32.mrf.mxu3  ;;  %v4825_v8 = vpop.f32.mrf.mxu2 }
 0x354   :  { %v2064_v31 = vsel %vm1991_vm11, %v4801_v4, -inf  ;;  %v2061_v32 = vsel %vm1991_vm11, %v4825_v8, -inf }
 0x355   :  { %2059 = vmax.xlane.f32.xlu2 %v2058_v56 }
 0x357   :  { %2047 = vmax.xlane.f32.xlu1 %v2046_v48  ;;  %2053 = vmax.xlane.f32.xlu0 %v2052_v15 }
 0x358   :  { %v4817_v25 = vpop.f32.mrf.mxu1 }
 0x359   :  { %v2082_v47 = vsel %vm1991_vm11, %v4817_v25, -inf }
 0x35b   :  { %v4815_v54 = vpop.f32.mrf.mxu3  ;;  %v4829_v52 = vpop.f32.mrf.mxu2 }
 0x35c   :  { %v2076_v1 = vsel %vm1991_vm11, %v4815_v54, -inf  ;;  %v2073_v14 = vsel %vm1991_vm11, %v4829_v52, -inf }
 0x35d   :  { %2071 = vmax.xlane.f32.xlu2 %v2070_v22 }
 0x35f   :  { %2080 = vmax.xlane.f32.xlu0 %v2079_v16  ;;  %2050 = vmax.xlane.f32.xlu1 %v2049_v55 }
 0x363   :  { %v4833_v20 = vpop.f32.mrf.mxu2 }
 0x364   :  { %v2085_v46 = vsel %vm1991_vm11, %v4833_v20, -inf }
 0x365   :  { %2077 = vmax.xlane.f32.xlu2 %v2076_v1 }
 0x367   :  { %2065 = vmax.xlane.f32.xlu0 %v2064_v31  ;;  %2083 = vmax.xlane.f32.xlu1 %v2082_v47 }
 0x36f   :  { %2062 = vmax.xlane.f32.xlu0 %v2061_v32 }
 0x377   :  { %2074 = vmax.xlane.f32.xlu0 %v2073_v14 }
 0x37f   :  { %2086 = vmax.xlane.f32.xlu0 %v2085_v46 }
 0x38c   :  { %v1994_v37 = vpop.xlane.xlu1 %1993 }
 0x38d   :  { %v2088_v58 = vsub.f32 %v4709_v28, %v1994_v37 }
 0x38e   :  { %v2000_v57 = vpop.xlane.xlu2 %1999 }
 0x38f   :  { %v2090_v45 = vsub.f32 %v4713_v13, %v2000_v57  ;;  %v2120_v49 = vmul.f32 1.442695, %v2088_v58 }
 0x391   :  { %v2124_v27 = vmul.f32 1.442695, %v2090_v45 }
 0x393   :  { %3697 = vpow2.f32 %v2124_v27 }
 0x394   :  { %3699 = vpow2.f32 %v2120_v49 }
 0x395   :  { %v1997_v56 = vpop.xlane.xlu0 %1996 }
 0x396   :  { %v2003_v48 = vpop.xlane.xlu2 %2002  ;;  %v2089_v22 = vsub.f32 %v4719_v10, %v1997_v56 }
 0x397   :  { %v2091_v15 = vsub.f32 %v4717_v24, %v2003_v48 }
 0x398   :  { %v2122_v13 = vmul.f32 1.442695, %v2089_v22 }
 0x399   :  { %v4841_v16 = vpop.eup %3697  ;;  %v2126_v55 = vmul.f32 1.442695, %v2091_v15 }
 0x39a   :  { %v2021_v1 = vpop.xlane.xlu1 %2020  ;;  %v2190_v31 = vsel %vm1991_vm11, %v4841_v16, 0.0  ;;  %v4846_v32 = vpop.eup %3699 }
 0x39b   :  { %3701 = vpow2.f32 %v2126_v55  ;;  %v2097_v28 = vsub.f32 %v4725_v19, %v2021_v1  ;;  %2191 = vadd.xlane.f32.xlu1 %v2190_v31  ;;  %v2184_v19 = vsel %vm1991_vm11, %v4846_v32, 0.0 }
 0x39c   :  { %3703 = vpow2.f32 %v2122_v13 }
 0x39d   :  { %v2138_v47 = vmul.f32 1.442695, %v2097_v28 }
 0x39f   :  { %v2009_v24 = vpop.xlane.xlu2 %2008  ;;  %3705 = vpow2.f32 %v2138_v47 }
 0x3a0   :  { %v2093_v10 = vsub.f32 %v4733_v6, %v2009_v24 }
 0x3a1   :  { %v4848_v14 = vpop.eup %3701 }
 0x3a2   :  { %v4851_v46 = vpop.xlane.xlu0 %2032  ;;  %v2012_v37 = vpop.xlane.xlu1 %2011  ;;  %v2193_v57 = vsel %vm1991_vm11, %v4848_v14, 0.0  ;;  %v2130_v58 = vmul.f32 1.442695, %v2093_v10 }
 0x3a3   :  { %v2094_v45 = vsub.f32 %v4729_v51, %v2012_v37  ;;  %2194 = vadd.xlane.f32.xlu0 %v2193_v57  ;;  %2185 = vadd.xlane.f32.xlu1 %v2184_v19  ;;  %v4858_v49 = vpop.eup %3703 }
 0x3a4   :  { %3707 = vpow2.f32 %v2130_v58  ;;  %v2187_v55 = vsel %vm1991_vm11, %v4858_v49, 0.0 }
 0x3a5   :  { %v2132_v27 = vmul.f32 1.442695, %v2094_v45  ;;  %v4860_v56 = vpop.eup %3705 }
 0x3a6   :  { %v2211_v51 = vsel %vm1991_vm11, %v4860_v56, 0.0 }
 0x3a7   :  { %3709 = vpow2.f32 %v2132_v27 }
 0x3a8   :  { %v2018_v6 = vpop.xlane.xlu2 %2017 }
 0x3a9   :  { %v2096_v48 = vsub.f32 %v4747_v7, %v2018_v6 }
 0x3aa   :  { %v2006_v15 = vpop.xlane.xlu0 %2005  ;;  %v2015_v22 = vpop.xlane.xlu1 %2014 }
 0x3ab   :  { %v2092_v1 = vsub.f32 %v4731_v35, %v2006_v15  ;;  %2188 = vadd.xlane.f32.xlu0 %v2187_v55  ;;  %2212 = vadd.xlane.f32.xlu1 %v2211_v51  ;;  %v2136_v31 = vmul.f32 1.442695, %v2096_v48  ;;  %v4868_v13 = vpop.eup %3707  ;;  %v2095_v45 = vsub.f32 %v4745_v36, %v2015_v22 }
 0x3ac   :  { %v2199_v37 = vsel %vm1991_vm11, %v4868_v13, 0.0 }
 0x3ad   :  { %v2128_v28 = vmul.f32 1.442695, %v2092_v1  ;;  %v4870_v47 = vpop.eup %3709  ;;  %v2134_v55 = vmul.f32 1.442695, %v2095_v45 }
 0x3ae   :  { %v2202_v57 = vsel %vm1991_vm11, %v4870_v47, 0.0 }
 0x3af   :  { %3711 = vpow2.f32 %v2128_v28 }
 0x3b0   :  { %v2045_v7 = vpop.xlane.xlu2 %2044  ;;  %3713 = vpow2.f32 %v2136_v31 }
 0x3b2   :  { %v2024_v24 = vpop.xlane.xlu0 %2023  ;;  %v2030_v10 = vpop.xlane.xlu1 %2029 }
 0x3b3   :  { %v2098_v35 = vsub.f32 %v4743_v17, %v2024_v24  ;;  %v2100_v19 = vsub.f32 %v4757_v26, %v2030_v10  ;;  %2200 = vadd.xlane.f32.xlu0 %v2199_v37  ;;  %2203 = vadd.xlane.f32.xlu1 %v2202_v57 }
 0x3b5   :  { %v4879_v58 = vpop.eup %3711  ;;  %v2140_v27 = vmul.f32 1.442695, %v2098_v35  ;;  %v2144_v6 = vmul.f32 1.442695, %v2100_v19 }
 0x3b6   :  { %v2196_v48 = vsel %vm1991_vm11, %v4879_v58, 0.0  ;;  %v4883_v15 = vpop.eup %3713 }
 0x3b7   :  { %3715 = vpow2.f32 %v2140_v27  ;;  %2197 = vadd.xlane.f32.xlu2 %v2196_v48  ;;  %v2208_v36 = vsel %vm1991_vm11, %v4883_v15, 0.0 }
 0x3b8   :  { %3717 = vpow2.f32 %v2144_v6  ;;  %v2036_v17 = vpop.xlane.xlu2 %2035  ;;  %v2105_v6 = vsub.f32 %v4755_v61, %v2045_v7 }
 0x3b9   :  { %v2102_v26 = vsub.f32 %v4759_v2, %v2036_v17  ;;  %3719 = vpow2.f32 %v2134_v55  ;;  %v2101_v17 = vsub.f32 %v4737_v38, %v4851_v46 }
 0x3ba   :  { %v2027_v51 = vpop.xlane.xlu0 %2026  ;;  %v4886_v1 = vpop.xlane.xlu1 %2056 }
 0x3bb   :  { %v2148_v22 = vmul.f32 1.442695, %v2102_v26  ;;  %2209 = vadd.xlane.f32.xlu0 %v2208_v36  ;;  %v2099_v31 = vsub.f32 %v4767_v21, %v2027_v51  ;;  %v2154_v26 = vmul.f32 1.442695, %v2105_v6  ;;  %v2146_v51 = vmul.f32 1.442695, %v2101_v17 }
 0x3bd   :  { %v4891_v28 = vpop.eup %3715  ;;  %3721 = vpow2.f32 %v2148_v22  ;;  %v2142_v37 = vmul.f32 1.442695, %v2099_v31 }
 0x3be   :  { %v4893_v24 = vpop.eup %3717  ;;  %v2214_v10 = vsel %vm1991_vm11, %v4891_v28, 0.0 }
 0x3bf   :  { %2215 = vadd.xlane.f32.xlu2 %v2214_v10  ;;  %v2220_v2 = vsel %vm1991_vm11, %v4893_v24, 0.0  ;;  %v4900_v19 = vpop.eup %3719  ;;  %3723 = vpow2.f32 %v2142_v37 }
 0x3c0   :  { %2221 = vadd.xlane.f32.xlu1 %v2220_v2  ;;  %v2039_v57 = vpop.xlane.xlu2 %2038 }
 0x3c1   :  { %v2103_v35 = vsub.f32 %v4781_v63, %v2039_v57  ;;  %v2205_v63 = vsel %vm1991_vm11, %v4900_v19, 0.0 }
 0x3c2   :  { %v2042_v21 = vpop.xlane.xlu0 %2041  ;;  %v4902_v45 = vpop.xlane.xlu1 %2068 }
 0x3c3   :  { %v4904_v27 = vpop.eup %3721  ;;  %v2150_v48 = vmul.f32 1.442695, %v2103_v35  ;;  %v2104_v46 = vsub.f32 %v4771_v12, %v2042_v21 }
 0x3c4   :  { %v2226_v55 = vsel %vm1991_vm11, %v4904_v27, 0.0 }
 0x3c5   :  { %3725 = vpow2.f32 %v2150_v48  ;;  %2227 = vadd.xlane.f32.xlu0 %v2226_v55  ;;  %v4913_v36 = vpop.eup %3723  ;;  %v2152_v6 = vmul.f32 1.442695, %v2104_v46 }
 0x3c6   :  { %3727 = vpow2.f32 %v2154_v26  ;;  %v2217_v37 = vsel %vm1991_vm11, %v4913_v36, 0.0 }
 0x3c7   :  { %2206 = vadd.xlane.f32.xlu2 %v2205_v63  ;;  %3729 = vpow2.f32 %v2146_v51  ;;  %v2109_v63 = vsub.f32 %v4769_v33, %v4886_v1 }
 0x3c8   :  { %v2060_v1 = vpop.xlane.xlu2 %2059 }
 0x3ca   :  { %v2054_v22 = vpop.xlane.xlu0 %2053  ;;  %v2048_v61 = vpop.xlane.xlu1 %2047 }
 0x3cb   :  { %v4915_v7 = vpop.eup %3725  ;;  %v2108_v31 = vsub.f32 %v4787_v18, %v2054_v22  ;;  %v2106_v10 = vsub.f32 %v4775_v43, %v2048_v61  ;;  %v2162_v22 = vmul.f32 1.442695, %v2109_v63 }
 0x3cc   :  { %v2229_v38 = vsel %vm1991_vm11, %v4915_v7, 0.0  ;;  %v4924_v35 = vpop.eup %3727 }
 0x3cd   :  { %v2156_v2 = vmul.f32 1.442695, %v2106_v10  ;;  %2230 = vadd.xlane.f32.xlu0 %v2229_v38  ;;  %v2160_v57 = vmul.f32 1.442695, %v2108_v31  ;;  %v4928_v48 = vpop.eup %3729  ;;  %v2235_v12 = vsel %vm1991_vm11, %v4924_v35, 0.0 }
 0x3ce   :  { %v2223_v26 = vsel %vm1991_vm11, %v4928_v48, 0.0 }
 0x3cf   :  { %2218 = vadd.xlane.f32.xlu2 %v2217_v37  ;;  %3731 = vpow2.f32 %v2156_v2 }
 0x3d0   :  { %3733 = vpow2.f32 %v2160_v57 }
 0x3d1   :  { %3735 = vpow2.f32 %v2152_v6 }
 0x3d2   :  { %v4926_v18 = vpop.xlane.xlu0 %2080  ;;  %v2051_v43 = vpop.xlane.xlu1 %2050 }
 0x3d3   :  { %v2107_v55 = vsub.f32 %v4805_v59, %v2051_v43 }
 0x3d5   :  { %v2158_v21 = vmul.f32 1.442695, %v2107_v55  ;;  %2236 = vadd.xlane.f32.xlu0 %v2235_v12  ;;  %v4933_v17 = vpop.eup %3731  ;;  %v2110_v55 = vsub.f32 %v4793_v42, %v2060_v1 }
 0x3d6   :  { %v2238_v51 = vsel %vm1991_vm11, %v4933_v17, 0.0  ;;  %v4941_v59 = vpop.eup %3733 }
 0x3d7   :  { %2224 = vadd.xlane.f32.xlu2 %v2223_v26  ;;  %3737 = vpow2.f32 %v2158_v21  ;;  %2239 = vadd.xlane.f32.xlu1 %v2238_v51  ;;  %v4943_v31 = vpop.eup %3735  ;;  %v2244_v10 = vsel %vm1991_vm11, %v4941_v59, 0.0  ;;  %v2072_v21 = vpop.xlane.xlu2 %2071  ;;  %v2164_v63 = vmul.f32 1.442695, %v2110_v55 }
 0x3d8   :  { %3739 = vpow2.f32 %v2162_v22  ;;  %v2232_v46 = vsel %vm1991_vm11, %v4943_v31, 0.0  ;;  %v2114_v42 = vsub.f32 %v4803_v29, %v2072_v21  ;;  %v2117_v29 = vsub.f32 %v4807_v3, %v4926_v18 }
 0x3da   :  { %v2066_v61 = vpop.xlane.xlu0 %2065 }
 0x3db   :  { %v2112_v38 = vsub.f32 %v4801_v4, %v2066_v61 }
 0x3dd   :  { %2245 = vadd.xlane.f32.xlu0 %v2244_v10  ;;  %v4947_v33 = vpop.eup %3737  ;;  %v2168_v37 = vmul.f32 1.442695, %v2112_v38 }
 0x3de   :  { %v2241_v2 = vsel %vm1991_vm11, %v4947_v33, 0.0  ;;  %v4955_v43 = vpop.eup %3739 }
 0x3df   :  { %2233 = vadd.xlane.f32.xlu2 %v2232_v46  ;;  %2242 = vadd.xlane.f32.xlu1 %v2241_v2  ;;  %3741 = vpow2.f32 %v2168_v37  ;;  %v2247_v4 = vsel %vm1991_vm11, %v4955_v43, 0.0  ;;  %v2172_v46 = vmul.f32 1.442695, %v2114_v42  ;;  %v2078_v2 = vpop.xlane.xlu2 %2077 }
 0x3e0   :  { %v2116_v55 = vsub.f32 %v4815_v54, %v2078_v2 }
 0x3e2   :  { %v2063_v57 = vpop.xlane.xlu0 %2062 }
 0x3e3   :  { %v2111_v6 = vsub.f32 %v4825_v8, %v2063_v57  ;;  %v2113_v8 = vsub.f32 %v4783_v53, %v4902_v45  ;;  %v2084_v45 = vpop.xlane.xlu1 %2083 }
 0x3e5   :  { %v2166_v12 = vmul.f32 1.442695, %v2111_v6  ;;  %v4961_v22 = vpop.eup %3741 }
 0x3e6   :  { %v2256_v38 = vsel %vm1991_vm11, %v4961_v22, 0.0 }
 0x3e7   :  { %3743 = vpow2.f32 %v2166_v12  ;;  %2248 = vadd.xlane.f32.xlu1 %v2247_v4  ;;  %v2118_v4 = vsub.f32 %v4817_v25, %v2084_v45 }
 0x3e8   :  { %3745 = vpow2.f32 %v2164_v63 }
 0x3e9   :  { %v2180_v18 = vmul.f32 1.442695, %v2118_v4 }
 0x3ea   :  { %v2075_v26 = vpop.xlane.xlu0 %2074 }
 0x3eb   :  { %v2115_v51 = vsub.f32 %v4829_v52, %v2075_v26  ;;  %v2170_v52 = vmul.f32 1.442695, %v2113_v8  ;;  %v2176_v26 = vmul.f32 1.442695, %v2116_v55 }
 0x3ed   :  { %v4965_v61 = vpop.eup %3743  ;;  %v2174_v10 = vmul.f32 1.442695, %v2115_v51 }
 0x3ee   :  { %v2253_v1 = vsel %vm1991_vm11, %v4965_v61, 0.0  ;;  %v4972_v53 = vpop.eup %3745 }
 0x3ef   :  { %3747 = vpow2.f32 %v2174_v10  ;;  %2254 = vadd.xlane.f32.xlu2 %v2253_v1  ;;  %2257 = vadd.xlane.f32.xlu1 %v2256_v38  ;;  %v2250_v63 = vsel %vm1991_vm11, %v4972_v53, 0.0 }
 0x3f0   :  { %3749 = vpow2.f32 %v2170_v52 }
 0x3f1   :  { %3751 = vpow2.f32 %v2172_v46 }
 0x3f2   :  { %v2087_v37 = vpop.xlane.xlu0 %2086 }
 0x3f3   :  { %v2119_v57 = vsub.f32 %v4833_v20, %v2087_v37  ;;  %v2178_v20 = vmul.f32 1.442695, %v2117_v29 }
 0x3f5   :  { %v4977_v6 = vpop.eup %3747  ;;  %v2182_v12 = vmul.f32 1.442695, %v2119_v57 }
 0x3f6   :  { %v2265_v21 = vsel %vm1991_vm11, %v4977_v6, 0.0  ;;  %v4985_v3 = vpop.eup %3749 }
 0x3f7   :  { %3753 = vpow2.f32 %v2182_v12  ;;  %2266 = vadd.xlane.f32.xlu0 %v2265_v21  ;;  %2251 = vadd.xlane.f32.xlu2 %v2250_v63  ;;  %v4987_v51 = vpop.eup %3751  ;;  %v2259_v8 = vsel %vm1991_vm11, %v4985_v3, 0.0  ;;  %v1021_v12 = vperm.slane %v4560_v60, %v4073_v23  ;;  %v1017_v60 = vperm.slane %v4568_v9, %v4073_v23 }
 0x3f8   :  { %3755 = vpow2.f32 %v2178_v20  ;;  %v2262_v25 = vsel %vm1991_vm11, %v4987_v51, 0.0 }
 0x3f9   :  { %3757 = vpow2.f32 %v2176_v26  ;;  %v1024_v4 = vrot.slane %v1021_v12, 4 }
 0x3fa   :  { %3759 = vpow2.f32 %v2180_v18 }
 0x3fd   :  { %v4989_v54 = vpop.eup %3753 }
 0x3fe   :  { %v2277_v42 = vsel %vm1991_vm11, %v4989_v54, 0.0  ;;  %v4997_v10 = vpop.eup %3755 }
 0x3ff   :  { %2263 = vadd.xlane.f32.xlu0 %v2262_v25  ;;  %2260 = vadd.xlane.f32.xlu2 %v2259_v8  ;;  %v4999_v1 = vpop.eup %3757  ;;  %v2271_v52 = vsel %vm1991_vm11, %v4997_v10, 0.0  ;;  %v1025_v25 = vsel %vm198_vm8, 0.0, %v1024_v4  ;;  %v1022_v8 = vrot.slane %v1017_v60, 4  ;;  %v1069_v4 = vperm.slane %v4587_v44, %v4073_v23 }
 0x400   :  { %2278 = vadd.xlane.f32.xlu1 %v2277_v42  ;;  %v5001_v38 = vpop.eup %3759  ;;  %v2268_v46 = vsel %vm1991_vm11, %v4999_v1, 0.0 }
 0x401   :  { %v2274_v2 = vsel %vm1991_vm11, %v5001_v38, 0.0  ;;  %v1023_v9 = vsel %vm198_vm8, 0.0, %v1022_v8 }
 0x407   :  { %2272 = vadd.xlane.f32.xlu0 %v2271_v52  ;;  %2269 = vadd.xlane.f32.xlu2 %v2268_v46  ;;  %v1045_v46 = vperm.slane %v4621_v62, %v4073_v23  ;;  %v1049_v62 = vperm.slane %v4607_v40, %v4073_v23 }
 0x408   :  { %2275 = vadd.xlane.f32.xlu1 %v2274_v2 }
 0x40e   :  { %v2192_v37 = vpop.xlane.xlu1 %2191 }
 0x40f   :  { %3761 = vrcp.f32 %v2192_v37  ;;  %v1050_v37 = vrot.slane %v1045_v46, 4 }
 0x415   :  { %v3762_v45 = vpop.eup %3761 }
 0x416   :  { %v2314_v57 = vmul.f32 %v3762_v45, %v4841_v16  ;;  %v2195_v29 = vpop.xlane.xlu0 %2194  ;;  %v2186_v55 = vpop.xlane.xlu1 %2185 }
 0x417   :  { %3763 = vrcp.f32 %v2195_v29 }
 0x418   :  { %3765 = vrcp.f32 %v2186_v55  ;;  %3610 = vmatmul.msk.f32.vlgmr.msrb.gmra.mxu1 %vm2344_vm12, %v2314_v57 }
 0x419   :  { %3625 = vmatpush.msk.msrb.mxu1 %vm2348_vm10, %v1021_v12  ;;  %v1051_v12 = vsel %vm198_vm8, 0.0, %v1050_v37  ;;  %v1097_v37 = vperm.slane %v4633_v30, %v4073_v23 }
 0x41d   :  { %v3764_v21 = vpop.eup %3763 }
 0x41e   :  { %v3766_v63 = vpop.eup %3765  ;;  %v2315_v20 = vmul.f32 %v3764_v21, %v4848_v14  ;;  %v2189_v26 = vpop.xlane.xlu0 %2188 }
 0x41f   :  { %v2213_v18 = vpop.xlane.xlu1 %2212  ;;  %v2312_v16 = vmul.f32 %v3766_v63, %v4846_v32  ;;  %3767 = vrcp.f32 %v2189_v26 }
 0x420   :  { %3612 = vmatmul.msk.f32.vlgmr.msrb.gmra.mxu2 %vm2344_vm12, %v2315_v20  ;;  %v1074_v20 = vrot.slane %v1069_v4, 4 }
 0x421   :  { %3606 = vmatmul.msk.f32.vlgmr.msrb.gmra.mxu3 %vm2344_vm12, %v2312_v16  ;;  %3627 = vmatpush.msk.msrb.mxu2 %vm2348_vm10, %v1025_v25 }
 0x422   :  { %3621 = vmatpush.msk.msrb.mxu3 %vm2348_vm10, %v1017_v60 }
 0x425   :  { %v3768_v14 = vpop.eup %3767 }
 0x426   :  { %v2313_v42 = vmul.f32 %v3768_v14, %v4858_v49  ;;  %v2201_v52 = vpop.xlane.xlu0 %2200  ;;  %v1073_v14 = vperm.slane %v4590_v34, %v4073_v23 }
 0x427   :  { %v2204_v32 = vpop.xlane.xlu1 %2203  ;;  %3769 = vrcp.f32 %v2201_v52 }
 0x428   :  { %3771 = vrcp.f32 %v2204_v32  ;;  %3608 = vmatmul.msk.f32.vlgmr.msra.gmra.mxu0 %vm2344_vm12, %v2313_v42  ;;  %v1052_v42 = vrot.slane %v1049_v62, 4 }
 0x429   :  { %3623 = vmatpush.msk.msra.mxu0 %vm2348_vm10, %v1023_v9 }
 0x42a   :  { %v2198_v2 = vpop.xlane.xlu2 %2197 }
 0x42b   :  { %3773 = vrcp.f32 %v2198_v2  ;;  %v1053_v2 = vsel %vm198_vm8, 0.0, %v1052_v42 }
 0x42c   :  { %3775 = vrcp.f32 %v2213_v18 }
 0x42d   :  { %v3770_v45 = vpop.eup %3769 }
 0x42e   :  { %v3772_v57 = vpop.eup %3771  ;;  %v2317_v49 = vmul.f32 %v3770_v45, %v4868_v13  ;;  %v2210_v29 = vpop.xlane.xlu0 %2209  ;;  %v1101_v45 = vperm.slane %v4648_v41, %v4073_v23 }
 0x42f   :  { %v2318_v55 = vmul.f32 %v3772_v57, %v4870_v47  ;;  %3777 = vrcp.f32 %v2210_v29 }
 0x430   :  { %3616 = vmatmul.msk.f32.vlgmr.msrb.gmra.mxu0 %vm2344_vm12, %v2317_v49 }
 0x431   :  { %v3774_v21 = vpop.eup %3773  ;;  %3618 = vmatmul.msk.f32.vlgmr.msra.gmra.mxu1 %vm2344_vm12, %v2318_v55  ;;  %3631 = vmatpush.msk.msrb.mxu0 %vm2348_vm10, %v1051_v12  ;;  %v1102_v55 = vrot.slane %v1097_v37, 4 }
 0x432   :  { %v2316_v13 = vmul.f32 %v3774_v21, %v4879_v58  ;;  %v2216_v63 = vpop.xlane.xlu2 %2215  ;;  %3633 = vmatpush.msk.msra.mxu1 %vm2348_vm10, %v1049_v62  ;;  %v3776_v47 = vpop.eup %3775  ;;  %v1075_v58 = vsel %vm198_vm8, 0.0, %v1074_v20  ;;  %v1104_v62 = vrot.slane %v1101_v45, 4 }
 0x433   :  { %3779 = vrcp.f32 %v2216_v63  ;;  %v2222_v40 = vpop.xlane.xlu1 %2221  ;;  %v2321_v44 = vmul.f32 %v3776_v47, %v4860_v56  ;;  %v1103_v20 = vsel %vm198_vm8, 0.0, %v1102_v55 }
 0x434   :  { %3614 = vmatmul.msk.f32.vlgmr.msra.gmra.mxu3 %vm2344_vm12, %v2316_v13  ;;  %3781 = vrcp.f32 %v2222_v40 }
 0x435   :  { %v3778_v26 = vpop.eup %3777  ;;  %3629 = vmatpush.msk.msra.mxu3 %vm2348_vm10, %v1045_v46 }
 0x436   :  { %v2320_v18 = vmul.f32 %v3778_v26, %v4883_v15  ;;  %v1125_v26 = vperm.slane %v4636_v0, %v4073_v23 }
 0x438   :  { %v2228_v16 = vpop.xlane.xlu0 %2227  ;;  %3624 = vmatmul.msk.f32.vlgmr.msra.gmra.mxu0 %vm2344_vm12, %v2321_v44 }
 0x439   :  { %v3780_v60 = vpop.eup %3779  ;;  %3783 = vrcp.f32 %v2228_v16  ;;  %3639 = vmatpush.msk.msra.mxu0 %vm2348_vm10, %v1075_v58  ;;  %v1128_v16 = vrot.slane %v1125_v26, 4 }
 0x43a   :  { %v2322_v25 = vmul.f32 %v3780_v60, %v4891_v28  ;;  %v2207_v8 = vpop.xlane.xlu2 %2206  ;;  %v3782_v56 = vpop.eup %3781 }
 0x43b   :  { %3785 = vrcp.f32 %v2207_v8  ;;  %v2324_v28 = vmul.f32 %v3782_v56, %v4893_v24  ;;  %v1076_v24 = vrot.slane %v1073_v14, 4 }
 0x43c   :  { %3622 = vmatmul.msk.f32.vlgmr.msrb.gmra.mxu3 %vm2344_vm12, %v2320_v18  ;;  %3626 = vmatmul.msk.f32.vlgmr.msrb.gmra.mxu1 %vm2344_vm12, %v2322_v25 }
 0x43d   :  { %3637 = vmatpush.msk.msrb.mxu3 %vm2348_vm10, %v1069_v4  ;;  %3641 = vmatpush.msk.msrb.mxu1 %vm2348_vm10, %v1073_v14  ;;  %v1077_v41 = vsel %vm198_vm8, 0.0, %v1076_v24  ;;  %v1129_v14 = vsel %vm198_vm8, 0.0, %v1128_v16 }
 0x43f   :  { %v3784_v15 = vpop.eup %3783 }
 0x440   :  { %v2326_v32 = vmul.f32 %v3784_v15, %v4904_v27  ;;  %v2231_v46 = vpop.xlane.xlu0 %2230 }
 0x441   :  { %v3786_v52 = vpop.eup %3785 }
 0x442   :  { %v2319_v9 = vmul.f32 %v3786_v52, %v4900_v19  ;;  %v2219_v34 = vpop.xlane.xlu2 %2218 }
 0x443   :  { %3787 = vrcp.f32 %v2219_v34 }
 0x444   :  { %3620 = vmatmul.msk.f32.vlgmr.msra.gmra.mxu2 %vm2344_vm12, %v2319_v9  ;;  %3630 = vmatmul.msk.f32.vlgmr.msra.gmra.mxu3 %vm2344_vm12, %v2324_v28  ;;  %3789 = vrcp.f32 %v2231_v46 }
 0x445   :  { %3634 = vmatmul.msk.f32.vlgmr.msra.gmra.mxu1 %vm2344_vm12, %v2326_v32  ;;  %3635 = vmatpush.msk.msra.mxu2 %vm2348_vm10, %v1053_v2 }
 0x446   :  { %3645 = vmatpush.msk.msra.mxu3 %vm2348_vm10, %v1097_v37  ;;  %3649 = vmatpush.msk.msra.mxu1 %vm2348_vm10, %v1101_v45 }
 0x448   :  { %v2237_v30 = vpop.xlane.xlu0 %2236 }
 0x449   :  { %v3788_v19 = vpop.eup %3787 }
 0x44a   :  { %v2323_v27 = vmul.f32 %v3788_v19, %v4913_v36  ;;  %v2225_v57 = vpop.xlane.xlu2 %2224  ;;  %v2240_v49 = vpop.xlane.xlu1 %2239 }
 0x44b   :  { %3791 = vrcp.f32 %v2225_v57  ;;  %v3790_v29 = vpop.eup %3789 }
 0x44c   :  { %3793 = vrcp.f32 %v2240_v49  ;;  %3628 = vmatmul.msk.f32.vlgmr.msrb.gmra.mxu2 %vm2344_vm12, %v2323_v27  ;;  %v2327_v21 = vmul.f32 %v3790_v29, %v4915_v7  ;;  %v1105_v7 = vsel %vm198_vm8, 0.0, %v1104_v62 }
 0x44d   :  { %3643 = vmatpush.msk.msrb.mxu2 %vm2348_vm10, %v1077_v41  ;;  %3795 = vrcp.f32 %v2237_v30 }
 0x451   :  { %v3792_v12 = vpop.eup %3791 }
 0x452   :  { %v3794_v4 = vpop.eup %3793  ;;  %v2325_v36 = vmul.f32 %v3792_v12, %v4928_v48  ;;  %v2234_v13 = vpop.xlane.xlu2 %2233  ;;  %v1121_v48 = vperm.slane %v4628_v39, %v4073_v23 }
 0x453   :  { %v2330_v63 = vmul.f32 %v3794_v4, %v4933_v17  ;;  %3797 = vrcp.f32 %v2234_v13  ;;  %v2243_v47 = vpop.xlane.xlu1 %2242  ;;  %v2246_v17 = vpop.xlane.xlu0 %2245 }
 0x454   :  { %3799 = vrcp.f32 %v2243_v47  ;;  %3632 = vmatmul.msk.f32.vlgmr.msrb.gmra.mxu0 %vm2344_vm12, %v2325_v36  ;;  %3636 = vmatmul.msk.f32.vlgmr.msra.gmra.mxu2 %vm2344_vm12, %v2327_v21  ;;  %v3796_v40 = vpop.eup %3795  ;;  %v1126_v18 = vrot.slane %v1121_v48, 4 }
 0x455   :  { %3642 = vmatmul.msk.f32.vlgmr.msrb.gmra.mxu1 %vm2344_vm12, %v2330_v63  ;;  %3647 = vmatpush.msk.msrb.mxu0 %vm2348_vm10, %v1103_v20  ;;  %3801 = vrcp.f32 %v2246_v17  ;;  %v2329_v58 = vmul.f32 %v3796_v40, %v4924_v35  ;;  %v1149_v35 = vperm.slane %v4666_v50, %v4073_v23  ;;  %v1153_v50 = vperm.slane %v4672_v11, %v4073_v23 }
 0x456   :  { %3651 = vmatpush.msk.msra.mxu2 %vm2348_vm10, %v1105_v7  ;;  %3657 = vmatpush.msk.msrb.mxu1 %vm2348_vm10, %v1125_v26  ;;  %v1127_v39 = vsel %vm198_vm8, 0.0, %v1126_v18 }
 0x459   :  { %v3798_v44 = vpop.eup %3797 }
 0x45a   :  { %v3800_v0 = vpop.eup %3799  ;;  %v2328_v60 = vmul.f32 %v3798_v44, %v4943_v31 }
 0x45b   :  { %v2331_v25 = vmul.f32 %v3800_v0, %v4947_v33  ;;  %v2249_v8 = vpop.xlane.xlu1 %2248  ;;  %v3802_v31 = vpop.eup %3801  ;;  %v1154_v33 = vrot.slane %v1149_v35, 4 }
 0x45c   :  { %3803 = vrcp.f32 %v2249_v8  ;;  %3638 = vmatmul.msk.f32.vlgmr.msrb.gmra.mxu3 %vm2344_vm12, %v2328_v60  ;;  %3640 = vmatmul.msk.f32.vlgmr.msra.gmra.mxu0 %vm2344_vm12, %v2329_v58  ;;  %v2332_v15 = vmul.f32 %v3802_v31, %v4941_v59  ;;  %v1156_v59 = vrot.slane %v1153_v50, 4 }
 0x45d   :  { %3644 = vmatmul.msk.f32.vlgmr.msrb.gmra.mxu2 %vm2344_vm12, %v2331_v25  ;;  %3653 = vmatpush.msk.msrb.mxu3 %vm2348_vm10, %v1121_v48  ;;  %v1155_v28 = vsel %vm198_vm8, 0.0, %v1154_v33 }
 0x45e   :  { %3655 = vmatpush.msk.msra.mxu0 %vm2348_vm10, %v1127_v39  ;;  %3659 = vmatpush.msk.msrb.mxu2 %vm2348_vm10, %v1129_v14  ;;  %v1157_v11 = vsel %vm198_vm8, 0.0, %v1156_v59 }
 0x462   :  { %v3804_v56 = vpop.eup %3803  ;;  %v2255_v42 = vpop.xlane.xlu2 %2254 }
 0x463   :  { %v2333_v52 = vmul.f32 %v3804_v56, %v4955_v43  ;;  %3805 = vrcp.f32 %v2255_v42  ;;  %v2258_v32 = vpop.xlane.xlu1 %2257 }
 0x464   :  { %3807 = vrcp.f32 %v2258_v32  ;;  %3646 = vmatmul.msk.f32.vlgmr.msra.gmra.mxu3 %vm2344_vm12, %v2332_v15 }
 0x465   :  { %3648 = vmatmul.msk.f32.vlgmr.msrb.gmra.mxu0 %vm2344_vm12, %v2333_v52  ;;  %3661 = vmatpush.msk.msra.mxu3 %vm2348_vm10, %v1149_v35 }
 0x466   :  { %3663 = vmatpush.msk.msrb.mxu0 %vm2348_vm10, %v1155_v28 }
 0x469   :  { %v3806_v9 = vpop.eup %3805 }
 0x46a   :  { %v3808_v46 = vpop.eup %3807  ;;  %v2335_v43 = vmul.f32 %v3806_v9, %v4965_v61  ;;  %v2267_v34 = vpop.xlane.xlu0 %2266 }
 0x46b   :  { %v2252_v2 = vpop.xlane.xlu2 %2251  ;;  %v2336_v37 = vmul.f32 %v3808_v46, %v4961_v22  ;;  %3809 = vrcp.f32 %v2267_v34 }
 0x46c   :  { %3811 = vrcp.f32 %v2252_v2  ;;  %3652 = vmatmul.msk.f32.vlgmr.msra.gmra.mxu2 %vm2344_vm12, %v2335_v43 }
 0x46d   :  { %3654 = vmatmul.msk.f32.vlgmr.msrb.gmra.mxu3 %vm2344_vm12, %v2336_v37  ;;  %3667 = vmatpush.msk.msra.mxu2 %vm2348_vm10, %v1157_v11 }
 0x471   :  { %v3810_v45 = vpop.eup %3809 }
 0x472   :  { %v3812_v24 = vpop.eup %3811  ;;  %v2339_v19 = vmul.f32 %v3810_v45, %v4977_v6  ;;  %v2264_v27 = vpop.xlane.xlu0 %2263 }
 0x473   :  { %v2261_v61 = vpop.xlane.xlu2 %2260  ;;  %v2334_v57 = vmul.f32 %v3812_v24, %v4972_v53  ;;  %3813 = vrcp.f32 %v2264_v27  ;;  %v2279_v22 = vpop.xlane.xlu1 %2278 }
 0x474   :  { %3815 = vrcp.f32 %v2261_v61  ;;  %3660 = vmatmul.msk.f32.vlgmr.msrb.gmra.mxu2 %vm2344_vm12, %v2339_v19 }
 0x475   :  { %3817 = vrcp.f32 %v2279_v22  ;;  %3650 = vmatmul.msk.f32.vlgmr.msra.gmra.mxu1 %vm2344_vm12, %v2334_v57 }
 0x476   :  { %3665 = vmatpush.msk.msra.mxu1 %vm2348_vm10, %v1153_v50 }
 0x479   :  { %v3814_v49 = vpop.eup %3813 }
 0x47a   :  { %v3816_v30 = vpop.eup %3815  ;;  %v2338_v41 = vmul.f32 %v3814_v49, %v4987_v51  ;;  %v2273_v29 = vpop.xlane.xlu0 %2272 }
 0x47b   :  { %v2270_v6 = vpop.xlane.xlu2 %2269  ;;  %v3818_v55 = vpop.eup %3817  ;;  %v2337_v12 = vmul.f32 %v3816_v30, %v4985_v3  ;;  %3819 = vrcp.f32 %v2273_v29 }
 0x47c   :  { %v2276_v53 = vpop.xlane.xlu1 %2275  ;;  %v2343_v62 = vmul.f32 %v3818_v55, %v4989_v54  ;;  %3821 = vrcp.f32 %v2270_v6 }
 0x47d   :  { %3823 = vrcp.f32 %v2276_v53  ;;  %3656 = vmatmul.msk.f32.vlgmr.msra.gmra.mxu0 %vm2344_vm12, %v2337_v12  ;;  %3658 = vmatmul.msk.f32.vlgmr.msrb.gmra.mxu1 %vm2344_vm12, %v2338_v41 }
 0x47e   :  { %3668 = vmatmul.msk.f32.vlgmr.msra.gmra.mxu2 %vm2344_vm12, %v2343_v62 }
 0x481   :  { %v3820_v4 = vpop.eup %3819 }
 0x482   :  { %v3822_v21 = vpop.eup %3821  ;;  %v2341_v51 = vmul.f32 %v3820_v4, %v4997_v10 }
 0x483   :  { %v3824_v36 = vpop.eup %3823  ;;  %v2340_v13 = vmul.f32 %v3822_v21, %v4999_v1 }
 0x484   :  { %v2342_v3 = vmul.f32 %v3824_v36, %v5001_v38 }
 0x485   :  { %3662 = vmatmul.msk.f32.vlgmr.msra.gmra.mxu3 %vm2344_vm12, %v2340_v13  ;;  %3664 = vmatmul.msk.f32.vlgmr.msrb.gmra.mxu0 %vm2344_vm12, %v2341_v51 }
 0x486   :  { %3666 = vmatmul.msk.f32.vlgmr.msra.gmra.mxu1 %vm2344_vm12, %v2342_v3 }
 0x495   :  { %v2421_v20 = vpop.f32.mrf.mxu1 }
 0x496   :  { %v3178_v61 = vrot.slane %v2421_v20, 4 }
 0x4a3   :  { %v2447_v54 = vpop.f32.mrf.mxu2 }
 0x4a4   :  { %v2369_v47 = vpop.f32.mrf.mxu3  ;;  %v3184_v33 = vrot.slane %v2447_v54, 4 }
 0x4a5   :  { %v2395_v63 = vpop.f32.mrf.mxu0  ;;  %v3179_v6 = vsel %vm198_vm8, %v3178_v61, %v2369_v47 }
 0x4a6   :  { %v3185_v46 = vsel %vm198_vm8, %v3184_v33, %v2395_v63  ;;  %v3183_v20 = vperm.slane %v3179_v6, %v4050_v5 }
 0x4a7   :  { %v3189_v24 = vperm.slane %v3185_v46, %v4050_v5 }
 0x4a9   :  { %v3190_v62 = vrot.slane %v3189_v24, 4 }
 0x4ad   :  { %v2499_v7 = vpop.f32.mrf.mxu0 }
 0x4ae   :  { %v2525_v17 = vpop.f32.mrf.mxu1 }
 0x4af   :  { %v3198_v57 = vrot.slane %v2525_v17, 4 }
 0x4b5   :  { %v2603_v40 = vpop.f32.mrf.mxu0 }
 0x4b7   :  { %v2473_v48 = vpop.f32.mrf.mxu3 }
 0x4b8   :  { %v3199_v55 = vsel %vm198_vm8, %v3198_v57, %v2473_v48 }
 0x4b9   :  { %v2629_v1 = vpop.f32.mrf.mxu1  ;;  %v3203_v47 = vperm.slane %v3199_v55, %v4050_v5 }
 0x4ba   :  { %v3218_v52 = vrot.slane %v2629_v1, 4  ;;  %v3191_v1 = vsel %vm198_vm8, %v3190_v62, %v3183_v20 }
 0x4bf   :  { %v2577_v44 = vpop.f32.mrf.mxu3 }
 0x4c0   :  { %v3219_v43 = vsel %vm198_vm8, %v3218_v52, %v2577_v44 }
 0x4c1   :  { %v3223_v19 = vperm.slane %v3219_v43, %v4050_v5 }
 0x4c2   :  { %v2733_v0 = vpop.f32.mrf.mxu1 }
 0x4c3   :  { %v3238_v28 = vrot.slane %v2733_v0, 4 }
 0x4c7   :  { %v2551_v26 = vpop.f32.mrf.mxu2  ;;  %v2681_v16 = vpop.f32.mrf.mxu3 }
 0x4c8   :  { %v3204_v56 = vrot.slane %v2551_v26, 4  ;;  %v3239_v37 = vsel %vm198_vm8, %v3238_v28, %v2681_v16 }
 0x4c9   :  { %v3243_v22 = vperm.slane %v3239_v37, %v4050_v5 }
 0x4ca   :  { %v3205_v34 = vsel %vm198_vm8, %v3204_v56, %v2499_v7 }
 0x4cb   :  { %v3209_v27 = vperm.slane %v3205_v34, %v4050_v5 }
 0x4cd   :  { %v3210_v4 = vrot.slane %v3209_v27, 4 }
 0x4cf   :  { %v2655_v10 = vpop.f32.mrf.mxu2  ;;  %v3211_v0 = vsel %vm198_vm8, %v3210_v4, %v3203_v47 }
 0x4d0   :  { %v3224_v8 = vrot.slane %v2655_v10, 4  ;;  %v3215_v56 = vperm.slane %v3211_v0, %v4073_v23 }
 0x4d1   :  { %v2707_v18 = vpop.f32.mrf.mxu0 }
 0x4d2   :  { %v2837_v39 = vpop.f32.mrf.mxu1  ;;  %v3225_v35 = vsel %vm198_vm8, %v3224_v8, %v2603_v40 }
 0x4d3   :  { %v3229_v42 = vperm.slane %v3225_v35, %v4050_v5  ;;  %v3258_v3 = vrot.slane %v2837_v39, 4 }
 0x4d5   :  { %v3230_v11 = vrot.slane %v3229_v42, 4 }
 0x4d7   :  { %v2759_v38 = vpop.f32.mrf.mxu2  ;;  %v3231_v41 = vsel %vm198_vm8, %v3230_v11, %v3223_v19 }
 0x4d8   :  { %v3244_v14 = vrot.slane %v2759_v38, 4  ;;  %v3235_v13 = vperm.slane %v3231_v41, %v4073_v23 }
 0x4d9   :  { %v2811_v58 = vpop.f32.mrf.mxu0 }
 0x4da   :  { %v3245_v31 = vsel %vm198_vm8, %v3244_v14, %v2707_v18  ;;  %v3195_v14 = vperm.slane %v3191_v1, %v4073_v23 }
 0x4db   :  { %v3249_v32 = vperm.slane %v3245_v31, %v4050_v5 }
 0x4dd   :  { %v3250_v45 = vrot.slane %v3249_v32, 4 }
 0x4df   :  { %v2785_v25 = vpop.f32.mrf.mxu3  ;;  %v3251_v12 = vsel %vm198_vm8, %v3250_v45, %v3243_v22  ;;  %v3216_v22 = vrot.slane %v3215_v56, 4 }
 0x4e0   :  { %v2863_v60 = vpop.f32.mrf.mxu2  ;;  %v3255_v26 = vperm.slane %v3251_v12, %v4073_v23  ;;  %v3259_v17 = vsel %vm198_vm8, %v3258_v3, %v2785_v25 }
 0x4e1   :  { %v3264_v2 = vrot.slane %v2863_v60, 4  ;;  %v3263_v8 = vperm.slane %v3259_v17, %v4050_v5  ;;  %v3217_v3 = vsel %vm198_vm8, 0.0, %v3216_v22 }
 0x4e2   :  { %v2915_v50 = vpop.f32.mrf.mxu0  ;;  %v3256_v60 = vrot.slane %v3255_v26, 4 }
 0x4e3   :  { %v3265_v49 = vsel %vm198_vm8, %v3264_v2, %v2811_v58  ;;  %v3236_v58 = vrot.slane %v3235_v13, 4  ;;  %v3196_v2 = vrot.slane %v3195_v14, 4 }
 0x4e4   :  { %v3269_v21 = vperm.slane %v3265_v49, %v4050_v5  ;;  %v3343_v34 = vsel %vm198_vm8, %v3256_v60, %v3215_v56  ;;  %v3257_v11 = vsel %vm198_vm8, 0.0, %v3256_v60 }
 0x4e5   :  { %v3237_v32 = vsel %vm198_vm8, 0.0, %v3236_v58  ;;  %v3338_v28 = vsel %vm198_vm8, %v3236_v58, %v3195_v14  ;;  %v3347_v57 = vperm.slane %v3343_v34, %v4050_v5  ;;  %v3197_v41 = vsel %vm198_vm8, 0.0, %v3196_v2 }
 0x4e6   :  { %v3270_v18 = vrot.slane %v3269_v21, 4  ;;  %v3342_v24 = vperm.slane %v3338_v28, %v4050_v5  ;;  %v3390_v19 = vrot.slane %v3237_v32, 4 }
 0x4e7   :  { %v2889_v59 = vpop.f32.mrf.mxu3 }
 0x4e8   :  { %v3360_v4 = vrot.slane %v3342_v24, 4  ;;  %v3391_v13 = vsel %vm198_vm8, %v3390_v19, %v3197_v41 }
 0x4ef   :  { %v2967_v15 = vpop.f32.mrf.mxu2 }
 0x4f0   :  { %v3284_v53 = vrot.slane %v2967_v15, 4  ;;  %v2993_v7 = vpop.f32.mrf.mxu3  ;;  %v3271_v15 = vsel %vm198_vm8, %v3270_v18, %v3263_v8 }
 0x4f1   :  { %v3275_v37 = vperm.slane %v3271_v15, %v4073_v23 }
 0x4f2   :  { %v2941_v9 = vpop.f32.mrf.mxu1  ;;  %v3285_v10 = vsel %vm198_vm8, %v3284_v53, %v2915_v50 }
 0x4f3   :  { %v3278_v40 = vrot.slane %v2941_v9, 4  ;;  %v3289_v39 = vperm.slane %v3285_v10, %v4050_v5  ;;  %v3276_v6 = vrot.slane %v3275_v37, 4 }
 0x4f5   :  { %v3279_v35 = vsel %vm198_vm8, %v3278_v40, %v2889_v59  ;;  %v3290_v9 = vrot.slane %v3289_v39, 4  ;;  %v3277_v20 = vsel %vm198_vm8, 0.0, %v3276_v6 }
 0x4f6   :  { %v3283_v46 = vperm.slane %v3279_v35, %v4050_v5 }
 0x4f7   :  { %v3071_v30 = vpop.f32.mrf.mxu2 }
 0x4f8   :  { %v3304_v29 = vrot.slane %v3071_v30, 4  ;;  %v3291_v49 = vsel %vm198_vm8, %v3290_v9, %v3283_v46 }
 0x4f9   :  { %v3295_v21 = vperm.slane %v3291_v49, %v4073_v23 }
 0x4fa   :  { %v3019_v51 = vpop.f32.mrf.mxu0  ;;  %v3045_v36 = vpop.f32.mrf.mxu1 }
 0x4fb   :  { %v3305_v54 = vsel %vm198_vm8, %v3304_v29, %v3019_v51  ;;  %v3298_v63 = vrot.slane %v3045_v36, 4  ;;  %v3396_v29 = vrot.slane %v3257_v11, 4  ;;  %v3358_v36 = vrot.slane %v3347_v57, 4 }
 0x4fc   :  { %v3309_v48 = vperm.slane %v3305_v54, %v4050_v5  ;;  %v3296_v10 = vrot.slane %v3295_v21, 4 }
 0x4fd   :  { %v3299_v44 = vsel %vm198_vm8, %v3298_v63, %v2993_v7  ;;  %v3361_v63 = vsel %vm198_vm8, %v3347_v57, %v3360_v4  ;;  %v3397_v26 = vsel %vm198_vm8, %v3396_v29, %v3217_v3  ;;  %v3359_v1 = vsel %vm198_vm8, %v3358_v36, %v3342_v24  ;;  %v3479_v4 = vld [vmem:[#allocation7 + $0x8] sm:$0xff] }
 0x4fe   :  { %v3310_v38 = vrot.slane %v3309_v48, 4  ;;  %v3303_v16 = vperm.slane %v3299_v44, %v4050_v5  ;;  %v3395_v48 = vperm.slane %v3391_v13, %v4050_v5  ;;  %v3369_v44 = vperm.slane %v3361_v63, %v4073_v23 }
 0x4ff   :  { %v3401_v18 = vperm.slane %v3397_v26, %v4050_v5  ;;  %v3365_v39 = vperm.slane %v3359_v1, %v4073_v23  ;;  %v3297_v14 = vsel %vm198_vm8, 0.0, %v3296_v10  ;;  %v3690_v10 = vld [vmem:[%s5250_s4] ss:$0 sm:$0xff] }
 0x500   :  { %v3311_v25 = vsel %vm198_vm8, %v3310_v38, %v3303_v16  ;;  %v3416_v35 = vrot.slane %v3395_v48, 4  ;;  %v3825_v1 = vld [vmem:[#allocation2] sm:$0xff] }
 0x501   :  { %v3315_v31 = vperm.slane %v3311_v25, %v4073_v23  ;;  %v3175_v33 = vpop.f32.mrf.mxu2  ;;  %v3388_v25 = vrot.slane %v3369_v44, 4  ;;  %v3414_v15 = vrot.slane %v3401_v18, 4  ;;  %v3384_v9 = vrot.slane %v3365_v39, 4 }
 0x502   :  { %v3324_v42 = vrot.slane %v3175_v33, 4  ;;  %v3123_v52 = vpop.f32.mrf.mxu0  ;;  %v3417_v32 = vsel %vm198_vm8, %v3401_v18, %v3416_v35 }
 0x503   :  { %v3316_v50 = vrot.slane %v3315_v31, 4  ;;  %v3149_v59 = vpop.f32.mrf.mxu1  ;;  %v3425_v2 = vperm.slane %v3417_v32, %v4073_v23 }
 0x504   :  { %v3325_v43 = vsel %vm198_vm8, %v3324_v42, %v3123_v52  ;;  %v3318_v61 = vrot.slane %v3149_v59, 4 }
 0x505   :  { %v3329_v45 = vperm.slane %v3325_v43, %v4050_v5  ;;  %v3317_v27 = vsel %vm198_vm8, 0.0, %v3316_v50  ;;  %v3348_v51 = vsel %vm198_vm8, %v3316_v50, %v3275_v37  ;;  %v3415_v37 = vsel %vm198_vm8, %v3414_v15, %v3395_v48 }
 0x506   :  { %v3402_v12 = vrot.slane %v3317_v27, 4  ;;  %v3352_v7 = vperm.slane %v3348_v51, %v4050_v5  ;;  %v3444_v49 = vrot.slane %v3425_v2, 4 }
 0x507   :  { %v3330_v53 = vrot.slane %v3329_v45, 4 }
 0x508   :  { %v3097_v30 = vpop.f32.mrf.mxu3  ;;  %v3403_v17 = vsel %vm198_vm8, %v3402_v12, %v3277_v20  ;;  %v3372_v8 = vrot.slane %v3352_v7, 4 }
 0x509   :  { %v3319_v55 = vsel %vm198_vm8, %v3318_v61, %v3097_v30  ;;  %v3407_v0 = vperm.slane %v3403_v17, %v4050_v5  ;;  %v3421_v61 = vperm.slane %v3415_v37, %v4073_v23 }
 0x50a   :  { %v3323_v62 = vperm.slane %v3319_v55, %v4050_v5 }
 0x50b   :  { %v3428_v50 = vrot.slane %v3407_v0, 4  ;;  %v3440_v6 = vrot.slane %v3421_v61, 4 }
 0x50c   :  { %v3331_v54 = vsel %vm198_vm8, %v3330_v53, %v3323_v62  ;;  %v3481_v62 = vld [vmem:[#allocation7 + $0x18] sm:$0xff] }
 0x50d   :  { %v3335_v47 = vperm.slane %v3331_v54, %v4073_v23  ;;  %3504 = vmatpush.msrb.mxu3 %v3481_v62 }
 0x50f   :  { %v3336_v40 = vrot.slane %v3335_v47, 4 }
 0x511   :  { %v3337_v38 = vsel %vm198_vm8, 0.0, %v3336_v40  ;;  %v3353_v16 = vsel %vm198_vm8, %v3336_v40, %v3295_v21  ;;  %v3478_v21 = vld [vmem:[#allocation7] sm:$0xff] }
 0x512   :  { %v3408_v58 = vrot.slane %v3337_v38, 4  ;;  %v3357_v60 = vperm.slane %v3353_v16, %v4050_v5 }
 0x514   :  { %v3373_v31 = vsel %vm198_vm8, %v3357_v60, %v3372_v8  ;;  %v3370_v33 = vrot.slane %v3357_v60, 4  ;;  %v3409_v56 = vsel %vm198_vm8, %v3408_v58, %v3297_v14 }
 0x515   :  { %v3381_v42 = vperm.slane %v3373_v31, %v4073_v23  ;;  %v3413_v52 = vperm.slane %v3409_v56, %v4050_v5 }
 0x516   :  { %v3371_v28 = vsel %vm198_vm8, %v3370_v33, %v3352_v7 }
 0x517   :  { %v3389_v46 = vsel %vm198_vm8, %v3381_v42, %v3388_v25  ;;  %v3386_v43 = vrot.slane %v3381_v42, 4  ;;  %v3377_v59 = vperm.slane %v3371_v28, %v4073_v23  ;;  %v3429_v34 = vsel %vm198_vm8, %v3413_v52, %v3428_v50 }
 0x518   :  { %3464 = vrot.lane.b32.xlu1 %v3389_v46, %s3942_s23  ;;  %v3426_v5 = vrot.slane %v3413_v52, 4  ;;  %v3437_v19 = vperm.slane %v3429_v34, %v4073_v23 }
 0x519   :  { %v3387_v11 = vsel %vm198_vm8, %v3386_v43, %v3369_v44  ;;  %v3385_v45 = vsel %vm198_vm8, %v3377_v59, %v3384_v9  ;;  %v3382_v24 = vrot.slane %v3377_v59, 4 }
 0x51a   :  { %3456 = vrot.lane.b32.xlu0 %v3387_v11, %s3943_s24  ;;  %3448 = vrot.lane.b32.xlu2 %v3385_v45, %s3931_s10  ;;  %v3427_v27 = vsel %vm198_vm8, %v3426_v5, %v3407_v0  ;;  %v3442_v30 = vrot.slane %v3437_v19, 4  ;;  %v3445_v29 = vsel %vm198_vm8, %v3437_v19, %v3444_v49  ;;  %v3826_v0 = vld [vmem:[#allocation2 + $0x8] sm:$0xff] }
 0x51b   :  { %v3433_v57 = vperm.slane %v3427_v27, %v4073_v23  ;;  %v3383_v22 = vsel %vm198_vm8, %v3382_v24, %v3365_v39  ;;  %v3480_v23 = vld [vmem:[#allocation7 + $0x10] sm:$0xff] }
 0x51c   :  { %v3443_v12 = vsel %vm198_vm8, %v3442_v30, %v3425_v2  ;;  %3505 = vmatpush.msrb.mxu3 %v3480_v23 }
 0x51d   :  { %v3438_v41 = vrot.slane %v3433_v57, 4  ;;  %v3441_v53 = vsel %vm198_vm8, %v3433_v57, %v3440_v6 }
 0x51e   :  { %3506 = vmatpush.msrb.mxu3 %v3479_v4 }
 0x51f   :  { %v3439_v55 = vsel %vm198_vm8, %v3438_v41, %v3421_v61 }
 0x520   :  { %3466 = vrot.lane.b32.xlu1 %v3445_v29, %s3942_s23  ;;  %3507 = vmatpush.msrb.mxu3 %v3478_v21 }
 0x522   :  { %3458 = vrot.lane.b32.xlu2 %v3443_v12, %s3943_s24  ;;  %3450 = vrot.lane.b32.xlu0 %v3441_v53, %s3931_s10 }
 0x574   :  { %v3449_v51 = vpop.permute.xlu2 %3448 }
 0x575   :  { %v3470_v36 = vsel %vm1158_vm9, %v3383_v22, %v3449_v51 }
 0x57c   :  { %v3459_v47 = vpop.permute.xlu2 %3458 }
 0x58a   :  { %v3465_v13 = vpop.permute.xlu1 %3464 }
 0x58c   :  { %v3457_v3 = vpop.permute.xlu0 %3456 }
 0x58d   :  { %v3473_v54 = vsel %vm3472_vm13, %v3470_v36, %v3457_v3 }
 0x58e   :  { %v3476_v63 = vsel %vm3475_vm14, %v3473_v54, %v3465_v13 }
 0x58f   :  { %3669 = vmatmul.msk.f32.vlgmr.msrb.gmra.mxu3 %vm76_vm0, %v3476_v63 }
 0x592   :  { %v3467_v7 = vpop.permute.xlu1 %3466 }
 0x594   :  { %v3451_v20 = vpop.permute.xlu0 %3450 }
 0x595   :  { %v3471_v26 = vsel %vm1158_vm9, %v3439_v55, %v3451_v20 }
 0x596   :  { %v3474_v48 = vsel %vm3472_vm13, %v3471_v26, %v3459_v47 }
 0x597   :  { %v3477_v17 = vsel %vm3475_vm14, %v3474_v48, %v3467_v7 }
 0x598   :  { %3670 = vmatmul.msk.f32.gmra.mxu3 %vm76_vm0, %v3477_v17 }
 0x612   :  { %v3509_v40 = vpop.f32.mrf.mxu3 }
 0x613   :  { %v3510_v44 = vadd.f32 %v3690_v10, %v3509_v40 }
 0x615   :  { %v3515_v18 = vadd.f32 %v3825_v1, %v3510_v44 }
 0x617   :  { %3517 = vst.msk [vmem:[#allocation8] sm:$0xff] %vm76_vm0, %v3515_v18 }
 0x61b   :  { %v3512_v38 = vpop.f32.mrf.mxu3 }
 0x61c   :  { %v3513_v16 = vadd.f32 %v3690_v10, %v3512_v38 }
 0x61e   :  { %v3516_v58 = vadd.f32 %v3826_v0, %v3513_v16 }
 0x620   :  { %3518 = vst.msk [vmem:[#allocation8 + $0x8] sm:$0xff] %vm76_vm0, %v3516_v58 }
 0x621   :  { %3531 = dma.vmem_to_hbm [thread:$0]  %s3524_s28, 256, %s3526_s8, [#allocation4], %s3930_s9, %s3930_s9, %s3931_s10  }
 0x622   :  { %3927 = dma.done.wait [#allocation4], 256  }
 0x623   :  { %3928 = vsyncadd [#allocation4], 4294967040 }
 0x624   :  { %3536 = vsyncpa [#allocation3], 1 }
 0x625   :  { %3537 = vsyncpa [#allocation6], 1 }
 0x626   :  { %3538 = vsyncpa [#allocation4], 1 }

</bundles_post_ra>
